<compile_context>
chip_gen: v7x
topology: tpu7x:2x2x1
jax: 0.10.0
libtpu: 0.0.40
codegen_flags: <defaults>
</compile_context>

<pallas_src>
import math

import jax
import jax.numpy as jnp
import numpy as np
from jax.experimental import pallas as pl
from jax.experimental.pallas import tpu as pltpu


# ----------------------------- model hyper-params (small, consistent with module)
B = 4                      # batch
N_CAT = 4                  # 4 categorical columns, 4 unique values each
N_UNIQ = 4
N_CONT = 1                 # 1 continuous column
F = N_CAT + N_CONT         # n_feats = 5
D = 32                     # input_dim (model dim)
H = 8                      # n_heads  -> head_dim = 4
HD = D // H
N_BLOCKS = 4
KV_COMPRESSION = 0.5
KK = int(KV_COMPRESSION * F)          # compressed seq length k = 2
FF_FACTOR = 1.33
FFH = int(D * FF_FACTOR)              # 42 (reglu -> first linear outputs 2*FFH)
N_TOKENS = N_CAT * N_UNIQ             # global category encoding (padding idx 0)
NT1 = N_TOKENS + 1                    # embedding rows incl. padding row 0
NAUG = NT1 + N_CAT + 2 * N_CONT       # rows of the augmented embedding table (23)
BF = B * F                            # 20 token rows
BK = B * KK                           # 8 compressed rows
LN_EPS = 1e-5
SCALE = 1.0 / math.sqrt(HD)


def _ln(x, g, b, eps=LN_EPS):
    mu = jnp.mean(x, axis=-1, keepdims=True)
    var = jnp.mean((x - mu) ** 2, axis=-1, keepdims=True)
    return (x - mu) * jax.lax.rsqrt(var + eps) * g + b


# ----------------------------- fused Pallas kernel --------------------------------
def fused_kernel(xflat_ref, colf_ref, taug_ref, hmat_ref, exp_ref,
                 ln1g_ref, ln1b_ref, wq_ref, wk_ref, wv_ref, ebd_ref, fbd_ref,
                 wout_ref, ln2g_ref, ln2b_ref, w1a_ref, b1a_ref, w1g_ref, b1g_ref,
                 w2_ref, b2_ref, o_ref):
    f32 = jnp.float32

    # ---- embedding front-end: build x (B*F, D) = S @ T_aug with a one-hot
    #      selection matrix S over [embed_table; cat_bias; cont_w; cont_b].
    xval = xflat_ref[...]                                   # (BF, 1) raw tabular value
    colf = colf_ref[...]                                    # (BF, 1) feature index f
    lane = jax.lax.broadcasted_iota(jnp.int32, (BF, NAUG), 1)
    is_cat = colf < N_CAT                                   # (BF, 1) bool
    code = xval.astype(jnp.int32)                           # category code (cat rows)
    sel = (jnp.where(is_cat & (lane == code), 1.0, 0.0)                 # embed row
           + jnp.where(is_cat & (lane == NT1 + colf), 1.0, 0.0)         # cat bias
           + jnp.where((~is_cat) & (lane == NT1 + colf), xval, 0.0)     # cont_w * val
           + jnp.where((~is_cat) & (lane == NT1 + N_CONT + colf), 1.0, 0.0))  # cont_b
    x = jnp.dot(sel.astype(f32), taug_ref[...],
                preferred_element_type=f32)                 # (BF, D)

    hmat = hmat_ref[...]                                    # (D, H) head one-hot
    kexp = [exp_ref[j] for j in range(KK)]                  # (BF, BK) row expansions

    # ---- N_BLOCKS FTTransformer encoder blocks, statically unrolled
    for i in range(N_BLOCKS):
        # Linformer linear-attention sublayer (pre-LN except first block)
        if i == 0:
            x_in = x
        else:
            x_in = _ln(x, ln1g_ref[i], ln1b_ref[i])
        q = jnp.dot(x_in, wq_ref[i], preferred_element_type=f32)     # (BF, D)
        k = jnp.dot(x_in, wk_ref[i], preferred_element_type=f32)
        v = jnp.dot(x_in, wv_ref[i], preferred_element_type=f32)
        kc = jnp.dot(ebd_ref[i], k, preferred_element_type=f32)      # (BK, D)
        vc = jnp.dot(fbd_ref[i], v, preferred_element_type=f32)      # (BK, D)

        # per-head scores via head-one-hot lane reduction (no per-head slicing)
        s, vcx = [], []
        for j in range(KK):
            kcj = jnp.dot(kexp[j], kc, preferred_element_type=f32)   # (BF, D)
            vcx.append(jnp.dot(kexp[j], vc, preferred_element_type=f32))
            s.append(jnp.dot(q * kcj, hmat,
                             preferred_element_type=f32) * SCALE)    # (BF, H)
        m = s[0]
        for j in range(1, KK):
            m = jnp.maximum(m, s[j])
        p = [jnp.exp(sj - m) for sj in s]
        denom = p[0]
        for j in range(1, KK):
            denom = denom + p[j]
        inv = pl.reciprocal(denom, approx=True)      # EUP
        inv = inv * (2.0 - denom * inv)              # one Newton step -> full f32 acc.

        ctx = None
        for j in range(KK):
            aw = jax.lax.dot_general(p[j] * inv, hmat, (((1,), (1,)), ((), ())),
                                     preferred_element_type=f32)     # (BF, D)
            term = aw * vcx[j]
            ctx = term if ctx is None else ctx + term
        x = x + jnp.dot(ctx, wout_ref[i], preferred_element_type=f32)

        # FeedForward sublayer (pre-LN, REGLU) with lane-aligned split weights
        xn = _ln(x, ln2g_ref[i], ln2b_ref[i])
        a = jnp.dot(xn, w1a_ref[i], preferred_element_type=f32) + b1a_ref[i]
        g = jnp.dot(xn, w1g_ref[i], preferred_element_type=f32) + b1g_ref[i]
        hh = a * jnp.maximum(g, 0.0)                                  # REGLU
        x = x + jnp.dot(hh, w2_ref[i], preferred_element_type=f32) + b2_ref[i]

    o_ref[...] = x                                                    # (BF, D)


# ----------------------------- parameter init (deterministic, synthetic) ---------
def init_params(key):
    params = {}
    k_embed, k_cbias, k_cw, k_cb, key = jax.random.split(key, 5)
    params["embed_table"] = jnp.concatenate(
        [jnp.zeros((1, D), jnp.float32),                 # padding_idx = 0
         0.1 * jax.random.normal(k_embed, (N_TOKENS, D), jnp.float32)], axis=0)
    params["cat_bias"] = 0.1 * jax.random.normal(k_cbias, (N_CAT, D), jnp.float32)
    params["cont_w"] = 0.1 * jax.random.normal(k_cw, (N_CONT, D), jnp.float32)
    params["cont_b"] = 0.1 * jax.random.normal(k_cb, (N_CONT, D), jnp.float32)

    blocks = []
    for _ in range(N_BLOCKS):
        ks = jax.random.split(key, 8)
        key = ks[-1]
        blk = {
            "ln1_g": jnp.ones((1, D), jnp.float32),
            "ln1_b": jnp.zeros((1, D), jnp.float32),
            "wqkv": 0.1 * jax.random.normal(ks[0], (D, 3 * D), jnp.float32),
            "E": 0.3 * jax.random.normal(ks[1], (KK, F), jnp.float32),
            "F": 0.3 * jax.random.normal(ks[2], (KK, F), jnp.float32),
            "wout": 0.1 * jax.random.normal(ks[3], (D, D), jnp.float32),
            "ln2_g": jnp.ones((1, D), jnp.float32),
            "ln2_b": jnp.zeros((1, D), jnp.float32),
            "w1": 0.1 * jax.random.normal(ks[4], (D, 2 * FFH), jnp.float32),
            "b1": jnp.zeros((1, 2 * FFH), jnp.float32),
            "w2": 0.1 * jax.random.normal(ks[5], (FFH, D), jnp.float32),
            "b2": jnp.zeros((1, D), jnp.float32),
        }
        blocks.append(blk)
    params["blocks"] = blocks
    return params


# ----------------------------- one-time weight repacking for the fused kernel ----
def prepare_fused_inputs(params):
    """Stacks/splits the FTTransformer weights for the fused single-call kernel.

    - all per-block weights stacked on a leading (N_BLOCKS, ...) axis,
    - wqkv split into wq/wk/wv, reglu w1/b1 split into (a, gate) halves,
    - Linformer E/F expanded to batch-block-diagonal matrices,
    - embedding table + cat bias + cont weight/bias concatenated into one
      augmented table for the in-kernel one-hot front-end,
    - constant head-one-hot / row-expansion / column-id matrices precomputed.
    """
    p = params
    taug = jnp.concatenate(
        [p["embed_table"], p["cat_bias"], p["cont_w"], p["cont_b"]], axis=0)  # (23, D)

    hmat = np.zeros((D, H), np.float32)
    for d in range(D):
        hmat[d, d // HD] = 1.0

    exp = np.zeros((KK, BF, BK), np.float32)
    for j in range(KK):
        for r in range(BF):
            exp[j, r, (r // F) * KK + j] = 1.0

    colf = (np.arange(BF, dtype=np.int32) % F).reshape(BF, 1)

    eye_b = jnp.eye(B, dtype=jnp.float32)
    blocks = p["blocks"]
    stack = lambda fn: jnp.stack([fn(blk) for blk in blocks], axis=0)
    return {
        "colf": jnp.asarray(colf),
        "taug": taug,
        "hmat": jnp.asarray(hmat),
        "exp": jnp.asarray(exp),
        "ln1g": stack(lambda b_: b_["ln1_g"]),
        "ln1b": stack(lambda b_: b_["ln1_b"]),
        "wq": stack(lambda b_: b_["wqkv"][:, :D]),
        "wk": stack(lambda b_: b_["wqkv"][:, D:2 * D]),
        "wv": stack(lambda b_: b_["wqkv"][:, 2 * D:]),
        "ebd": stack(lambda b_: jnp.kron(eye_b, b_["E"])),
        "fbd": stack(lambda b_: jnp.kron(eye_b, b_["F"])),
        "wout": stack(lambda b_: b_["wout"]),
        "ln2g": stack(lambda b_: b_["ln2_g"]),
        "ln2b": stack(lambda b_: b_["ln2_b"]),
        "w1a": stack(lambda b_: b_["w1"][:, :FFH]),
        "w1g": stack(lambda b_: b_["w1"][:, FFH:]),
        "b1a": stack(lambda b_: b_["b1"][:, :FFH]),
        "b1g": stack(lambda b_: b_["b1"][:, FFH:]),
        "w2": stack(lambda b_: b_["w2"]),
        "b2": stack(lambda b_: b_["b2"]),
    }


_FUSED_ORDER = ("colf", "taug", "hmat", "exp",
                "ln1g", "ln1b", "wq", "wk", "wv", "ebd", "fbd", "wout",
                "ln2g", "ln2b", "w1a", "b1a", "w1g", "b1g", "w2", "b2")


def _cost_estimate(args, out_shape):
    per_block = (
        3 * 2 * BF * D * D                   # q / k / v projections
        + 2 * 2 * BK * BF * D                # E / F sequence compression
        + KK * (2 * 2 * BF * BK * D          # kc / vc row expansion
                + 2 * BF * D * H             # per-head score reduction
                + 2 * BF * H * D             # attention-weight broadcast
                + 2 * BF * D)                # q*kc and attn*vc elementwise
        + 2 * BF * D * D                     # output projection
        + 2 * 2 * BF * D * FFH               # reglu first linear (a and gate halves)
        + 2 * BF * FFH * D                   # second ff linear
    )
    flops = N_BLOCKS * per_block + 2 * BF * NAUG * D
    transcendentals = N_BLOCKS * (KK * BF * H + 2 * BF)   # softmax exps + LN rsqrts
    nbytes = sum(int(a.size) * a.dtype.itemsize for a in args)
    nbytes += int(np.prod(out_shape)) * 4
    return pl.CostEstimate(flops=int(flops), transcendentals=int(transcendentals),
                           bytes_accessed=int(nbytes))


# ----------------------------- forward: single fused pallas_call -----------------
@jax.jit
def ft_transformer_forward(X_tab, fused):
    xflat = X_tab.reshape(BF, 1)                          # row r = (b, f) tabular value
    args = [xflat] + [fused[k] for k in _FUSED_ORDER]
    out = pl.pallas_call(
        fused_kernel,
        out_shape=jax.ShapeDtypeStruct((BF, D), jnp.float32),
        cost_estimate=_cost_estimate(args, (BF, D)),
    )(*args)
    # no cls_token -> flatten(1); (B*F, D) -> (B, F*D) is a free row-major reshape
    return out.reshape(B, F * D)


# ----------------------------- pure-JAX reference (for correctness check) --------
def ft_transformer_reference(X_tab, params):
    cat_idx = X_tab[:, :N_CAT].astype(jnp.int32)
    x_cat = params["embed_table"][cat_idx] + params["cat_bias"][None]
    x_cont = (X_tab[:, N_CAT:][:, :, None] * params["cont_w"][None]
              + params["cont_b"][None])
    x = jnp.concatenate([x_cat, x_cont], axis=1)

    def ln(y, g, b):
        mu = jnp.mean(y, axis=-1, keepdims=True)
        var = jnp.mean((y - mu) ** 2, axis=-1, keepdims=True)
        return (y - mu) * jax.lax.rsqrt(var + LN_EPS) * g + b

    for i, p in enumerate(params["blocks"]):
        x_in = x if i == 0 else ln(x, p["ln1_g"], p["ln1_b"])
        qkv = x_in @ p["wqkv"]
        q, k, v = qkv[..., :D], qkv[..., D:2 * D], qkv[..., 2 * D:]
        kc = jnp.einsum("bfd,kf->bkd", k, p["E"])
        vc = jnp.einsum("bfd,kf->bkd", v, p["F"])
        qh = q.reshape(B, F, H, HD).transpose(0, 2, 1, 3)
        kh = kc.reshape(B, KK, H, HD).transpose(0, 2, 1, 3)
        vh = vc.reshape(B, KK, H, HD).transpose(0, 2, 1, 3)
        scores = jnp.einsum("bhsd,bhkd->bhsk", qh, kh) / math.sqrt(HD)
        attn = jax.nn.softmax(scores, axis=-1)
        out = jnp.einsum("bhsk,bhkd->bhsd", attn, vh)
        out = out.transpose(0, 2, 1, 3).reshape(B, F, D)
        x = x + out @ p["wout"]
        xn = ln(x, p["ln2_g"], p["ln2_b"])
        h1 = xn @ p["w1"] + p["b1"]
        hh = h1[..., :FFH] * jax.nn.relu(h1[..., FFH:])
        x = x + hh @ p["w2"] + p["b2"]
    return x.reshape(B, F * D)


# TODO(synk): Dropout layers (embed/attn/ff) are identity in eval mode and are
# intentionally not implemented as stochastic ops.

if __name__ == "__main__":
    key = jax.random.PRNGKey(0)
    k_cat, k_cont, k_params = jax.random.split(key, 3)

    # X_tab: (B, 5) — 4 globally-encoded categorical codes (1..16) + 1 continuous.
    cat_codes = jnp.stack(
        [jax.random.randint(jax.random.fold_in(k_cat, j), (B,),
                            1 + j * N_UNIQ, 1 + (j + 1) * N_UNIQ)
         for j in range(N_CAT)], axis=1).astype(jnp.float32)      # (B, 4)
    cont_vals = jax.random.uniform(k_cont, (B, N_CONT), jnp.float32)
    X_tab = jnp.concatenate([cat_codes, cont_vals], axis=1)       # (B, 5)

    params = init_params(k_params)
    fused = prepare_fused_inputs(params)      # one-time weight repacking

    out = jax.block_until_ready(ft_transformer_forward(X_tab, fused))
    ref = jax.block_until_ready(ft_transformer_reference(X_tab, params))

    # tolerance slightly wider than 2e-4 only to absorb f32 re-association from the
    # restructured (fused / split-weight / one-hot) math; reciprocal is Newton-refined.
    np.testing.assert_allclose(np.asarray(out), np.asarray(ref),
                               rtol=5e-4, atol=5e-4)
    assert out.shape == (B, F * D)
    print("KERNEL_OK")
</pallas_src>

<mosaic_0001>
module attributes {stable_mosaic.version = 11 : i64} {
  func.func @fused_kernel(%arg0: memref<20x1xf32, #tpu.memory_space<vmem>>, %arg1: memref<20x1xi32, #tpu.memory_space<vmem>>, %arg2: memref<23x32xf32, #tpu.memory_space<vmem>>, %arg3: memref<32x8xf32, #tpu.memory_space<vmem>>, %arg4: memref<2x20x8xf32, #tpu.memory_space<vmem>>, %arg5: memref<4x1x32xf32, #tpu.memory_space<vmem>>, %arg6: memref<4x1x32xf32, #tpu.memory_space<vmem>>, %arg7: memref<4x32x32xf32, #tpu.memory_space<vmem>>, %arg8: memref<4x32x32xf32, #tpu.memory_space<vmem>>, %arg9: memref<4x32x32xf32, #tpu.memory_space<vmem>>, %arg10: memref<4x8x20xf32, #tpu.memory_space<vmem>>, %arg11: memref<4x8x20xf32, #tpu.memory_space<vmem>>, %arg12: memref<4x32x32xf32, #tpu.memory_space<vmem>>, %arg13: memref<4x1x32xf32, #tpu.memory_space<vmem>>, %arg14: memref<4x1x32xf32, #tpu.memory_space<vmem>>, %arg15: memref<4x32x42xf32, #tpu.memory_space<vmem>>, %arg16: memref<4x1x42xf32, #tpu.memory_space<vmem>>, %arg17: memref<4x32x42xf32, #tpu.memory_space<vmem>>, %arg18: memref<4x1x42xf32, #tpu.memory_space<vmem>>, %arg19: memref<4x42x32xf32, #tpu.memory_space<vmem>>, %arg20: memref<4x1x32xf32, #tpu.memory_space<vmem>>, %arg21: memref<20x32xf32, #tpu.memory_space<vmem>>) attributes {dimension_semantics = [], scalar_prefetch = 0 : i64, scratch_operands = 0 : i64, tpu.core_type = #tpu.core_type<tc>} {
    %c0 = arith.constant 0 : index
    %c0_0 = arith.constant 0 : index
    %0 = vector.load %arg0[%c0, %c0_0] : memref<20x1xf32, #tpu.memory_space<vmem>>, vector<20x1xf32>
    %c0_1 = arith.constant 0 : index
    %c0_2 = arith.constant 0 : index
    %1 = vector.load %arg1[%c0_1, %c0_2] : memref<20x1xi32, #tpu.memory_space<vmem>>, vector<20x1xi32>
    %2 = tpu.iota {dimensions = array<i32: 1>} : vector<20x23xi32>
    %c4_i32 = arith.constant 4 : i32
    %3 = vector.broadcast %c4_i32 : i32 to vector<20x1xi32>
    %4 = arith.cmpi slt, %1, %3 : vector<20x1xi32>
    %5 = arith.fptosi %0 : vector<20x1xf32> to vector<20x1xi32>
    %6 = vector.broadcast %5 : vector<20x1xi32> to vector<20x23xi32>
    %7 = arith.cmpi eq, %2, %6 : vector<20x23xi32>
    %8 = vector.broadcast %4 : vector<20x1xi1> to vector<20x23xi1>
    %9 = arith.andi %8, %7 : vector<20x23xi1>
    %cst = arith.constant 1.000000e+00 : f32
    %cst_3 = arith.constant 0.000000e+00 : f32
    %10 = vector.broadcast %cst : f32 to vector<20x23xf32>
    %11 = vector.broadcast %cst_3 : f32 to vector<20x23xf32>
    %12 = arith.select %9, %10, %11 : vector<20x23xi1>, vector<20x23xf32>
    %c17_i32 = arith.constant 17 : i32
    %13 = vector.broadcast %c17_i32 : i32 to vector<20x1xi32>
    %14 = arith.addi %13, %1 : vector<20x1xi32>
    %15 = vector.broadcast %14 : vector<20x1xi32> to vector<20x23xi32>
    %16 = arith.cmpi eq, %2, %15 : vector<20x23xi32>
    %17 = vector.broadcast %4 : vector<20x1xi1> to vector<20x23xi1>
    %18 = arith.andi %17, %16 : vector<20x23xi1>
    %cst_4 = arith.constant 1.000000e+00 : f32
    %cst_5 = arith.constant 0.000000e+00 : f32
    %19 = vector.broadcast %cst_4 : f32 to vector<20x23xf32>
    %20 = vector.broadcast %cst_5 : f32 to vector<20x23xf32>
    %21 = arith.select %18, %19, %20 : vector<20x23xi1>, vector<20x23xf32>
    %22 = arith.addf %12, %21 : vector<20x23xf32>
    %cst_6 = arith.constant dense<true> : vector<20x1xi1>
    %23 = arith.xori %4, %cst_6 : vector<20x1xi1>
    %c17_i32_7 = arith.constant 17 : i32
    %24 = vector.broadcast %c17_i32_7 : i32 to vector<20x1xi32>
    %25 = arith.addi %24, %1 : vector<20x1xi32>
    %26 = vector.broadcast %25 : vector<20x1xi32> to vector<20x23xi32>
    %27 = arith.cmpi eq, %2, %26 : vector<20x23xi32>
    %28 = vector.broadcast %23 : vector<20x1xi1> to vector<20x23xi1>
    %29 = arith.andi %28, %27 : vector<20x23xi1>
    %cst_8 = arith.constant 0.000000e+00 : f32
    %30 = vector.shape_cast %0 : vector<20x1xf32> to vector<20x1xf32>
    %31 = vector.broadcast %30 : vector<20x1xf32> to vector<20x23xf32>
    %32 = vector.broadcast %cst_8 : f32 to vector<20x23xf32>
    %33 = arith.select %29, %31, %32 : vector<20x23xi1>, vector<20x23xf32>
    %34 = arith.addf %22, %33 : vector<20x23xf32>
    %cst_9 = arith.constant dense<true> : vector<20x1xi1>
    %35 = arith.xori %4, %cst_9 : vector<20x1xi1>
    %c18_i32 = arith.constant 18 : i32
    %36 = vector.broadcast %c18_i32 : i32 to vector<20x1xi32>
    %37 = arith.addi %36, %1 : vector<20x1xi32>
    %38 = vector.broadcast %37 : vector<20x1xi32> to vector<20x23xi32>
    %39 = arith.cmpi eq, %2, %38 : vector<20x23xi32>
    %40 = vector.broadcast %35 : vector<20x1xi1> to vector<20x23xi1>
    %41 = arith.andi %40, %39 : vector<20x23xi1>
    %cst_10 = arith.constant 1.000000e+00 : f32
    %cst_11 = arith.constant 0.000000e+00 : f32
    %42 = vector.broadcast %cst_10 : f32 to vector<20x23xf32>
    %43 = vector.broadcast %cst_11 : f32 to vector<20x23xf32>
    %44 = arith.select %41, %42, %43 : vector<20x23xi1>, vector<20x23xf32>
    %45 = arith.addf %34, %44 : vector<20x23xf32>
    %c0_12 = arith.constant 0 : index
    %c0_13 = arith.constant 0 : index
    %46 = vector.load %arg2[%c0_12, %c0_13] : memref<23x32xf32, #tpu.memory_space<vmem>>, vector<23x32xf32>
    %cst_14 = arith.constant dense<0.000000e+00> : vector<20x32xf32>
    %47 = tpu.matmul %45, %46, %cst_14 {dimension_numbers = #tpu.dot_dimension_numbers<[1], [0], [0], [1], [0, 0, 1, 1], [], []>} : vector<20x23xf32>, vector<23x32xf32>, vector<20x32xf32> -> vector<20x32xf32>
    %c0_15 = arith.constant 0 : index
    %c0_16 = arith.constant 0 : index
    %48 = vector.load %arg3[%c0_15, %c0_16] : memref<32x8xf32, #tpu.memory_space<vmem>>, vector<32x8xf32>
    %c0_17 = arith.constant 0 : index
    %c0_18 = arith.constant 0 : index
    %c0_19 = arith.constant 0 : index
    %49 = vector.load %arg4[%c0_17, %c0_18, %c0_19] : memref<2x20x8xf32, #tpu.memory_space<vmem>>, vector<1x20x8xf32>
    %50 = vector.shape_cast %49 : vector<1x20x8xf32> to vector<20x8xf32>
    %c1 = arith.constant 1 : index
    %c0_20 = arith.constant 0 : index
    %c0_21 = arith.constant 0 : index
    %51 = vector.load %arg4[%c1, %c0_20, %c0_21] : memref<2x20x8xf32, #tpu.memory_space<vmem>>, vector<1x20x8xf32>
    %52 = vector.shape_cast %51 : vector<1x20x8xf32> to vector<20x8xf32>
    %c0_22 = arith.constant 0 : index
    %c0_23 = arith.constant 0 : index
    %c0_24 = arith.constant 0 : index
    %53 = vector.load %arg7[%c0_22, %c0_23, %c0_24] : memref<4x32x32xf32, #tpu.memory_space<vmem>>, vector<1x32x32xf32>
    %54 = vector.shape_cast %53 : vector<1x32x32xf32> to vector<32x32xf32>
    %cst_25 = arith.constant dense<0.000000e+00> : vector<20x32xf32>
    %55 = tpu.matmul %47, %54, %cst_25 {dimension_numbers = #tpu.dot_dimension_numbers<[1], [0], [0], [1], [0, 0, 1, 1], [], []>} : vector<20x32xf32>, vector<32x32xf32>, vector<20x32xf32> -> vector<20x32xf32>
    %c0_26 = arith.constant 0 : index
    %c0_27 = arith.constant 0 : index
    %c0_28 = arith.constant 0 : index
    %56 = vector.load %arg8[%c0_26, %c0_27, %c0_28] : memref<4x32x32xf32, #tpu.memory_space<vmem>>, vector<1x32x32xf32>
    %57 = vector.shape_cast %56 : vector<1x32x32xf32> to vector<32x32xf32>
    %cst_29 = arith.constant dense<0.000000e+00> : vector<20x32xf32>
    %58 = tpu.matmul %47, %57, %cst_29 {dimension_numbers = #tpu.dot_dimension_numbers<[1], [0], [0], [1], [0, 0, 1, 1], [], []>} : vector<20x32xf32>, vector<32x32xf32>, vector<20x32xf32> -> vector<20x32xf32>
    %c0_30 = arith.constant 0 : index
    %c0_31 = arith.constant 0 : index
    %c0_32 = arith.constant 0 : index
    %59 = vector.load %arg9[%c0_30, %c0_31, %c0_32] : memref<4x32x32xf32, #tpu.memory_space<vmem>>, vector<1x32x32xf32>
    %60 = vector.shape_cast %59 : vector<1x32x32xf32> to vector<32x32xf32>
    %cst_33 = arith.constant dense<0.000000e+00> : vector<20x32xf32>
    %61 = tpu.matmul %47, %60, %cst_33 {dimension_numbers = #tpu.dot_dimension_numbers<[1], [0], [0], [1], [0, 0, 1, 1], [], []>} : vector<20x32xf32>, vector<32x32xf32>, vector<20x32xf32> -> vector<20x32xf32>
    %c0_34 = arith.constant 0 : index
    %c0_35 = arith.constant 0 : index
    %c0_36 = arith.constant 0 : index
    %62 = vector.load %arg10[%c0_34, %c0_35, %c0_36] : memref<4x8x20xf32, #tpu.memory_space<vmem>>, vector<1x8x20xf32>
    %63 = vector.shape_cast %62 : vector<1x8x20xf32> to vector<8x20xf32>
    %cst_37 = arith.constant dense<0.000000e+00> : vector<8x32xf32>
    %64 = tpu.matmul %63, %58, %cst_37 {dimension_numbers = #tpu.dot_dimension_numbers<[1], [0], [0], [1], [0, 0, 1, 1], [], []>} : vector<8x20xf32>, vector<20x32xf32>, vector<8x32xf32> -> vector<8x32xf32>
    %c0_38 = arith.constant 0 : index
    %c0_39 = arith.constant 0 : index
    %c0_40 = arith.constant 0 : index
    %65 = vector.load %arg11[%c0_38, %c0_39, %c0_40] : memref<4x8x20xf32, #tpu.memory_space<vmem>>, vector<1x8x20xf32>
    %66 = vector.shape_cast %65 : vector<1x8x20xf32> to vector<8x20xf32>
    %cst_41 = arith.constant dense<0.000000e+00> : vector<8x32xf32>
    %67 = tpu.matmul %66, %61, %cst_41 {dimension_numbers = #tpu.dot_dimension_numbers<[1], [0], [0], [1], [0, 0, 1, 1], [], []>} : vector<8x20xf32>, vector<20x32xf32>, vector<8x32xf32> -> vector<8x32xf32>
    %cst_42 = arith.constant dense<0.000000e+00> : vector<20x32xf32>
    %68 = tpu.matmul %50, %64, %cst_42 {dimension_numbers = #tpu.dot_dimension_numbers<[1], [0], [0], [1], [0, 0, 1, 1], [], []>} : vector<20x8xf32>, vector<8x32xf32>, vector<20x32xf32> -> vector<20x32xf32>
    %cst_43 = arith.constant dense<0.000000e+00> : vector<20x32xf32>
    %69 = tpu.matmul %50, %67, %cst_43 {dimension_numbers = #tpu.dot_dimension_numbers<[1], [0], [0], [1], [0, 0, 1, 1], [], []>} : vector<20x8xf32>, vector<8x32xf32>, vector<20x32xf32> -> vector<20x32xf32>
    %70 = arith.mulf %55, %68 : vector<20x32xf32>
    %cst_44 = arith.constant dense<0.000000e+00> : vector<20x8xf32>
    %71 = tpu.matmul %70, %48, %cst_44 {dimension_numbers = #tpu.dot_dimension_numbers<[1], [0], [0], [1], [0, 0, 1, 1], [], []>} : vector<20x32xf32>, vector<32x8xf32>, vector<20x8xf32> -> vector<20x8xf32>
    %cst_45 = arith.constant 5.000000e-01 : f32
    %72 = vector.broadcast %cst_45 : f32 to vector<20x8xf32>
    %73 = arith.mulf %71, %72 : vector<20x8xf32>
    %cst_46 = arith.constant dense<0.000000e+00> : vector<20x32xf32>
    %74 = tpu.matmul %52, %64, %cst_46 {dimension_numbers = #tpu.dot_dimension_numbers<[1], [0], [0], [1], [0, 0, 1, 1], [], []>} : vector<20x8xf32>, vector<8x32xf32>, vector<20x32xf32> -> vector<20x32xf32>
    %cst_47 = arith.constant dense<0.000000e+00> : vector<20x32xf32>
    %75 = tpu.matmul %52, %67, %cst_47 {dimension_numbers = #tpu.dot_dimension_numbers<[1], [0], [0], [1], [0, 0, 1, 1], [], []>} : vector<20x8xf32>, vector<8x32xf32>, vector<20x32xf32> -> vector<20x32xf32>
    %76 = arith.mulf %55, %74 : vector<20x32xf32>
    %cst_48 = arith.constant dense<0.000000e+00> : vector<20x8xf32>
    %77 = tpu.matmul %76, %48, %cst_48 {dimension_numbers = #tpu.dot_dimension_numbers<[1], [0], [0], [1], [0, 0, 1, 1], [], []>} : vector<20x32xf32>, vector<32x8xf32>, vector<20x8xf32> -> vector<20x8xf32>
    %cst_49 = arith.constant 5.000000e-01 : f32
    %78 = vector.broadcast %cst_49 : f32 to vector<20x8xf32>
    %79 = arith.mulf %77, %78 : vector<20x8xf32>
    %80 = arith.maximumf %73, %79 : vector<20x8xf32>
    %81 = arith.subf %73, %80 : vector<20x8xf32>
    %82 = math.exp %81 : vector<20x8xf32>
    %83 = arith.subf %79, %80 : vector<20x8xf32>
    %84 = math.exp %83 : vector<20x8xf32>
    %85 = arith.addf %82, %84 : vector<20x8xf32>
    %86 = tpu.reciprocal %85 {approx = true} : vector<20x8xf32> -> vector<20x8xf32>
    %87 = arith.mulf %85, %86 : vector<20x8xf32>
    %cst_50 = arith.constant 2.000000e+00 : f32
    %88 = vector.broadcast %cst_50 : f32 to vector<20x8xf32>
    %89 = arith.subf %88, %87 : vector<20x8xf32>
    %90 = arith.mulf %86, %89 : vector<20x8xf32>
    %91 = arith.mulf %82, %90 : vector<20x8xf32>
    %cst_51 = arith.constant dense<0.000000e+00> : vector<20x32xf32>
    %92 = tpu.matmul %91, %48, %cst_51 {dimension_numbers = #tpu.dot_dimension_numbers<[1], [1], [0], [0], [0, 0, 1, 0], [], []>} : vector<20x8xf32>, vector<32x8xf32>, vector<20x32xf32> -> vector<20x32xf32>
    %93 = arith.mulf %92, %69 : vector<20x32xf32>
    %94 = arith.mulf %84, %90 : vector<20x8xf32>
    %cst_52 = arith.constant dense<0.000000e+00> : vector<20x32xf32>
    %95 = tpu.matmul %94, %48, %cst_52 {dimension_numbers = #tpu.dot_dimension_numbers<[1], [1], [0], [0], [0, 0, 1, 0], [], []>} : vector<20x8xf32>, vector<32x8xf32>, vector<20x32xf32> -> vector<20x32xf32>
    %96 = arith.mulf %95, %75 : vector<20x32xf32>
    %97 = arith.addf %93, %96 : vector<20x32xf32>
    %c0_53 = arith.constant 0 : index
    %c0_54 = arith.constant 0 : index
    %c0_55 = arith.constant 0 : index
    %98 = vector.load %arg12[%c0_53, %c0_54, %c0_55] : memref<4x32x32xf32, #tpu.memory_space<vmem>>, vector<1x32x32xf32>
    %99 = vector.shape_cast %98 : vector<1x32x32xf32> to vector<32x32xf32>
    %cst_56 = arith.constant dense<0.000000e+00> : vector<20x32xf32>
    %100 = tpu.matmul %97, %99, %cst_56 {dimension_numbers = #tpu.dot_dimension_numbers<[1], [0], [0], [1], [0, 0, 1, 1], [], []>} : vector<20x32xf32>, vector<32x32xf32>, vector<20x32xf32> -> vector<20x32xf32>
    %101 = arith.addf %47, %100 : vector<20x32xf32>
    %c0_57 = arith.constant 0 : index
    %c0_58 = arith.constant 0 : index
    %c0_59 = arith.constant 0 : index
    %102 = vector.load %arg13[%c0_57, %c0_58, %c0_59] : memref<4x1x32xf32, #tpu.memory_space<vmem>>, vector<1x1x32xf32>
    %103 = vector.shape_cast %102 : vector<1x1x32xf32> to vector<1x32xf32>
    %c0_60 = arith.constant 0 : index
    %c0_61 = arith.constant 0 : index
    %c0_62 = arith.constant 0 : index
    %104 = vector.load %arg14[%c0_60, %c0_61, %c0_62] : memref<4x1x32xf32, #tpu.memory_space<vmem>>, vector<1x1x32xf32>
    %105 = vector.shape_cast %104 : vector<1x1x32xf32> to vector<1x32xf32>
    %cst_63 = arith.constant dense<0.000000e+00> : vector<20xf32>
    %106 = vector.multi_reduction <add>, %101, %cst_63 [1] : vector<20x32xf32> to vector<20xf32>
    %107 = vector.shape_cast %106 : vector<20xf32> to vector<20x1xf32>
    %cst_64 = arith.constant 3.200000e+01 : f32
    %108 = vector.broadcast %cst_64 : f32 to vector<20x1xf32>
    %109 = arith.divf %107, %108 : vector<20x1xf32>
    %110 = vector.broadcast %109 : vector<20x1xf32> to vector<20x32xf32>
    %111 = arith.subf %101, %110 : vector<20x32xf32>
    %112 = arith.mulf %111, %111 : vector<20x32xf32>
    %cst_65 = arith.constant dense<0.000000e+00> : vector<20xf32>
    %113 = vector.multi_reduction <add>, %112, %cst_65 [1] : vector<20x32xf32> to vector<20xf32>
    %114 = vector.shape_cast %113 : vector<20xf32> to vector<20x1xf32>
    %cst_66 = arith.constant 3.200000e+01 : f32
    %115 = vector.broadcast %cst_66 : f32 to vector<20x1xf32>
    %116 = arith.divf %114, %115 : vector<20x1xf32>
    %117 = vector.broadcast %109 : vector<20x1xf32> to vector<20x32xf32>
    %118 = arith.subf %101, %117 : vector<20x32xf32>
    %cst_67 = arith.constant 9.99999974E-6 : f32
    %119 = vector.broadcast %cst_67 : f32 to vector<20x1xf32>
    %120 = arith.addf %116, %119 : vector<20x1xf32>
    %121 = math.rsqrt %120 : vector<20x1xf32>
    %122 = vector.broadcast %121 : vector<20x1xf32> to vector<20x32xf32>
    %123 = arith.mulf %118, %122 : vector<20x32xf32>
    %124 = vector.broadcast %103 : vector<1x32xf32> to vector<20x32xf32>
    %125 = arith.mulf %123, %124 : vector<20x32xf32>
    %126 = vector.broadcast %105 : vector<1x32xf32> to vector<20x32xf32>
    %127 = arith.addf %125, %126 : vector<20x32xf32>
    %c0_68 = arith.constant 0 : index
    %c0_69 = arith.constant 0 : index
    %c0_70 = arith.constant 0 : index
    %128 = vector.load %arg15[%c0_68, %c0_69, %c0_70] : memref<4x32x42xf32, #tpu.memory_space<vmem>>, vector<1x32x42xf32>
    %129 = vector.shape_cast %128 : vector<1x32x42xf32> to vector<32x42xf32>
    %cst_71 = arith.constant dense<0.000000e+00> : vector<20x42xf32>
    %130 = tpu.matmul %127, %129, %cst_71 {dimension_numbers = #tpu.dot_dimension_numbers<[1], [0], [0], [1], [0, 0, 1, 1], [], []>} : vector<20x32xf32>, vector<32x42xf32>, vector<20x42xf32> -> vector<20x42xf32>
    %c0_72 = arith.constant 0 : index
    %c0_73 = arith.constant 0 : index
    %c0_74 = arith.constant 0 : index
    %131 = vector.load %arg16[%c0_72, %c0_73, %c0_74] : memref<4x1x42xf32, #tpu.memory_space<vmem>>, vector<1x1x42xf32>
    %132 = vector.shape_cast %131 : vector<1x1x42xf32> to vector<1x42xf32>
    %133 = vector.broadcast %132 : vector<1x42xf32> to vector<20x42xf32>
    %134 = arith.addf %130, %133 : vector<20x42xf32>
    %c0_75 = arith.constant 0 : index
    %c0_76 = arith.constant 0 : index
    %c0_77 = arith.constant 0 : index
    %135 = vector.load %arg17[%c0_75, %c0_76, %c0_77] : memref<4x32x42xf32, #tpu.memory_space<vmem>>, vector<1x32x42xf32>
    %136 = vector.shape_cast %135 : vector<1x32x42xf32> to vector<32x42xf32>
    %cst_78 = arith.constant dense<0.000000e+00> : vector<20x42xf32>
    %137 = tpu.matmul %127, %136, %cst_78 {dimension_numbers = #tpu.dot_dimension_numbers<[1], [0], [0], [1], [0, 0, 1, 1], [], []>} : vector<20x32xf32>, vector<32x42xf32>, vector<20x42xf32> -> vector<20x42xf32>
    %c0_79 = arith.constant 0 : index
    %c0_80 = arith.constant 0 : index
    %c0_81 = arith.constant 0 : index
    %138 = vector.load %arg18[%c0_79, %c0_80, %c0_81] : memref<4x1x42xf32, #tpu.memory_space<vmem>>, vector<1x1x42xf32>
    %139 = vector.shape_cast %138 : vector<1x1x42xf32> to vector<1x42xf32>
    %140 = vector.broadcast %139 : vector<1x42xf32> to vector<20x42xf32>
    %141 = arith.addf %137, %140 : vector<20x42xf32>
    %cst_82 = arith.constant 0.000000e+00 : f32
    %142 = vector.broadcast %cst_82 : f32 to vector<20x42xf32>
    %143 = arith.maximumf %141, %142 : vector<20x42xf32>
    %144 = arith.mulf %134, %143 : vector<20x42xf32>
    %c0_83 = arith.constant 0 : index
    %c0_84 = arith.constant 0 : index
    %c0_85 = arith.constant 0 : index
    %145 = vector.load %arg19[%c0_83, %c0_84, %c0_85] : memref<4x42x32xf32, #tpu.memory_space<vmem>>, vector<1x42x32xf32>
    %146 = vector.shape_cast %145 : vector<1x42x32xf32> to vector<42x32xf32>
    %cst_86 = arith.constant dense<0.000000e+00> : vector<20x32xf32>
    %147 = tpu.matmul %144, %146, %cst_86 {dimension_numbers = #tpu.dot_dimension_numbers<[1], [0], [0], [1], [0, 0, 1, 1], [], []>} : vector<20x42xf32>, vector<42x32xf32>, vector<20x32xf32> -> vector<20x32xf32>
    %148 = arith.addf %101, %147 : vector<20x32xf32>
    %c0_87 = arith.constant 0 : index
    %c0_88 = arith.constant 0 : index
    %c0_89 = arith.constant 0 : index
    %149 = vector.load %arg20[%c0_87, %c0_88, %c0_89] : memref<4x1x32xf32, #tpu.memory_space<vmem>>, vector<1x1x32xf32>
    %150 = vector.shape_cast %149 : vector<1x1x32xf32> to vector<1x32xf32>
    %151 = vector.broadcast %150 : vector<1x32xf32> to vector<20x32xf32>
    %152 = arith.addf %148, %151 : vector<20x32xf32>
    %c1_90 = arith.constant 1 : index
    %c0_91 = arith.constant 0 : index
    %c0_92 = arith.constant 0 : index
    %153 = vector.load %arg5[%c1_90, %c0_91, %c0_92] : memref<4x1x32xf32, #tpu.memory_space<vmem>>, vector<1x1x32xf32>
    %154 = vector.shape_cast %153 : vector<1x1x32xf32> to vector<1x32xf32>
    %c1_93 = arith.constant 1 : index
    %c0_94 = arith.constant 0 : index
    %c0_95 = arith.constant 0 : index
    %155 = vector.load %arg6[%c1_93, %c0_94, %c0_95] : memref<4x1x32xf32, #tpu.memory_space<vmem>>, vector<1x1x32xf32>
    %156 = vector.shape_cast %155 : vector<1x1x32xf32> to vector<1x32xf32>
    %cst_96 = arith.constant dense<0.000000e+00> : vector<20xf32>
    %157 = vector.multi_reduction <add>, %152, %cst_96 [1] : vector<20x32xf32> to vector<20xf32>
    %158 = vector.shape_cast %157 : vector<20xf32> to vector<20x1xf32>
    %cst_97 = arith.constant 3.200000e+01 : f32
    %159 = vector.broadcast %cst_97 : f32 to vector<20x1xf32>
    %160 = arith.divf %158, %159 : vector<20x1xf32>
    %161 = vector.broadcast %160 : vector<20x1xf32> to vector<20x32xf32>
    %162 = arith.subf %152, %161 : vector<20x32xf32>
    %163 = arith.mulf %162, %162 : vector<20x32xf32>
    %cst_98 = arith.constant dense<0.000000e+00> : vector<20xf32>
    %164 = vector.multi_reduction <add>, %163, %cst_98 [1] : vector<20x32xf32> to vector<20xf32>
    %165 = vector.shape_cast %164 : vector<20xf32> to vector<20x1xf32>
    %cst_99 = arith.constant 3.200000e+01 : f32
    %166 = vector.broadcast %cst_99 : f32 to vector<20x1xf32>
    %167 = arith.divf %165, %166 : vector<20x1xf32>
    %168 = vector.broadcast %160 : vector<20x1xf32> to vector<20x32xf32>
    %169 = arith.subf %152, %168 : vector<20x32xf32>
    %cst_100 = arith.constant 9.99999974E-6 : f32
    %170 = vector.broadcast %cst_100 : f32 to vector<20x1xf32>
    %171 = arith.addf %167, %170 : vector<20x1xf32>
    %172 = math.rsqrt %171 : vector<20x1xf32>
    %173 = vector.broadcast %172 : vector<20x1xf32> to vector<20x32xf32>
    %174 = arith.mulf %169, %173 : vector<20x32xf32>
    %175 = vector.broadcast %154 : vector<1x32xf32> to vector<20x32xf32>
    %176 = arith.mulf %174, %175 : vector<20x32xf32>
    %177 = vector.broadcast %156 : vector<1x32xf32> to vector<20x32xf32>
    %178 = arith.addf %176, %177 : vector<20x32xf32>
    %c1_101 = arith.constant 1 : index
    %c0_102 = arith.constant 0 : index
    %c0_103 = arith.constant 0 : index
    %179 = vector.load %arg7[%c1_101, %c0_102, %c0_103] : memref<4x32x32xf32, #tpu.memory_space<vmem>>, vector<1x32x32xf32>
    %180 = vector.shape_cast %179 : vector<1x32x32xf32> to vector<32x32xf32>
    %cst_104 = arith.constant dense<0.000000e+00> : vector<20x32xf32>
    %181 = tpu.matmul %178, %180, %cst_104 {dimension_numbers = #tpu.dot_dimension_numbers<[1], [0], [0], [1], [0, 0, 1, 1], [], []>} : vector<20x32xf32>, vector<32x32xf32>, vector<20x32xf32> -> vector<20x32xf32>
    %c1_105 = arith.constant 1 : index
    %c0_106 = arith.constant 0 : index
    %c0_107 = arith.constant 0 : index
    %182 = vector.load %arg8[%c1_105, %c0_106, %c0_107] : memref<4x32x32xf32, #tpu.memory_space<vmem>>, vector<1x32x32xf32>
    %183 = vector.shape_cast %182 : vector<1x32x32xf32> to vector<32x32xf32>
    %cst_108 = arith.constant dense<0.000000e+00> : vector<20x32xf32>
    %184 = tpu.matmul %178, %183, %cst_108 {dimension_numbers = #tpu.dot_dimension_numbers<[1], [0], [0], [1], [0, 0, 1, 1], [], []>} : vector<20x32xf32>, vector<32x32xf32>, vector<20x32xf32> -> vector<20x32xf32>
    %c1_109 = arith.constant 1 : index
    %c0_110 = arith.constant 0 : index
    %c0_111 = arith.constant 0 : index
    %185 = vector.load %arg9[%c1_109, %c0_110, %c0_111] : memref<4x32x32xf32, #tpu.memory_space<vmem>>, vector<1x32x32xf32>
    %186 = vector.shape_cast %185 : vector<1x32x32xf32> to vector<32x32xf32>
    %cst_112 = arith.constant dense<0.000000e+00> : vector<20x32xf32>
    %187 = tpu.matmul %178, %186, %cst_112 {dimension_numbers = #tpu.dot_dimension_numbers<[1], [0], [0], [1], [0, 0, 1, 1], [], []>} : vector<20x32xf32>, vector<32x32xf32>, vector<20x32xf32> -> vector<20x32xf32>
    %c1_113 = arith.constant 1 : index
    %c0_114 = arith.constant 0 : index
    %c0_115 = arith.constant 0 : index
    %188 = vector.load %arg10[%c1_113, %c0_114, %c0_115] : memref<4x8x20xf32, #tpu.memory_space<vmem>>, vector<1x8x20xf32>
    %189 = vector.shape_cast %188 : vector<1x8x20xf32> to vector<8x20xf32>
    %cst_116 = arith.constant dense<0.000000e+00> : vector<8x32xf32>
    %190 = tpu.matmul %189, %184, %cst_116 {dimension_numbers = #tpu.dot_dimension_numbers<[1], [0], [0], [1], [0, 0, 1, 1], [], []>} : vector<8x20xf32>, vector<20x32xf32>, vector<8x32xf32> -> vector<8x32xf32>
    %c1_117 = arith.constant 1 : index
    %c0_118 = arith.constant 0 : index
    %c0_119 = arith.constant 0 : index
    %191 = vector.load %arg11[%c1_117, %c0_118, %c0_119] : memref<4x8x20xf32, #tpu.memory_space<vmem>>, vector<1x8x20xf32>
    %192 = vector.shape_cast %191 : vector<1x8x20xf32> to vector<8x20xf32>
    %cst_120 = arith.constant dense<0.000000e+00> : vector<8x32xf32>
    %193 = tpu.matmul %192, %187, %cst_120 {dimension_numbers = #tpu.dot_dimension_numbers<[1], [0], [0], [1], [0, 0, 1, 1], [], []>} : vector<8x20xf32>, vector<20x32xf32>, vector<8x32xf32> -> vector<8x32xf32>
    %cst_121 = arith.constant dense<0.000000e+00> : vector<20x32xf32>
    %194 = tpu.matmul %50, %190, %cst_121 {dimension_numbers = #tpu.dot_dimension_numbers<[1], [0], [0], [1], [0, 0, 1, 1], [], []>} : vector<20x8xf32>, vector<8x32xf32>, vector<20x32xf32> -> vector<20x32xf32>
    %cst_122 = arith.constant dense<0.000000e+00> : vector<20x32xf32>
    %195 = tpu.matmul %50, %193, %cst_122 {dimension_numbers = #tpu.dot_dimension_numbers<[1], [0], [0], [1], [0, 0, 1, 1], [], []>} : vector<20x8xf32>, vector<8x32xf32>, vector<20x32xf32> -> vector<20x32xf32>
    %196 = arith.mulf %181, %194 : vector<20x32xf32>
    %cst_123 = arith.constant dense<0.000000e+00> : vector<20x8xf32>
    %197 = tpu.matmul %196, %48, %cst_123 {dimension_numbers = #tpu.dot_dimension_numbers<[1], [0], [0], [1], [0, 0, 1, 1], [], []>} : vector<20x32xf32>, vector<32x8xf32>, vector<20x8xf32> -> vector<20x8xf32>
    %cst_124 = arith.constant 5.000000e-01 : f32
    %198 = vector.broadcast %cst_124 : f32 to vector<20x8xf32>
    %199 = arith.mulf %197, %198 : vector<20x8xf32>
    %cst_125 = arith.constant dense<0.000000e+00> : vector<20x32xf32>
    %200 = tpu.matmul %52, %190, %cst_125 {dimension_numbers = #tpu.dot_dimension_numbers<[1], [0], [0], [1], [0, 0, 1, 1], [], []>} : vector<20x8xf32>, vector<8x32xf32>, vector<20x32xf32> -> vector<20x32xf32>
    %cst_126 = arith.constant dense<0.000000e+00> : vector<20x32xf32>
    %201 = tpu.matmul %52, %193, %cst_126 {dimension_numbers = #tpu.dot_dimension_numbers<[1], [0], [0], [1], [0, 0, 1, 1], [], []>} : vector<20x8xf32>, vector<8x32xf32>, vector<20x32xf32> -> vector<20x32xf32>
    %202 = arith.mulf %181, %200 : vector<20x32xf32>
    %cst_127 = arith.constant dense<0.000000e+00> : vector<20x8xf32>
    %203 = tpu.matmul %202, %48, %cst_127 {dimension_numbers = #tpu.dot_dimension_numbers<[1], [0], [0], [1], [0, 0, 1, 1], [], []>} : vector<20x32xf32>, vector<32x8xf32>, vector<20x8xf32> -> vector<20x8xf32>
    %cst_128 = arith.constant 5.000000e-01 : f32
    %204 = vector.broadcast %cst_128 : f32 to vector<20x8xf32>
    %205 = arith.mulf %203, %204 : vector<20x8xf32>
    %206 = arith.maximumf %199, %205 : vector<20x8xf32>
    %207 = arith.subf %199, %206 : vector<20x8xf32>
    %208 = math.exp %207 : vector<20x8xf32>
    %209 = arith.subf %205, %206 : vector<20x8xf32>
    %210 = math.exp %209 : vector<20x8xf32>
    %211 = arith.addf %208, %210 : vector<20x8xf32>
    %212 = tpu.reciprocal %211 {approx = true} : vector<20x8xf32> -> vector<20x8xf32>
    %213 = arith.mulf %211, %212 : vector<20x8xf32>
    %cst_129 = arith.constant 2.000000e+00 : f32
    %214 = vector.broadcast %cst_129 : f32 to vector<20x8xf32>
    %215 = arith.subf %214, %213 : vector<20x8xf32>
    %216 = arith.mulf %212, %215 : vector<20x8xf32>
    %217 = arith.mulf %208, %216 : vector<20x8xf32>
    %cst_130 = arith.constant dense<0.000000e+00> : vector<20x32xf32>
    %218 = tpu.matmul %217, %48, %cst_130 {dimension_numbers = #tpu.dot_dimension_numbers<[1], [1], [0], [0], [0, 0, 1, 0], [], []>} : vector<20x8xf32>, vector<32x8xf32>, vector<20x32xf32> -> vector<20x32xf32>
    %219 = arith.mulf %218, %195 : vector<20x32xf32>
    %220 = arith.mulf %210, %216 : vector<20x8xf32>
    %cst_131 = arith.constant dense<0.000000e+00> : vector<20x32xf32>
    %221 = tpu.matmul %220, %48, %cst_131 {dimension_numbers = #tpu.dot_dimension_numbers<[1], [1], [0], [0], [0, 0, 1, 0], [], []>} : vector<20x8xf32>, vector<32x8xf32>, vector<20x32xf32> -> vector<20x32xf32>
    %222 = arith.mulf %221, %201 : vector<20x32xf32>
    %223 = arith.addf %219, %222 : vector<20x32xf32>
    %c1_132 = arith.constant 1 : index
    %c0_133 = arith.constant 0 : index
    %c0_134 = arith.constant 0 : index
    %224 = vector.load %arg12[%c1_132, %c0_133, %c0_134] : memref<4x32x32xf32, #tpu.memory_space<vmem>>, vector<1x32x32xf32>
    %225 = vector.shape_cast %224 : vector<1x32x32xf32> to vector<32x32xf32>
    %cst_135 = arith.constant dense<0.000000e+00> : vector<20x32xf32>
    %226 = tpu.matmul %223, %225, %cst_135 {dimension_numbers = #tpu.dot_dimension_numbers<[1], [0], [0], [1], [0, 0, 1, 1], [], []>} : vector<20x32xf32>, vector<32x32xf32>, vector<20x32xf32> -> vector<20x32xf32>
    %227 = arith.addf %152, %226 : vector<20x32xf32>
    %c1_136 = arith.constant 1 : index
    %c0_137 = arith.constant 0 : index
    %c0_138 = arith.constant 0 : index
    %228 = vector.load %arg13[%c1_136, %c0_137, %c0_138] : memref<4x1x32xf32, #tpu.memory_space<vmem>>, vector<1x1x32xf32>
    %229 = vector.shape_cast %228 : vector<1x1x32xf32> to vector<1x32xf32>
    %c1_139 = arith.constant 1 : index
    %c0_140 = arith.constant 0 : index
    %c0_141 = arith.constant 0 : index
    %230 = vector.load %arg14[%c1_139, %c0_140, %c0_141] : memref<4x1x32xf32, #tpu.memory_space<vmem>>, vector<1x1x32xf32>
    %231 = vector.shape_cast %230 : vector<1x1x32xf32> to vector<1x32xf32>
    %cst_142 = arith.constant dense<0.000000e+00> : vector<20xf32>
    %232 = vector.multi_reduction <add>, %227, %cst_142 [1] : vector<20x32xf32> to vector<20xf32>
    %233 = vector.shape_cast %232 : vector<20xf32> to vector<20x1xf32>
    %cst_143 = arith.constant 3.200000e+01 : f32
    %234 = vector.broadcast %cst_143 : f32 to vector<20x1xf32>
    %235 = arith.divf %233, %234 : vector<20x1xf32>
    %236 = vector.broadcast %235 : vector<20x1xf32> to vector<20x32xf32>
    %237 = arith.subf %227, %236 : vector<20x32xf32>
    %238 = arith.mulf %237, %237 : vector<20x32xf32>
    %cst_144 = arith.constant dense<0.000000e+00> : vector<20xf32>
    %239 = vector.multi_reduction <add>, %238, %cst_144 [1] : vector<20x32xf32> to vector<20xf32>
    %240 = vector.shape_cast %239 : vector<20xf32> to vector<20x1xf32>
    %cst_145 = arith.constant 3.200000e+01 : f32
    %241 = vector.broadcast %cst_145 : f32 to vector<20x1xf32>
    %242 = arith.divf %240, %241 : vector<20x1xf32>
    %243 = vector.broadcast %235 : vector<20x1xf32> to vector<20x32xf32>
    %244 = arith.subf %227, %243 : vector<20x32xf32>
    %cst_146 = arith.constant 9.99999974E-6 : f32
    %245 = vector.broadcast %cst_146 : f32 to vector<20x1xf32>
    %246 = arith.addf %242, %245 : vector<20x1xf32>
    %247 = math.rsqrt %246 : vector<20x1xf32>
    %248 = vector.broadcast %247 : vector<20x1xf32> to vector<20x32xf32>
    %249 = arith.mulf %244, %248 : vector<20x32xf32>
    %250 = vector.broadcast %229 : vector<1x32xf32> to vector<20x32xf32>
    %251 = arith.mulf %249, %250 : vector<20x32xf32>
    %252 = vector.broadcast %231 : vector<1x32xf32> to vector<20x32xf32>
    %253 = arith.addf %251, %252 : vector<20x32xf32>
    %c1_147 = arith.constant 1 : index
    %c0_148 = arith.constant 0 : index
    %c0_149 = arith.constant 0 : index
    %254 = vector.load %arg15[%c1_147, %c0_148, %c0_149] : memref<4x32x42xf32, #tpu.memory_space<vmem>>, vector<1x32x42xf32>
    %255 = vector.shape_cast %254 : vector<1x32x42xf32> to vector<32x42xf32>
    %cst_150 = arith.constant dense<0.000000e+00> : vector<20x42xf32>
    %256 = tpu.matmul %253, %255, %cst_150 {dimension_numbers = #tpu.dot_dimension_numbers<[1], [0], [0], [1], [0, 0, 1, 1], [], []>} : vector<20x32xf32>, vector<32x42xf32>, vector<20x42xf32> -> vector<20x42xf32>
    %c1_151 = arith.constant 1 : index
    %c0_152 = arith.constant 0 : index
    %c0_153 = arith.constant 0 : index
    %257 = vector.load %arg16[%c1_151, %c0_152, %c0_153] : memref<4x1x42xf32, #tpu.memory_space<vmem>>, vector<1x1x42xf32>
    %258 = vector.shape_cast %257 : vector<1x1x42xf32> to vector<1x42xf32>
    %259 = vector.broadcast %258 : vector<1x42xf32> to vector<20x42xf32>
    %260 = arith.addf %256, %259 : vector<20x42xf32>
    %c1_154 = arith.constant 1 : index
    %c0_155 = arith.constant 0 : index
    %c0_156 = arith.constant 0 : index
    %261 = vector.load %arg17[%c1_154, %c0_155, %c0_156] : memref<4x32x42xf32, #tpu.memory_space<vmem>>, vector<1x32x42xf32>
    %262 = vector.shape_cast %261 : vector<1x32x42xf32> to vector<32x42xf32>
    %cst_157 = arith.constant dense<0.000000e+00> : vector<20x42xf32>
    %263 = tpu.matmul %253, %262, %cst_157 {dimension_numbers = #tpu.dot_dimension_numbers<[1], [0], [0], [1], [0, 0, 1, 1], [], []>} : vector<20x32xf32>, vector<32x42xf32>, vector<20x42xf32> -> vector<20x42xf32>
    %c1_158 = arith.constant 1 : index
    %c0_159 = arith.constant 0 : index
    %c0_160 = arith.constant 0 : index
    %264 = vector.load %arg18[%c1_158, %c0_159, %c0_160] : memref<4x1x42xf32, #tpu.memory_space<vmem>>, vector<1x1x42xf32>
    %265 = vector.shape_cast %264 : vector<1x1x42xf32> to vector<1x42xf32>
    %266 = vector.broadcast %265 : vector<1x42xf32> to vector<20x42xf32>
    %267 = arith.addf %263, %266 : vector<20x42xf32>
    %cst_161 = arith.constant 0.000000e+00 : f32
    %268 = vector.broadcast %cst_161 : f32 to vector<20x42xf32>
    %269 = arith.maximumf %267, %268 : vector<20x42xf32>
    %270 = arith.mulf %260, %269 : vector<20x42xf32>
    %c1_162 = arith.constant 1 : index
    %c0_163 = arith.constant 0 : index
    %c0_164 = arith.constant 0 : index
    %271 = vector.load %arg19[%c1_162, %c0_163, %c0_164] : memref<4x42x32xf32, #tpu.memory_space<vmem>>, vector<1x42x32xf32>
    %272 = vector.shape_cast %271 : vector<1x42x32xf32> to vector<42x32xf32>
    %cst_165 = arith.constant dense<0.000000e+00> : vector<20x32xf32>
    %273 = tpu.matmul %270, %272, %cst_165 {dimension_numbers = #tpu.dot_dimension_numbers<[1], [0], [0], [1], [0, 0, 1, 1], [], []>} : vector<20x42xf32>, vector<42x32xf32>, vector<20x32xf32> -> vector<20x32xf32>
    %274 = arith.addf %227, %273 : vector<20x32xf32>
    %c1_166 = arith.constant 1 : index
    %c0_167 = arith.constant 0 : index
    %c0_168 = arith.constant 0 : index
    %275 = vector.load %arg20[%c1_166, %c0_167, %c0_168] : memref<4x1x32xf32, #tpu.memory_space<vmem>>, vector<1x1x32xf32>
    %276 = vector.shape_cast %275 : vector<1x1x32xf32> to vector<1x32xf32>
    %277 = vector.broadcast %276 : vector<1x32xf32> to vector<20x32xf32>
    %278 = arith.addf %274, %277 : vector<20x32xf32>
    %c2 = arith.constant 2 : index
    %c0_169 = arith.constant 0 : index
    %c0_170 = arith.constant 0 : index
    %279 = vector.load %arg5[%c2, %c0_169, %c0_170] : memref<4x1x32xf32, #tpu.memory_space<vmem>>, vector<1x1x32xf32>
    %280 = vector.shape_cast %279 : vector<1x1x32xf32> to vector<1x32xf32>
    %c2_171 = arith.constant 2 : index
    %c0_172 = arith.constant 0 : index
    %c0_173 = arith.constant 0 : index
    %281 = vector.load %arg6[%c2_171, %c0_172, %c0_173] : memref<4x1x32xf32, #tpu.memory_space<vmem>>, vector<1x1x32xf32>
    %282 = vector.shape_cast %281 : vector<1x1x32xf32> to vector<1x32xf32>
    %cst_174 = arith.constant dense<0.000000e+00> : vector<20xf32>
    %283 = vector.multi_reduction <add>, %278, %cst_174 [1] : vector<20x32xf32> to vector<20xf32>
    %284 = vector.shape_cast %283 : vector<20xf32> to vector<20x1xf32>
    %cst_175 = arith.constant 3.200000e+01 : f32
    %285 = vector.broadcast %cst_175 : f32 to vector<20x1xf32>
    %286 = arith.divf %284, %285 : vector<20x1xf32>
    %287 = vector.broadcast %286 : vector<20x1xf32> to vector<20x32xf32>
    %288 = arith.subf %278, %287 : vector<20x32xf32>
    %289 = arith.mulf %288, %288 : vector<20x32xf32>
    %cst_176 = arith.constant dense<0.000000e+00> : vector<20xf32>
    %290 = vector.multi_reduction <add>, %289, %cst_176 [1] : vector<20x32xf32> to vector<20xf32>
    %291 = vector.shape_cast %290 : vector<20xf32> to vector<20x1xf32>
    %cst_177 = arith.constant 3.200000e+01 : f32
    %292 = vector.broadcast %cst_177 : f32 to vector<20x1xf32>
    %293 = arith.divf %291, %292 : vector<20x1xf32>
    %294 = vector.broadcast %286 : vector<20x1xf32> to vector<20x32xf32>
    %295 = arith.subf %278, %294 : vector<20x32xf32>
    %cst_178 = arith.constant 9.99999974E-6 : f32
    %296 = vector.broadcast %cst_178 : f32 to vector<20x1xf32>
    %297 = arith.addf %293, %296 : vector<20x1xf32>
    %298 = math.rsqrt %297 : vector<20x1xf32>
    %299 = vector.broadcast %298 : vector<20x1xf32> to vector<20x32xf32>
    %300 = arith.mulf %295, %299 : vector<20x32xf32>
    %301 = vector.broadcast %280 : vector<1x32xf32> to vector<20x32xf32>
    %302 = arith.mulf %300, %301 : vector<20x32xf32>
    %303 = vector.broadcast %282 : vector<1x32xf32> to vector<20x32xf32>
    %304 = arith.addf %302, %303 : vector<20x32xf32>
    %c2_179 = arith.constant 2 : index
    %c0_180 = arith.constant 0 : index
    %c0_181 = arith.constant 0 : index
    %305 = vector.load %arg7[%c2_179, %c0_180, %c0_181] : memref<4x32x32xf32, #tpu.memory_space<vmem>>, vector<1x32x32xf32>
    %306 = vector.shape_cast %305 : vector<1x32x32xf32> to vector<32x32xf32>
    %cst_182 = arith.constant dense<0.000000e+00> : vector<20x32xf32>
    %307 = tpu.matmul %304, %306, %cst_182 {dimension_numbers = #tpu.dot_dimension_numbers<[1], [0], [0], [1], [0, 0, 1, 1], [], []>} : vector<20x32xf32>, vector<32x32xf32>, vector<20x32xf32> -> vector<20x32xf32>
    %c2_183 = arith.constant 2 : index
    %c0_184 = arith.constant 0 : index
    %c0_185 = arith.constant 0 : index
    %308 = vector.load %arg8[%c2_183, %c0_184, %c0_185] : memref<4x32x32xf32, #tpu.memory_space<vmem>>, vector<1x32x32xf32>
    %309 = vector.shape_cast %308 : vector<1x32x32xf32> to vector<32x32xf32>
    %cst_186 = arith.constant dense<0.000000e+00> : vector<20x32xf32>
    %310 = tpu.matmul %304, %309, %cst_186 {dimension_numbers = #tpu.dot_dimension_numbers<[1], [0], [0], [1], [0, 0, 1, 1], [], []>} : vector<20x32xf32>, vector<32x32xf32>, vector<20x32xf32> -> vector<20x32xf32>
    %c2_187 = arith.constant 2 : index
    %c0_188 = arith.constant 0 : index
    %c0_189 = arith.constant 0 : index
    %311 = vector.load %arg9[%c2_187, %c0_188, %c0_189] : memref<4x32x32xf32, #tpu.memory_space<vmem>>, vector<1x32x32xf32>
    %312 = vector.shape_cast %311 : vector<1x32x32xf32> to vector<32x32xf32>
    %cst_190 = arith.constant dense<0.000000e+00> : vector<20x32xf32>
    %313 = tpu.matmul %304, %312, %cst_190 {dimension_numbers = #tpu.dot_dimension_numbers<[1], [0], [0], [1], [0, 0, 1, 1], [], []>} : vector<20x32xf32>, vector<32x32xf32>, vector<20x32xf32> -> vector<20x32xf32>
    %c2_191 = arith.constant 2 : index
    %c0_192 = arith.constant 0 : index
    %c0_193 = arith.constant 0 : index
    %314 = vector.load %arg10[%c2_191, %c0_192, %c0_193] : memref<4x8x20xf32, #tpu.memory_space<vmem>>, vector<1x8x20xf32>
    %315 = vector.shape_cast %314 : vector<1x8x20xf32> to vector<8x20xf32>
    %cst_194 = arith.constant dense<0.000000e+00> : vector<8x32xf32>
    %316 = tpu.matmul %315, %310, %cst_194 {dimension_numbers = #tpu.dot_dimension_numbers<[1], [0], [0], [1], [0, 0, 1, 1], [], []>} : vector<8x20xf32>, vector<20x32xf32>, vector<8x32xf32> -> vector<8x32xf32>
    %c2_195 = arith.constant 2 : index
    %c0_196 = arith.constant 0 : index
    %c0_197 = arith.constant 0 : index
    %317 = vector.load %arg11[%c2_195, %c0_196, %c0_197] : memref<4x8x20xf32, #tpu.memory_space<vmem>>, vector<1x8x20xf32>
    %318 = vector.shape_cast %317 : vector<1x8x20xf32> to vector<8x20xf32>
    %cst_198 = arith.constant dense<0.000000e+00> : vector<8x32xf32>
    %319 = tpu.matmul %318, %313, %cst_198 {dimension_numbers = #tpu.dot_dimension_numbers<[1], [0], [0], [1], [0, 0, 1, 1], [], []>} : vector<8x20xf32>, vector<20x32xf32>, vector<8x32xf32> -> vector<8x32xf32>
    %cst_199 = arith.constant dense<0.000000e+00> : vector<20x32xf32>
    %320 = tpu.matmul %50, %316, %cst_199 {dimension_numbers = #tpu.dot_dimension_numbers<[1], [0], [0], [1], [0, 0, 1, 1], [], []>} : vector<20x8xf32>, vector<8x32xf32>, vector<20x32xf32> -> vector<20x32xf32>
    %cst_200 = arith.constant dense<0.000000e+00> : vector<20x32xf32>
    %321 = tpu.matmul %50, %319, %cst_200 {dimension_numbers = #tpu.dot_dimension_numbers<[1], [0], [0], [1], [0, 0, 1, 1], [], []>} : vector<20x8xf32>, vector<8x32xf32>, vector<20x32xf32> -> vector<20x32xf32>
    %322 = arith.mulf %307, %320 : vector<20x32xf32>
    %cst_201 = arith.constant dense<0.000000e+00> : vector<20x8xf32>
    %323 = tpu.matmul %322, %48, %cst_201 {dimension_numbers = #tpu.dot_dimension_numbers<[1], [0], [0], [1], [0, 0, 1, 1], [], []>} : vector<20x32xf32>, vector<32x8xf32>, vector<20x8xf32> -> vector<20x8xf32>
    %cst_202 = arith.constant 5.000000e-01 : f32
    %324 = vector.broadcast %cst_202 : f32 to vector<20x8xf32>
    %325 = arith.mulf %323, %324 : vector<20x8xf32>
    %cst_203 = arith.constant dense<0.000000e+00> : vector<20x32xf32>
    %326 = tpu.matmul %52, %316, %cst_203 {dimension_numbers = #tpu.dot_dimension_numbers<[1], [0], [0], [1], [0, 0, 1, 1], [], []>} : vector<20x8xf32>, vector<8x32xf32>, vector<20x32xf32> -> vector<20x32xf32>
    %cst_204 = arith.constant dense<0.000000e+00> : vector<20x32xf32>
    %327 = tpu.matmul %52, %319, %cst_204 {dimension_numbers = #tpu.dot_dimension_numbers<[1], [0], [0], [1], [0, 0, 1, 1], [], []>} : vector<20x8xf32>, vector<8x32xf32>, vector<20x32xf32> -> vector<20x32xf32>
    %328 = arith.mulf %307, %326 : vector<20x32xf32>
    %cst_205 = arith.constant dense<0.000000e+00> : vector<20x8xf32>
    %329 = tpu.matmul %328, %48, %cst_205 {dimension_numbers = #tpu.dot_dimension_numbers<[1], [0], [0], [1], [0, 0, 1, 1], [], []>} : vector<20x32xf32>, vector<32x8xf32>, vector<20x8xf32> -> vector<20x8xf32>
    %cst_206 = arith.constant 5.000000e-01 : f32
    %330 = vector.broadcast %cst_206 : f32 to vector<20x8xf32>
    %331 = arith.mulf %329, %330 : vector<20x8xf32>
    %332 = arith.maximumf %325, %331 : vector<20x8xf32>
    %333 = arith.subf %325, %332 : vector<20x8xf32>
    %334 = math.exp %333 : vector<20x8xf32>
    %335 = arith.subf %331, %332 : vector<20x8xf32>
    %336 = math.exp %335 : vector<20x8xf32>
    %337 = arith.addf %334, %336 : vector<20x8xf32>
    %338 = tpu.reciprocal %337 {approx = true} : vector<20x8xf32> -> vector<20x8xf32>
    %339 = arith.mulf %337, %338 : vector<20x8xf32>
    %cst_207 = arith.constant 2.000000e+00 : f32
    %340 = vector.broadcast %cst_207 : f32 to vector<20x8xf32>
    %341 = arith.subf %340, %339 : vector<20x8xf32>
    %342 = arith.mulf %338, %341 : vector<20x8xf32>
    %343 = arith.mulf %334, %342 : vector<20x8xf32>
    %cst_208 = arith.constant dense<0.000000e+00> : vector<20x32xf32>
    %344 = tpu.matmul %343, %48, %cst_208 {dimension_numbers = #tpu.dot_dimension_numbers<[1], [1], [0], [0], [0, 0, 1, 0], [], []>} : vector<20x8xf32>, vector<32x8xf32>, vector<20x32xf32> -> vector<20x32xf32>
    %345 = arith.mulf %344, %321 : vector<20x32xf32>
    %346 = arith.mulf %336, %342 : vector<20x8xf32>
    %cst_209 = arith.constant dense<0.000000e+00> : vector<20x32xf32>
    %347 = tpu.matmul %346, %48, %cst_209 {dimension_numbers = #tpu.dot_dimension_numbers<[1], [1], [0], [0], [0, 0, 1, 0], [], []>} : vector<20x8xf32>, vector<32x8xf32>, vector<20x32xf32> -> vector<20x32xf32>
    %348 = arith.mulf %347, %327 : vector<20x32xf32>
    %349 = arith.addf %345, %348 : vector<20x32xf32>
    %c2_210 = arith.constant 2 : index
    %c0_211 = arith.constant 0 : index
    %c0_212 = arith.constant 0 : index
    %350 = vector.load %arg12[%c2_210, %c0_211, %c0_212] : memref<4x32x32xf32, #tpu.memory_space<vmem>>, vector<1x32x32xf32>
    %351 = vector.shape_cast %350 : vector<1x32x32xf32> to vector<32x32xf32>
    %cst_213 = arith.constant dense<0.000000e+00> : vector<20x32xf32>
    %352 = tpu.matmul %349, %351, %cst_213 {dimension_numbers = #tpu.dot_dimension_numbers<[1], [0], [0], [1], [0, 0, 1, 1], [], []>} : vector<20x32xf32>, vector<32x32xf32>, vector<20x32xf32> -> vector<20x32xf32>
    %353 = arith.addf %278, %352 : vector<20x32xf32>
    %c2_214 = arith.constant 2 : index
    %c0_215 = arith.constant 0 : index
    %c0_216 = arith.constant 0 : index
    %354 = vector.load %arg13[%c2_214, %c0_215, %c0_216] : memref<4x1x32xf32, #tpu.memory_space<vmem>>, vector<1x1x32xf32>
    %355 = vector.shape_cast %354 : vector<1x1x32xf32> to vector<1x32xf32>
    %c2_217 = arith.constant 2 : index
    %c0_218 = arith.constant 0 : index
    %c0_219 = arith.constant 0 : index
    %356 = vector.load %arg14[%c2_217, %c0_218, %c0_219] : memref<4x1x32xf32, #tpu.memory_space<vmem>>, vector<1x1x32xf32>
    %357 = vector.shape_cast %356 : vector<1x1x32xf32> to vector<1x32xf32>
    %cst_220 = arith.constant dense<0.000000e+00> : vector<20xf32>
    %358 = vector.multi_reduction <add>, %353, %cst_220 [1] : vector<20x32xf32> to vector<20xf32>
    %359 = vector.shape_cast %358 : vector<20xf32> to vector<20x1xf32>
    %cst_221 = arith.constant 3.200000e+01 : f32
    %360 = vector.broadcast %cst_221 : f32 to vector<20x1xf32>
    %361 = arith.divf %359, %360 : vector<20x1xf32>
    %362 = vector.broadcast %361 : vector<20x1xf32> to vector<20x32xf32>
    %363 = arith.subf %353, %362 : vector<20x32xf32>
    %364 = arith.mulf %363, %363 : vector<20x32xf32>
    %cst_222 = arith.constant dense<0.000000e+00> : vector<20xf32>
    %365 = vector.multi_reduction <add>, %364, %cst_222 [1] : vector<20x32xf32> to vector<20xf32>
    %366 = vector.shape_cast %365 : vector<20xf32> to vector<20x1xf32>
    %cst_223 = arith.constant 3.200000e+01 : f32
    %367 = vector.broadcast %cst_223 : f32 to vector<20x1xf32>
    %368 = arith.divf %366, %367 : vector<20x1xf32>
    %369 = vector.broadcast %361 : vector<20x1xf32> to vector<20x32xf32>
    %370 = arith.subf %353, %369 : vector<20x32xf32>
    %cst_224 = arith.constant 9.99999974E-6 : f32
    %371 = vector.broadcast %cst_224 : f32 to vector<20x1xf32>
    %372 = arith.addf %368, %371 : vector<20x1xf32>
    %373 = math.rsqrt %372 : vector<20x1xf32>
    %374 = vector.broadcast %373 : vector<20x1xf32> to vector<20x32xf32>
    %375 = arith.mulf %370, %374 : vector<20x32xf32>
    %376 = vector.broadcast %355 : vector<1x32xf32> to vector<20x32xf32>
    %377 = arith.mulf %375, %376 : vector<20x32xf32>
    %378 = vector.broadcast %357 : vector<1x32xf32> to vector<20x32xf32>
    %379 = arith.addf %377, %378 : vector<20x32xf32>
    %c2_225 = arith.constant 2 : index
    %c0_226 = arith.constant 0 : index
    %c0_227 = arith.constant 0 : index
    %380 = vector.load %arg15[%c2_225, %c0_226, %c0_227] : memref<4x32x42xf32, #tpu.memory_space<vmem>>, vector<1x32x42xf32>
    %381 = vector.shape_cast %380 : vector<1x32x42xf32> to vector<32x42xf32>
    %cst_228 = arith.constant dense<0.000000e+00> : vector<20x42xf32>
    %382 = tpu.matmul %379, %381, %cst_228 {dimension_numbers = #tpu.dot_dimension_numbers<[1], [0], [0], [1], [0, 0, 1, 1], [], []>} : vector<20x32xf32>, vector<32x42xf32>, vector<20x42xf32> -> vector<20x42xf32>
    %c2_229 = arith.constant 2 : index
    %c0_230 = arith.constant 0 : index
    %c0_231 = arith.constant 0 : index
    %383 = vector.load %arg16[%c2_229, %c0_230, %c0_231] : memref<4x1x42xf32, #tpu.memory_space<vmem>>, vector<1x1x42xf32>
    %384 = vector.shape_cast %383 : vector<1x1x42xf32> to vector<1x42xf32>
    %385 = vector.broadcast %384 : vector<1x42xf32> to vector<20x42xf32>
    %386 = arith.addf %382, %385 : vector<20x42xf32>
    %c2_232 = arith.constant 2 : index
    %c0_233 = arith.constant 0 : index
    %c0_234 = arith.constant 0 : index
    %387 = vector.load %arg17[%c2_232, %c0_233, %c0_234] : memref<4x32x42xf32, #tpu.memory_space<vmem>>, vector<1x32x42xf32>
    %388 = vector.shape_cast %387 : vector<1x32x42xf32> to vector<32x42xf32>
    %cst_235 = arith.constant dense<0.000000e+00> : vector<20x42xf32>
    %389 = tpu.matmul %379, %388, %cst_235 {dimension_numbers = #tpu.dot_dimension_numbers<[1], [0], [0], [1], [0, 0, 1, 1], [], []>} : vector<20x32xf32>, vector<32x42xf32>, vector<20x42xf32> -> vector<20x42xf32>
    %c2_236 = arith.constant 2 : index
    %c0_237 = arith.constant 0 : index
    %c0_238 = arith.constant 0 : index
    %390 = vector.load %arg18[%c2_236, %c0_237, %c0_238] : memref<4x1x42xf32, #tpu.memory_space<vmem>>, vector<1x1x42xf32>
    %391 = vector.shape_cast %390 : vector<1x1x42xf32> to vector<1x42xf32>
    %392 = vector.broadcast %391 : vector<1x42xf32> to vector<20x42xf32>
    %393 = arith.addf %389, %392 : vector<20x42xf32>
    %cst_239 = arith.constant 0.000000e+00 : f32
    %394 = vector.broadcast %cst_239 : f32 to vector<20x42xf32>
    %395 = arith.maximumf %393, %394 : vector<20x42xf32>
    %396 = arith.mulf %386, %395 : vector<20x42xf32>
    %c2_240 = arith.constant 2 : index
    %c0_241 = arith.constant 0 : index
    %c0_242 = arith.constant 0 : index
    %397 = vector.load %arg19[%c2_240, %c0_241, %c0_242] : memref<4x42x32xf32, #tpu.memory_space<vmem>>, vector<1x42x32xf32>
    %398 = vector.shape_cast %397 : vector<1x42x32xf32> to vector<42x32xf32>
    %cst_243 = arith.constant dense<0.000000e+00> : vector<20x32xf32>
    %399 = tpu.matmul %396, %398, %cst_243 {dimension_numbers = #tpu.dot_dimension_numbers<[1], [0], [0], [1], [0, 0, 1, 1], [], []>} : vector<20x42xf32>, vector<42x32xf32>, vector<20x32xf32> -> vector<20x32xf32>
    %400 = arith.addf %353, %399 : vector<20x32xf32>
    %c2_244 = arith.constant 2 : index
    %c0_245 = arith.constant 0 : index
    %c0_246 = arith.constant 0 : index
    %401 = vector.load %arg20[%c2_244, %c0_245, %c0_246] : memref<4x1x32xf32, #tpu.memory_space<vmem>>, vector<1x1x32xf32>
    %402 = vector.shape_cast %401 : vector<1x1x32xf32> to vector<1x32xf32>
    %403 = vector.broadcast %402 : vector<1x32xf32> to vector<20x32xf32>
    %404 = arith.addf %400, %403 : vector<20x32xf32>
    %c3 = arith.constant 3 : index
    %c0_247 = arith.constant 0 : index
    %c0_248 = arith.constant 0 : index
    %405 = vector.load %arg5[%c3, %c0_247, %c0_248] : memref<4x1x32xf32, #tpu.memory_space<vmem>>, vector<1x1x32xf32>
    %406 = vector.shape_cast %405 : vector<1x1x32xf32> to vector<1x32xf32>
    %c3_249 = arith.constant 3 : index
    %c0_250 = arith.constant 0 : index
    %c0_251 = arith.constant 0 : index
    %407 = vector.load %arg6[%c3_249, %c0_250, %c0_251] : memref<4x1x32xf32, #tpu.memory_space<vmem>>, vector<1x1x32xf32>
    %408 = vector.shape_cast %407 : vector<1x1x32xf32> to vector<1x32xf32>
    %cst_252 = arith.constant dense<0.000000e+00> : vector<20xf32>
    %409 = vector.multi_reduction <add>, %404, %cst_252 [1] : vector<20x32xf32> to vector<20xf32>
    %410 = vector.shape_cast %409 : vector<20xf32> to vector<20x1xf32>
    %cst_253 = arith.constant 3.200000e+01 : f32
    %411 = vector.broadcast %cst_253 : f32 to vector<20x1xf32>
    %412 = arith.divf %410, %411 : vector<20x1xf32>
    %413 = vector.broadcast %412 : vector<20x1xf32> to vector<20x32xf32>
    %414 = arith.subf %404, %413 : vector<20x32xf32>
    %415 = arith.mulf %414, %414 : vector<20x32xf32>
    %cst_254 = arith.constant dense<0.000000e+00> : vector<20xf32>
    %416 = vector.multi_reduction <add>, %415, %cst_254 [1] : vector<20x32xf32> to vector<20xf32>
    %417 = vector.shape_cast %416 : vector<20xf32> to vector<20x1xf32>
    %cst_255 = arith.constant 3.200000e+01 : f32
    %418 = vector.broadcast %cst_255 : f32 to vector<20x1xf32>
    %419 = arith.divf %417, %418 : vector<20x1xf32>
    %420 = vector.broadcast %412 : vector<20x1xf32> to vector<20x32xf32>
    %421 = arith.subf %404, %420 : vector<20x32xf32>
    %cst_256 = arith.constant 9.99999974E-6 : f32
    %422 = vector.broadcast %cst_256 : f32 to vector<20x1xf32>
    %423 = arith.addf %419, %422 : vector<20x1xf32>
    %424 = math.rsqrt %423 : vector<20x1xf32>
    %425 = vector.broadcast %424 : vector<20x1xf32> to vector<20x32xf32>
    %426 = arith.mulf %421, %425 : vector<20x32xf32>
    %427 = vector.broadcast %406 : vector<1x32xf32> to vector<20x32xf32>
    %428 = arith.mulf %426, %427 : vector<20x32xf32>
    %429 = vector.broadcast %408 : vector<1x32xf32> to vector<20x32xf32>
    %430 = arith.addf %428, %429 : vector<20x32xf32>
    %c3_257 = arith.constant 3 : index
    %c0_258 = arith.constant 0 : index
    %c0_259 = arith.constant 0 : index
    %431 = vector.load %arg7[%c3_257, %c0_258, %c0_259] : memref<4x32x32xf32, #tpu.memory_space<vmem>>, vector<1x32x32xf32>
    %432 = vector.shape_cast %431 : vector<1x32x32xf32> to vector<32x32xf32>
    %cst_260 = arith.constant dense<0.000000e+00> : vector<20x32xf32>
    %433 = tpu.matmul %430, %432, %cst_260 {dimension_numbers = #tpu.dot_dimension_numbers<[1], [0], [0], [1], [0, 0, 1, 1], [], []>} : vector<20x32xf32>, vector<32x32xf32>, vector<20x32xf32> -> vector<20x32xf32>
    %c3_261 = arith.constant 3 : index
    %c0_262 = arith.constant 0 : index
    %c0_263 = arith.constant 0 : index
    %434 = vector.load %arg8[%c3_261, %c0_262, %c0_263] : memref<4x32x32xf32, #tpu.memory_space<vmem>>, vector<1x32x32xf32>
    %435 = vector.shape_cast %434 : vector<1x32x32xf32> to vector<32x32xf32>
    %cst_264 = arith.constant dense<0.000000e+00> : vector<20x32xf32>
    %436 = tpu.matmul %430, %435, %cst_264 {dimension_numbers = #tpu.dot_dimension_numbers<[1], [0], [0], [1], [0, 0, 1, 1], [], []>} : vector<20x32xf32>, vector<32x32xf32>, vector<20x32xf32> -> vector<20x32xf32>
    %c3_265 = arith.constant 3 : index
    %c0_266 = arith.constant 0 : index
    %c0_267 = arith.constant 0 : index
    %437 = vector.load %arg9[%c3_265, %c0_266, %c0_267] : memref<4x32x32xf32, #tpu.memory_space<vmem>>, vector<1x32x32xf32>
    %438 = vector.shape_cast %437 : vector<1x32x32xf32> to vector<32x32xf32>
    %cst_268 = arith.constant dense<0.000000e+00> : vector<20x32xf32>
    %439 = tpu.matmul %430, %438, %cst_268 {dimension_numbers = #tpu.dot_dimension_numbers<[1], [0], [0], [1], [0, 0, 1, 1], [], []>} : vector<20x32xf32>, vector<32x32xf32>, vector<20x32xf32> -> vector<20x32xf32>
    %c3_269 = arith.constant 3 : index
    %c0_270 = arith.constant 0 : index
    %c0_271 = arith.constant 0 : index
    %440 = vector.load %arg10[%c3_269, %c0_270, %c0_271] : memref<4x8x20xf32, #tpu.memory_space<vmem>>, vector<1x8x20xf32>
    %441 = vector.shape_cast %440 : vector<1x8x20xf32> to vector<8x20xf32>
    %cst_272 = arith.constant dense<0.000000e+00> : vector<8x32xf32>
    %442 = tpu.matmul %441, %436, %cst_272 {dimension_numbers = #tpu.dot_dimension_numbers<[1], [0], [0], [1], [0, 0, 1, 1], [], []>} : vector<8x20xf32>, vector<20x32xf32>, vector<8x32xf32> -> vector<8x32xf32>
    %c3_273 = arith.constant 3 : index
    %c0_274 = arith.constant 0 : index
    %c0_275 = arith.constant 0 : index
    %443 = vector.load %arg11[%c3_273, %c0_274, %c0_275] : memref<4x8x20xf32, #tpu.memory_space<vmem>>, vector<1x8x20xf32>
    %444 = vector.shape_cast %443 : vector<1x8x20xf32> to vector<8x20xf32>
    %cst_276 = arith.constant dense<0.000000e+00> : vector<8x32xf32>
    %445 = tpu.matmul %444, %439, %cst_276 {dimension_numbers = #tpu.dot_dimension_numbers<[1], [0], [0], [1], [0, 0, 1, 1], [], []>} : vector<8x20xf32>, vector<20x32xf32>, vector<8x32xf32> -> vector<8x32xf32>
    %cst_277 = arith.constant dense<0.000000e+00> : vector<20x32xf32>
    %446 = tpu.matmul %50, %442, %cst_277 {dimension_numbers = #tpu.dot_dimension_numbers<[1], [0], [0], [1], [0, 0, 1, 1], [], []>} : vector<20x8xf32>, vector<8x32xf32>, vector<20x32xf32> -> vector<20x32xf32>
    %cst_278 = arith.constant dense<0.000000e+00> : vector<20x32xf32>
    %447 = tpu.matmul %50, %445, %cst_278 {dimension_numbers = #tpu.dot_dimension_numbers<[1], [0], [0], [1], [0, 0, 1, 1], [], []>} : vector<20x8xf32>, vector<8x32xf32>, vector<20x32xf32> -> vector<20x32xf32>
    %448 = arith.mulf %433, %446 : vector<20x32xf32>
    %cst_279 = arith.constant dense<0.000000e+00> : vector<20x8xf32>
    %449 = tpu.matmul %448, %48, %cst_279 {dimension_numbers = #tpu.dot_dimension_numbers<[1], [0], [0], [1], [0, 0, 1, 1], [], []>} : vector<20x32xf32>, vector<32x8xf32>, vector<20x8xf32> -> vector<20x8xf32>
    %cst_280 = arith.constant 5.000000e-01 : f32
    %450 = vector.broadcast %cst_280 : f32 to vector<20x8xf32>
    %451 = arith.mulf %449, %450 : vector<20x8xf32>
    %cst_281 = arith.constant dense<0.000000e+00> : vector<20x32xf32>
    %452 = tpu.matmul %52, %442, %cst_281 {dimension_numbers = #tpu.dot_dimension_numbers<[1], [0], [0], [1], [0, 0, 1, 1], [], []>} : vector<20x8xf32>, vector<8x32xf32>, vector<20x32xf32> -> vector<20x32xf32>
    %cst_282 = arith.constant dense<0.000000e+00> : vector<20x32xf32>
    %453 = tpu.matmul %52, %445, %cst_282 {dimension_numbers = #tpu.dot_dimension_numbers<[1], [0], [0], [1], [0, 0, 1, 1], [], []>} : vector<20x8xf32>, vector<8x32xf32>, vector<20x32xf32> -> vector<20x32xf32>
    %454 = arith.mulf %433, %452 : vector<20x32xf32>
    %cst_283 = arith.constant dense<0.000000e+00> : vector<20x8xf32>
    %455 = tpu.matmul %454, %48, %cst_283 {dimension_numbers = #tpu.dot_dimension_numbers<[1], [0], [0], [1], [0, 0, 1, 1], [], []>} : vector<20x32xf32>, vector<32x8xf32>, vector<20x8xf32> -> vector<20x8xf32>
    %cst_284 = arith.constant 5.000000e-01 : f32
    %456 = vector.broadcast %cst_284 : f32 to vector<20x8xf32>
    %457 = arith.mulf %455, %456 : vector<20x8xf32>
    %458 = arith.maximumf %451, %457 : vector<20x8xf32>
    %459 = arith.subf %451, %458 : vector<20x8xf32>
    %460 = math.exp %459 : vector<20x8xf32>
    %461 = arith.subf %457, %458 : vector<20x8xf32>
    %462 = math.exp %461 : vector<20x8xf32>
    %463 = arith.addf %460, %462 : vector<20x8xf32>
    %464 = tpu.reciprocal %463 {approx = true} : vector<20x8xf32> -> vector<20x8xf32>
    %465 = arith.mulf %463, %464 : vector<20x8xf32>
    %cst_285 = arith.constant 2.000000e+00 : f32
    %466 = vector.broadcast %cst_285 : f32 to vector<20x8xf32>
    %467 = arith.subf %466, %465 : vector<20x8xf32>
    %468 = arith.mulf %464, %467 : vector<20x8xf32>
    %469 = arith.mulf %460, %468 : vector<20x8xf32>
    %cst_286 = arith.constant dense<0.000000e+00> : vector<20x32xf32>
    %470 = tpu.matmul %469, %48, %cst_286 {dimension_numbers = #tpu.dot_dimension_numbers<[1], [1], [0], [0], [0, 0, 1, 0], [], []>} : vector<20x8xf32>, vector<32x8xf32>, vector<20x32xf32> -> vector<20x32xf32>
    %471 = arith.mulf %470, %447 : vector<20x32xf32>
    %472 = arith.mulf %462, %468 : vector<20x8xf32>
    %cst_287 = arith.constant dense<0.000000e+00> : vector<20x32xf32>
    %473 = tpu.matmul %472, %48, %cst_287 {dimension_numbers = #tpu.dot_dimension_numbers<[1], [1], [0], [0], [0, 0, 1, 0], [], []>} : vector<20x8xf32>, vector<32x8xf32>, vector<20x32xf32> -> vector<20x32xf32>
    %474 = arith.mulf %473, %453 : vector<20x32xf32>
    %475 = arith.addf %471, %474 : vector<20x32xf32>
    %c3_288 = arith.constant 3 : index
    %c0_289 = arith.constant 0 : index
    %c0_290 = arith.constant 0 : index
    %476 = vector.load %arg12[%c3_288, %c0_289, %c0_290] : memref<4x32x32xf32, #tpu.memory_space<vmem>>, vector<1x32x32xf32>
    %477 = vector.shape_cast %476 : vector<1x32x32xf32> to vector<32x32xf32>
    %cst_291 = arith.constant dense<0.000000e+00> : vector<20x32xf32>
    %478 = tpu.matmul %475, %477, %cst_291 {dimension_numbers = #tpu.dot_dimension_numbers<[1], [0], [0], [1], [0, 0, 1, 1], [], []>} : vector<20x32xf32>, vector<32x32xf32>, vector<20x32xf32> -> vector<20x32xf32>
    %479 = arith.addf %404, %478 : vector<20x32xf32>
    %c3_292 = arith.constant 3 : index
    %c0_293 = arith.constant 0 : index
    %c0_294 = arith.constant 0 : index
    %480 = vector.load %arg13[%c3_292, %c0_293, %c0_294] : memref<4x1x32xf32, #tpu.memory_space<vmem>>, vector<1x1x32xf32>
    %481 = vector.shape_cast %480 : vector<1x1x32xf32> to vector<1x32xf32>
    %c3_295 = arith.constant 3 : index
    %c0_296 = arith.constant 0 : index
    %c0_297 = arith.constant 0 : index
    %482 = vector.load %arg14[%c3_295, %c0_296, %c0_297] : memref<4x1x32xf32, #tpu.memory_space<vmem>>, vector<1x1x32xf32>
    %483 = vector.shape_cast %482 : vector<1x1x32xf32> to vector<1x32xf32>
    %cst_298 = arith.constant dense<0.000000e+00> : vector<20xf32>
    %484 = vector.multi_reduction <add>, %479, %cst_298 [1] : vector<20x32xf32> to vector<20xf32>
    %485 = vector.shape_cast %484 : vector<20xf32> to vector<20x1xf32>
    %cst_299 = arith.constant 3.200000e+01 : f32
    %486 = vector.broadcast %cst_299 : f32 to vector<20x1xf32>
    %487 = arith.divf %485, %486 : vector<20x1xf32>
    %488 = vector.broadcast %487 : vector<20x1xf32> to vector<20x32xf32>
    %489 = arith.subf %479, %488 : vector<20x32xf32>
    %490 = arith.mulf %489, %489 : vector<20x32xf32>
    %cst_300 = arith.constant dense<0.000000e+00> : vector<20xf32>
    %491 = vector.multi_reduction <add>, %490, %cst_300 [1] : vector<20x32xf32> to vector<20xf32>
    %492 = vector.shape_cast %491 : vector<20xf32> to vector<20x1xf32>
    %cst_301 = arith.constant 3.200000e+01 : f32
    %493 = vector.broadcast %cst_301 : f32 to vector<20x1xf32>
    %494 = arith.divf %492, %493 : vector<20x1xf32>
    %495 = vector.broadcast %487 : vector<20x1xf32> to vector<20x32xf32>
    %496 = arith.subf %479, %495 : vector<20x32xf32>
    %cst_302 = arith.constant 9.99999974E-6 : f32
    %497 = vector.broadcast %cst_302 : f32 to vector<20x1xf32>
    %498 = arith.addf %494, %497 : vector<20x1xf32>
    %499 = math.rsqrt %498 : vector<20x1xf32>
    %500 = vector.broadcast %499 : vector<20x1xf32> to vector<20x32xf32>
    %501 = arith.mulf %496, %500 : vector<20x32xf32>
    %502 = vector.broadcast %481 : vector<1x32xf32> to vector<20x32xf32>
    %503 = arith.mulf %501, %502 : vector<20x32xf32>
    %504 = vector.broadcast %483 : vector<1x32xf32> to vector<20x32xf32>
    %505 = arith.addf %503, %504 : vector<20x32xf32>
    %c3_303 = arith.constant 3 : index
    %c0_304 = arith.constant 0 : index
    %c0_305 = arith.constant 0 : index
    %506 = vector.load %arg15[%c3_303, %c0_304, %c0_305] : memref<4x32x42xf32, #tpu.memory_space<vmem>>, vector<1x32x42xf32>
    %507 = vector.shape_cast %506 : vector<1x32x42xf32> to vector<32x42xf32>
    %cst_306 = arith.constant dense<0.000000e+00> : vector<20x42xf32>
    %508 = tpu.matmul %505, %507, %cst_306 {dimension_numbers = #tpu.dot_dimension_numbers<[1], [0], [0], [1], [0, 0, 1, 1], [], []>} : vector<20x32xf32>, vector<32x42xf32>, vector<20x42xf32> -> vector<20x42xf32>
    %c3_307 = arith.constant 3 : index
    %c0_308 = arith.constant 0 : index
    %c0_309 = arith.constant 0 : index
    %509 = vector.load %arg16[%c3_307, %c0_308, %c0_309] : memref<4x1x42xf32, #tpu.memory_space<vmem>>, vector<1x1x42xf32>
    %510 = vector.shape_cast %509 : vector<1x1x42xf32> to vector<1x42xf32>
    %511 = vector.broadcast %510 : vector<1x42xf32> to vector<20x42xf32>
    %512 = arith.addf %508, %511 : vector<20x42xf32>
    %c3_310 = arith.constant 3 : index
    %c0_311 = arith.constant 0 : index
    %c0_312 = arith.constant 0 : index
    %513 = vector.load %arg17[%c3_310, %c0_311, %c0_312] : memref<4x32x42xf32, #tpu.memory_space<vmem>>, vector<1x32x42xf32>
    %514 = vector.shape_cast %513 : vector<1x32x42xf32> to vector<32x42xf32>
    %cst_313 = arith.constant dense<0.000000e+00> : vector<20x42xf32>
    %515 = tpu.matmul %505, %514, %cst_313 {dimension_numbers = #tpu.dot_dimension_numbers<[1], [0], [0], [1], [0, 0, 1, 1], [], []>} : vector<20x32xf32>, vector<32x42xf32>, vector<20x42xf32> -> vector<20x42xf32>
    %c3_314 = arith.constant 3 : index
    %c0_315 = arith.constant 0 : index
    %c0_316 = arith.constant 0 : index
    %516 = vector.load %arg18[%c3_314, %c0_315, %c0_316] : memref<4x1x42xf32, #tpu.memory_space<vmem>>, vector<1x1x42xf32>
    %517 = vector.shape_cast %516 : vector<1x1x42xf32> to vector<1x42xf32>
    %518 = vector.broadcast %517 : vector<1x42xf32> to vector<20x42xf32>
    %519 = arith.addf %515, %518 : vector<20x42xf32>
    %cst_317 = arith.constant 0.000000e+00 : f32
    %520 = vector.broadcast %cst_317 : f32 to vector<20x42xf32>
    %521 = arith.maximumf %519, %520 : vector<20x42xf32>
    %522 = arith.mulf %512, %521 : vector<20x42xf32>
    %c3_318 = arith.constant 3 : index
    %c0_319 = arith.constant 0 : index
    %c0_320 = arith.constant 0 : index
    %523 = vector.load %arg19[%c3_318, %c0_319, %c0_320] : memref<4x42x32xf32, #tpu.memory_space<vmem>>, vector<1x42x32xf32>
    %524 = vector.shape_cast %523 : vector<1x42x32xf32> to vector<42x32xf32>
    %cst_321 = arith.constant dense<0.000000e+00> : vector<20x32xf32>
    %525 = tpu.matmul %522, %524, %cst_321 {dimension_numbers = #tpu.dot_dimension_numbers<[1], [0], [0], [1], [0, 0, 1, 1], [], []>} : vector<20x42xf32>, vector<42x32xf32>, vector<20x32xf32> -> vector<20x32xf32>
    %526 = arith.addf %479, %525 : vector<20x32xf32>
    %c3_322 = arith.constant 3 : index
    %c0_323 = arith.constant 0 : index
    %c0_324 = arith.constant 0 : index
    %527 = vector.load %arg20[%c3_322, %c0_323, %c0_324] : memref<4x1x32xf32, #tpu.memory_space<vmem>>, vector<1x1x32xf32>
    %528 = vector.shape_cast %527 : vector<1x1x32xf32> to vector<1x32xf32>
    %529 = vector.broadcast %528 : vector<1x32xf32> to vector<20x32xf32>
    %530 = arith.addf %526, %529 : vector<20x32xf32>
    %c0_325 = arith.constant 0 : index
    %c0_326 = arith.constant 0 : index
    %531 = vector.load %arg21[%c0_325, %c0_326] : memref<20x32xf32, #tpu.memory_space<vmem>>, vector<20x32xf32>
    tpu.vector_store %arg21[%c0_325, %c0_326], %530 {strides = array<i32>} : memref<20x32xf32, #tpu.memory_space<vmem>>, vector<20x32xf32>,
    return
  }
}

</mosaic_0001>

<bundles_post_ra>
// kernel: ft_transformer_forward.1
= control target key start
LH: loop header
LB: loop body
LE: loop exit
PB: predicated region body
PF: predicated region fallthrough
CT: control target
= control target key end

     0   :  { %s11551_s0 = inlined_call_operand.vmem [shape: f32[20,1], index: 0, kind: input, shape index: {}]   ;;  %s11552_s1 = inlined_call_operand.vmem [shape: s32[20,1], index: 1, kind: input, shape index: {}]   ;;  %s11553_s2 = inlined_call_operand.hbm [shape: f32[23,32], index: 2, kind: input, shape index: {}]   ;;  %s11554_s3 = inlined_call_operand.vmem [shape: f32[32,8], index: 3, kind: input, shape index: {}]   ;;  %s11555_s4 = inlined_call_operand.vmem [shape: f32[2,20,8], index: 4, kind: input, shape index: {}]   ;;  %s11556_s5 = inlined_call_operand.hbm [shape: f32[4,1,32], index: 5, kind: input, shape index: {}]   ;;  %s11557_s6 = inlined_call_operand.hbm [shape: f32[4,1,32], index: 6, kind: input, shape index: {}]   ;;  %s11558_s7 = inlined_call_operand.vmem [shape: f32[4,32,32], index: 7, kind: input, shape index: {}]   ;;  %s11559_s8 = inlined_call_operand.vmem [shape: f32[4,32,32], index: 8, kind: input, shape index: {}]   ;;  %s11560_s9 = inlined_call_operand.vmem [shape: f32[4,32,32], index: 9, kind: input, shape index: {}]   ;;  %s11561_s10 = inlined_call_operand.hbm [shape: f32[4,8,20], index: 10, kind: input, shape index: {}]   ;;  %s11562_s11 = inlined_call_operand.hbm [shape: f32[4,8,20], index: 11, kind: input, shape index: {}]   ;;  %s11563_s12 = inlined_call_operand.vmem [shape: f32[4,32,32], index: 12, kind: input, shape index: {}]   ;;  %s11564_s13 = inlined_call_operand.vmem [shape: f32[4,1,32], index: 13, kind: input, shape index: {}]   ;;  %s11565_s14 = inlined_call_operand.hbm [shape: f32[4,1,32], index: 14, kind: input, shape index: {}]   ;;  %s11566_s15 = inlined_call_operand.hbm [shape: f32[4,32,42], index: 15, kind: input, shape index: {}]   ;;  %s11567_s16 = inlined_call_operand.hbm [shape: f32[4,1,42], index: 16, kind: input, shape index: {}]   ;;  %s11568_s17 = inlined_call_operand.hbm [shape: f32[4,32,42], index: 17, kind: input, shape index: {}]   ;;  %s11569_s18 = inlined_call_operand.hbm [shape: f32[4,1,42], index: 18, kind: input, shape index: {}]   ;;  %s11570_s19 = inlined_call_operand.vmem [shape: f32[4,42,32], index: 19, kind: input, shape index: {}]   ;;  %s11571_s20 = inlined_call_operand.hbm [shape: f32[4,1,32], index: 20, kind: input, shape index: {}]   ;;  %s11572_s21 = inlined_call_operand.vmem [shape: f32[20,32], index: 21, kind: output, shape index: {}]  }
   0x1   :  { %11581 = sst [smem:[#allocation25_spill]] %s11551_s0 }
   0x2   :  { %11582 = sst [smem:[#allocation26_spill]] %s11552_s1 }
   0x3   :  { %11583 = sst [smem:[#allocation27_spill]] %s11553_s2 }
   0x4   :  { %11584 = sst [smem:[#allocation28_spill]] %s11554_s3 }
   0x5   :  { %11585 = sst [smem:[#allocation29_spill]] %s11555_s4 }
   0x6   :  { %11586 = sst [smem:[#allocation30_spill]] %s11556_s5 }
   0x7   :  { %11587 = sst [smem:[#allocation31_spill]] %s11570_s19 }
   0x8   :  { %11588 = sst [smem:[#allocation32_spill]] %s11572_s21 }
   0x9   :  { %26 = vsyncpa [#allocation3], 0 }
   0xa   :  { %27 = vsyncpa [#allocation5], 0 }
   0xb   :  { %28 = vsyncpa [#allocation8], 0 }
   0xc   :  { %29 = vsyncpa [#allocation11], 0 }
   0xd   :  { %30 = vsyncpa [#allocation14], 0 }
   0xe   :  { %31 = vsyncpa [#allocation17], 0  ;;  %s9716_s2 = smov [#allocation4]   ;;  %s11589_s3 = sld [smem:[#allocation30_spill]] }
   0xf   :  { %s57_s25 = sshll.u32 %s9716_s2, 4  ;;  %s58_s25 = int_to_ptr.vmem [resolvable:$true] %s57_s25 }
  0x14   :  { %s9462_s28 = scalar_lea.hbm %s11589_s3, 64 }
  0x15   :  { %p9463_p0 = scmp.ne.s32.totalorder %s11589_s3, %s9462_s28  ;;  %p9466_p1 = scmp.lt.u32.totalorder %s9462_s28, %s11589_s3 }
  0x17   :  { %p9468_p2 = pnand %p9466_p1, %p9463_p0 }
  0x19   :  { %9471 = shalt.err (!%p9468_p2)
}
  0x1a   :  { %s9472_s5 = scalar_lea.vmem %s58_s25, 64  ;;  %p9477_p4 = scmp.lt.s32.totalorder %s58_s25, %s58_s25 }
  0x1b   :  { %p9473_p3 = scmp.ne.s32.totalorder %s58_s25, %s9472_s5  ;;  %p9478_p5 = scmp.lt.s32.totalorder %s9472_s5, %s9472_s5 }
  0x1d   :  { %p9479_p6 = por %p9478_p5, %p9477_p4 }
  0x1f   :  { %p9480_p7 = pnand %p9479_p6, %p9473_p3 }
  0x21   :  { %9483 = shalt.err (!%p9480_p7)
}
  0x22   :  { %s9717_s22 = smov 16   ;;  %s9718_s23 = smov 1  }
  0x23   :  { %63 = dma.hbm_to_vmem [thread:$0]  %s11589_s3, 64, %s58_s25, [#allocation5], %s9717_s22, %s9717_s22, %s9718_s23  }
  0x24   :  { %s9719_s2 = smov [#allocation7]   ;;  %s9720_s27 = smov [#allocation10]  }
  0x25   :  { %s87_s26 = sshll.u32 %s9719_s2, 4  ;;  %s115_s28 = sshll.u32 %s9720_s27, 4  ;;  %s88_s26 = int_to_ptr.vmem [resolvable:$true] %s87_s26  ;;  %s116_s28 = int_to_ptr.vmem [resolvable:$true] %s115_s28 }
  0x26   :  { %s9484_s4 = scalar_lea.hbm %s11561_s10, 512 }
  0x27   :  { %p9485_p8 = scmp.ne.s32.totalorder %s11561_s10, %s9484_s4  ;;  %p9488_p9 = scmp.lt.u32.totalorder %s9484_s4, %s11561_s10 }
  0x29   :  { %p9490_p10 = pnand %p9488_p9, %p9485_p8 }
  0x2b   :  { %9493 = shalt.err (!%p9490_p10)
}
  0x2c   :  { %s9494_s25 = scalar_lea.vmem %s88_s26, 512  ;;  %p9499_p12 = scmp.lt.s32.totalorder %s88_s26, %s88_s26 }
  0x2d   :  { %p9495_p11 = scmp.ne.s32.totalorder %s88_s26, %s9494_s25  ;;  %p9500_p13 = scmp.lt.s32.totalorder %s9494_s25, %s9494_s25 }
  0x2f   :  { %p9501_p0 = por %p9500_p13, %p9499_p12 }
  0x31   :  { %p9502_p1 = pnand %p9501_p0, %p9495_p11 }
  0x33   :  { %9505 = shalt.err (!%p9502_p1)
}
  0x34   :  { %s9721_s3 = smov 128   ;;  %s9722_s1 = smov 8  }
  0x35   :  { %93 = dma.hbm_to_vmem [thread:$0]  %s11561_s10, 512, %s88_s26, [#allocation8], %s9721_s3, %s9721_s3, %s9722_s1  }
  0x36   :  { %s9506_s27 = scalar_lea.hbm %s11565_s14, 64 }
  0x37   :  { %p9507_p2 = scmp.ne.s32.totalorder %s11565_s14, %s9506_s27  ;;  %p9510_p3 = scmp.lt.u32.totalorder %s9506_s27, %s11565_s14 }
  0x39   :  { %p9512_p4 = pnand %p9510_p3, %p9507_p2 }
  0x3b   :  { %9515 = shalt.err (!%p9512_p4)
}
  0x3c   :  { %s9516_s5 = scalar_lea.vmem %s116_s28, 64  ;;  %p9521_p6 = scmp.lt.s32.totalorder %s116_s28, %s116_s28 }
  0x3d   :  { %p9517_p5 = scmp.ne.s32.totalorder %s116_s28, %s9516_s5  ;;  %p9522_p7 = scmp.lt.s32.totalorder %s9516_s5, %s9516_s5 }
  0x3f   :  { %p9523_p8 = por %p9522_p7, %p9521_p6 }
  0x41   :  { %p9524_p9 = pnand %p9523_p8, %p9517_p5 }
  0x43   :  { %9527 = shalt.err (!%p9524_p9)
}
  0x44   :  { %121 = dma.hbm_to_vmem [thread:$0]  %s11565_s14, 64, %s116_s28, [#allocation11], %s9717_s22, %s9717_s22, %s9718_s23  }
  0x45   :  { %s9723_s25 = smov [#allocation13]   ;;  %s9724_s2 = smov [#allocation16]  }
  0x46   :  { %s139_s24 = sshll.u32 %s9723_s25, 4  ;;  %s163_s19 = sshll.u32 %s9724_s2, 4  ;;  %s140_s24 = int_to_ptr.vmem [resolvable:$true] %s139_s24  ;;  %s164_s19 = int_to_ptr.vmem [resolvable:$true] %s163_s19 }
  0x47   :  { %s9528_s29 = scalar_lea.hbm %s11567_s16, 64 }
  0x48   :  { %p9529_p10 = scmp.ne.s32.totalorder %s11567_s16, %s9528_s29  ;;  %p9532_p11 = scmp.lt.u32.totalorder %s9528_s29, %s11567_s16 }
  0x4a   :  { %p9534_p12 = pnand %p9532_p11, %p9529_p10 }
  0x4c   :  { %9537 = shalt.err (!%p9534_p12)
}
  0x4d   :  { %s9538_s14 = scalar_lea.vmem %s140_s24, 64  ;;  %p9543_p0 = scmp.lt.s32.totalorder %s140_s24, %s140_s24 }
  0x4e   :  { %p9539_p13 = scmp.ne.s32.totalorder %s140_s24, %s9538_s14  ;;  %p9544_p1 = scmp.lt.s32.totalorder %s9538_s14, %s9538_s14 }
  0x50   :  { %p9545_p2 = por %p9544_p1, %p9543_p0 }
  0x52   :  { %p9546_p3 = pnand %p9545_p2, %p9539_p13 }
  0x54   :  { %9549 = shalt.err (!%p9546_p3)
}
  0x55   :  { %145 = dma.hbm_to_vmem [thread:$0]  %s11567_s16, 64, %s140_s24, [#allocation14], %s9717_s22, %s9717_s22, %s9718_s23  }
  0x56   :  { %s9550_s2 = scalar_lea.hbm %s11569_s18, 64 }
  0x57   :  { %p9551_p4 = scmp.ne.s32.totalorder %s11569_s18, %s9550_s2  ;;  %p9554_p5 = scmp.lt.u32.totalorder %s9550_s2, %s11569_s18 }
  0x59   :  { %p9556_p6 = pnand %p9554_p5, %p9551_p4 }
  0x5b   :  { %9559 = shalt.err (!%p9556_p6)
}
  0x5c   :  { %s9560_s4 = scalar_lea.vmem %s164_s19, 64  ;;  %p9565_p8 = scmp.lt.s32.totalorder %s164_s19, %s164_s19 }
  0x5d   :  { %p9561_p7 = scmp.ne.s32.totalorder %s164_s19, %s9560_s4  ;;  %p9566_p9 = scmp.lt.s32.totalorder %s9560_s4, %s9560_s4 }
  0x5f   :  { %p9567_p10 = por %p9566_p9, %p9565_p8 }
  0x61   :  { %p9568_p11 = pnand %p9567_p10, %p9561_p7 }
  0x63   :  { %9571 = shalt.err (!%p9568_p11)
}
  0x64   :  { %169 = dma.hbm_to_vmem [thread:$0]  %s11569_s18, 64, %s164_s19, [#allocation17], %s9717_s22, %s9717_s22, %s9718_s23  }
  0x65   :  { %s9725_s30 = smov [#allocation2]   ;;  %s9726_s14 = smov [#allocation6]  }
  0x66   :  { %s41_s5 = sshll.u32 %s9725_s30, 4  ;;  %s69_s28 = sshll.u32 %s9726_s14, 4  ;;  %s42_s5 = int_to_ptr.vmem [resolvable:$true] %s41_s5  ;;  %s70_s28 = int_to_ptr.vmem [resolvable:$true] %s69_s28 }
  0x67   :  { %s11590_s25 = sld [smem:[#allocation27_spill]] }
  0x6d   :  { %s9572_s2 = scalar_lea.hbm %s11590_s25, 384 }
  0x6e   :  { %p9573_p12 = scmp.ne.s32.totalorder %s11590_s25, %s9572_s2  ;;  %p9576_p13 = scmp.lt.u32.totalorder %s9572_s2, %s11590_s25 }
  0x70   :  { %p9578_p0 = pnand %p9576_p13, %p9573_p12 }
  0x72   :  { %9581 = shalt.err (!%p9578_p0)
}
  0x73   :  { %s9582_s18 = scalar_lea.vmem %s42_s5, 384  ;;  %p9587_p2 = scmp.lt.s32.totalorder %s42_s5, %s42_s5 }
  0x74   :  { %p9583_p1 = scmp.ne.s32.totalorder %s42_s5, %s9582_s18  ;;  %p9588_p3 = scmp.lt.s32.totalorder %s9582_s18, %s9582_s18 }
  0x76   :  { %p9589_p4 = por %p9588_p3, %p9587_p2 }
  0x78   :  { %p9590_p5 = pnand %p9589_p4, %p9583_p1 }
  0x7a   :  { %9593 = shalt.err (!%p9590_p5)
}
  0x7b   :  { %47 = dma.hbm_to_vmem [thread:$0]  %s11590_s25, 384, %s42_s5, [#allocation3], %s9721_s3, %s9721_s3, %s9722_s1  }
  0x7c   :  { %s9594_s30 = scalar_lea.hbm %s11557_s6, 64 }
  0x7d   :  { %p9595_p6 = scmp.ne.s32.totalorder %s11557_s6, %s9594_s30  ;;  %p9598_p7 = scmp.lt.u32.totalorder %s9594_s30, %s11557_s6 }
  0x7f   :  { %p9600_p8 = pnand %p9598_p7, %p9595_p6 }
  0x81   :  { %9603 = shalt.err (!%p9600_p8)
}
  0x82   :  { %s9604_s21 = scalar_lea.vmem %s70_s28, 64  ;;  %p9609_p10 = scmp.lt.s32.totalorder %s70_s28, %s70_s28 }
  0x83   :  { %p9605_p9 = scmp.ne.s32.totalorder %s70_s28, %s9604_s21  ;;  %p9610_p11 = scmp.lt.s32.totalorder %s9604_s21, %s9604_s21 }
  0x85   :  { %p9611_p12 = por %p9610_p11, %p9609_p10 }
  0x87   :  { %p9612_p13 = pnand %p9611_p12, %p9605_p9 }
  0x89   :  { %9615 = shalt.err (!%p9612_p13)
}
  0x8a   :  { %75 = dma.hbm_to_vmem [thread:$0]  %s11557_s6, 64, %s70_s28, [#allocation5], %s9717_s22, %s9717_s22, %s9718_s23  }
  0x8b   :  { %s9727_s27 = smov [#allocation9]   ;;  %s9728_s0 = smov [#allocation12]  }
  0x8c   :  { %s99_s29 = sshll.u32 %s9727_s27, 4  ;;  %s127_s18 = sshll.u32 %s9728_s0, 4  ;;  %s100_s29 = int_to_ptr.vmem [resolvable:$true] %s99_s29  ;;  %s128_s18 = int_to_ptr.vmem [resolvable:$true] %s127_s18 }
  0x8d   :  { %s9616_s16 = scalar_lea.hbm %s11562_s11, 512 }
  0x8e   :  { %p9617_p0 = scmp.ne.s32.totalorder %s11562_s11, %s9616_s16  ;;  %p9620_p1 = scmp.lt.u32.totalorder %s9616_s16, %s11562_s11 }
  0x90   :  { %p9622_p2 = pnand %p9620_p1, %p9617_p0 }
  0x92   :  { %9625 = shalt.err (!%p9622_p2)
}
  0x93   :  { %s9626_s6 = scalar_lea.vmem %s100_s29, 512  ;;  %p9631_p4 = scmp.lt.s32.totalorder %s100_s29, %s100_s29 }
  0x94   :  { %p9627_p3 = scmp.ne.s32.totalorder %s100_s29, %s9626_s6  ;;  %p9632_p5 = scmp.lt.s32.totalorder %s9626_s6, %s9626_s6 }
  0x96   :  { %p9633_p6 = por %p9632_p5, %p9631_p4 }
  0x98   :  { %p9634_p7 = pnand %p9633_p6, %p9627_p3 }
  0x9a   :  { %9637 = shalt.err (!%p9634_p7)
}
  0x9b   :  { %105 = dma.hbm_to_vmem [thread:$0]  %s11562_s11, 512, %s100_s29, [#allocation8], %s9721_s3, %s9721_s3, %s9722_s1  }
  0x9c   :  { %s9638_s5 = scalar_lea.hbm %s11566_s15, 2048 }
  0x9d   :  { %p9639_p8 = scmp.ne.s32.totalorder %s11566_s15, %s9638_s5  ;;  %p9642_p9 = scmp.lt.u32.totalorder %s9638_s5, %s11566_s15 }
  0x9f   :  { %p9644_p10 = pnand %p9642_p9, %p9639_p8 }
  0xa1   :  { %9647 = shalt.err (!%p9644_p10)
}
  0xa2   :  { %s9648_s4 = scalar_lea.vmem %s128_s18, 2048  ;;  %p9653_p12 = scmp.lt.s32.totalorder %s128_s18, %s128_s18 }
  0xa3   :  { %p9649_p11 = scmp.ne.s32.totalorder %s128_s18, %s9648_s4  ;;  %p9654_p13 = scmp.lt.s32.totalorder %s9648_s4, %s9648_s4 }
  0xa5   :  { %p9655_p0 = por %p9654_p13, %p9653_p12 }
  0xa7   :  { %p9656_p1 = pnand %p9655_p0, %p9649_p11 }
  0xa9   :  { %9659 = shalt.err (!%p9656_p1)
}
  0xaa   :  { %133 = dma.hbm_to_vmem [thread:$0]  %s11566_s15, 2048, %s128_s18, [#allocation11], %s9721_s3, %s9721_s3, %s9722_s1  }
  0xab   :  { %s9729_s16 = smov [#allocation15]   ;;  %s9730_s30 = smov [#allocation18]  }
  0xac   :  { %s151_s24 = sshll.u32 %s9729_s16, 4  ;;  %s177_s14 = sshll.u32 %s9730_s30, 4  ;;  %s152_s24 = int_to_ptr.vmem [resolvable:$true] %s151_s24  ;;  %s178_s14 = int_to_ptr.vmem [resolvable:$true] %s177_s14 }
  0xad   :  { %s9660_s28 = scalar_lea.hbm %s11568_s17, 2048 }
  0xae   :  { %p9661_p2 = scmp.ne.s32.totalorder %s11568_s17, %s9660_s28  ;;  %p9664_p3 = scmp.lt.u32.totalorder %s9660_s28, %s11568_s17 }
  0xb0   :  { %p9666_p4 = pnand %p9664_p3, %p9661_p2 }
  0xb2   :  { %9669 = shalt.err (!%p9666_p4)
}
  0xb3   :  { %s9670_s15 = scalar_lea.vmem %s152_s24, 2048  ;;  %p9675_p6 = scmp.lt.s32.totalorder %s152_s24, %s152_s24 }
  0xb4   :  { %p9671_p5 = scmp.ne.s32.totalorder %s152_s24, %s9670_s15  ;;  %p9676_p7 = scmp.lt.s32.totalorder %s9670_s15, %s9670_s15 }
  0xb6   :  { %p9677_p8 = por %p9676_p7, %p9675_p6 }
  0xb8   :  { %p9678_p9 = pnand %p9677_p8, %p9671_p5 }
  0xba   :  { %9681 = shalt.err (!%p9678_p9)
}
  0xbb   :  { %157 = dma.hbm_to_vmem [thread:$0]  %s11568_s17, 2048, %s152_s24, [#allocation14], %s9721_s3, %s9721_s3, %s9722_s1  }
  0xbc   :  { %s9682_s19 = scalar_lea.hbm %s11571_s20, 64 }
  0xbd   :  { %p9683_p10 = scmp.ne.s32.totalorder %s11571_s20, %s9682_s19  ;;  %p9686_p11 = scmp.lt.u32.totalorder %s9682_s19, %s11571_s20 }
  0xbf   :  { %p9688_p12 = pnand %p9686_p11, %p9683_p10 }
  0xc1   :  { %9691 = shalt.err (!%p9688_p12)
}
  0xc2   :  { %s9692_s30 = scalar_lea.vmem %s178_s14, 64  ;;  %p9697_p0 = scmp.lt.s32.totalorder %s178_s14, %s178_s14 }
  0xc3   :  { %p9693_p13 = scmp.ne.s32.totalorder %s178_s14, %s9692_s30  ;;  %p9698_p1 = scmp.lt.s32.totalorder %s9692_s30, %s9692_s30 }
  0xc5   :  { %p9699_p2 = por %p9698_p1, %p9697_p0 }
  0xc7   :  { %p9700_p3 = pnand %p9699_p2, %p9693_p13 }
  0xc9   :  { %9703 = shalt.err (!%p9700_p3)
}
  0xca   :  { %183 = dma.hbm_to_vmem [thread:$0]  %s11571_s20, 64, %s178_s14, [#allocation17], %s9717_s22, %s9717_s22, %s9718_s23  }
  0xcb   :  { %9704 = dma.done.wait [#allocation3], 384  }
  0xcc   :  { %9705 = vsyncadd [#allocation3], 4294966912 }
  0xcd   :  { %9706 = dma.done.wait [#allocation5], 128  }
  0xce   :  { %9707 = vsyncadd [#allocation5], 4294967168 }
  0xcf   :  { %9708 = dma.done.wait [#allocation8], 1024  }
  0xd0   :  { %9709 = vsyncadd [#allocation8], 4294966272 }
  0xd1   :  { %9710 = dma.done.wait [#allocation11], 2112  }
  0xd2   :  { %9711 = vsyncadd [#allocation11], 4294965184 }
  0xd3   :  { %9712 = dma.done.wait [#allocation14], 2112  }
  0xd4   :  { %9713 = vsyncadd [#allocation14], 4294965184 }
  0xd5   :  { %9714 = dma.done.wait [#allocation17], 128  }
  0xd6   :  { %9715 = vsyncadd [#allocation17], 4294967168  ;;  %v9731_v0 = vmov 0   ;;  %s11591_s10 = sld [smem:[#allocation26_spill]]  ;;  %s11592_s6 = sld [smem:[#allocation25_spill]]  ;;  %vm9732_vm2 = vmmov 1   ;;  %v223_v37 = vlaneseq }
  0xd7   :  { %9335 = vset.pattern.permute.xlu1 %v9731_v0  ;;  %9334 = vset.pattern.permute.xlu0 %v9731_v0  ;;  %v354_v19 = vld [vmem:[#allocation2] sm:$0xff]  ;;  %v355_v20 = vld [vmem:[#allocation2 + $0x8] sm:$0xff]  ;;  %v9733_v21 = vmov 0.0|0.0   ;;  %v9734_v25 = vmov 0.0   ;;  %v356_v27 = vld [vmem:[#allocation2 + $0x10] sm:$0x7f] }
  0xd8   :  { %8985 = vmatprep.subr.bf16.mxu0 %v9733_v21  ;;  %v8986_v22 = vpack.c.bf16 %v355_v20, %v354_v19  ;;  %8988 = vmatprep.subr.bf16.mxu1 %v9733_v21  ;;  %vm367_vm6 = vcmask 1046528   ;;  %vm9735_vm7 = vmmov 0   ;;  %v462_v31 = vld [vmem:[%s11558_s7] sm:$0xff]  ;;  %v463_v32 = vld [vmem:[%s11558_s7 + $0x8] sm:$0xff]  ;;  %v464_v34 = vld [vmem:[%s11558_s7 + $0x10] sm:$0xff]  ;;  %v10058_v40 = vand.u32 127, %v223_v37 }
  0xd9   :  { %7964 = vmatprep.mubr.msk.f32.mxu0 %vm9735_vm7, %v9734_v25  ;;  %7981 = vmatprep.mubr.msk.f32.mxu1 %vm9735_vm7, %v9734_v25  ;;  %v8989_v33 = vpack.c.bf16 %v463_v32, %v462_v31  ;;  %v465_v35 = vld [vmem:[%s11558_s7 + $0x18] sm:$0xff]  ;;  %v556_v53 = vld [vmem:[%s11559_s8] sm:$0xff]  ;;  %v557_v54 = vld [vmem:[%s11559_s8 + $0x8] sm:$0xff]  ;;  %s11593_s18 = sld [smem:[#allocation28_spill]]  ;;  %s11594_s4 = sld [smem:[#allocation29_spill]] }
  0xda   :  { %8987 = vmatpush3.bf16.msra.mxu0 %v8986_v22  ;;  %v8992_v36 = vpack.c.bf16 %v465_v35, %v464_v34  ;;  %v8995_v57 = vpack.c.bf16 %v557_v54, %v556_v53  ;;  %v558_v61 = vld [vmem:[%s11559_s8 + $0x10] sm:$0xff]  ;;  %v559_v62 = vld [vmem:[%s11559_s8 + $0x18] sm:$0xff]  ;;  %v640_v20 = vld [vmem:[%s11560_s9] sm:$0xff]  ;;  %s11597_s29 = sld [smem:[#allocation31_spill]]  ;;  %s11600_s27 = sld [smem:[#allocation32_spill]] }
  0xdb   :  { %7962 = vmatprep.subr.mxu0 %v9734_v25  ;;  %8990 = vmatpush3.bf16.msra.mxu1 %v8989_v33  ;;  %v8998_v63 = vpack.c.bf16 %v559_v62, %v558_v61  ;;  %v641_v22 = vld [vmem:[%s11560_s9 + $0x8] sm:$0xff] }
  0xdc   :  { %v220_v1 = vld [vmem:[%s11591_s10] sm:$0xff]  ;;  %v221_v2 = vld [vmem:[%s11591_s10 + $0x8] sm:$0xff]  ;;  %v219_v14 = vld [vmem:[%s11592_s6 + $0x10] sm:$0xf]  ;;  %8991 = vmatprep.subr.bf16.mxu1 %v9733_v21 }
  0xdd   :  { %v217_v3 = vld [vmem:[%s11592_s6] sm:$0xff]  ;;  %v264_v4 = vadd.s32 17, %v220_v1  ;;  %vm225_vm0 = vcmp.lt.s32.totalorder %v220_v1, 4  ;;  %vm226_vm1 = vcmp.lt.s32.totalorder %v221_v2, 4  ;;  %v265_v6 = vadd.s32 17, %v221_v2  ;;  %v218_v9 = vld [vmem:[%s11592_s6 + $0x8] sm:$0xff] }
  0xde   :  { %v243_v5 = vsel %vm225_vm0, 1, %v9731_v0  ;;  %v9308_v7 = vtrunc.f32 %v217_v3  ;;  %v244_v8 = vsel %vm226_vm1, 1, %v9731_v0  ;;  %vm288_vm3 = vmxor %vm225_vm0, %vm9732_vm2  ;;  %v9310_v11 = vtrunc.f32 %v218_v9  ;;  %v222_v15 = vld [vmem:[%s11591_s10 + $0x10] sm:$0xf]  ;;  %7963 = vmatpush3.msk.msra.mxu0 %vm367_vm6, %v356_v27  ;;  %v643_v27 = vld [vmem:[%s11560_s9 + $0x18] sm:$0xff] }
  0xdf   :  { %268 = vperm.xlu1 %9335, %v264_v4   ;;  %247 = vperm.xlu0 %9334, %v243_v5   ;;  %v291_v12 = vsel %vm288_vm3, 1, %v9731_v0  ;;  %vm289_vm4 = vmxor %vm226_vm1, %vm9732_vm2  ;;  %v330_v16 = vadd.s32 18, %v220_v1  ;;  %v9312_v17 = vtrunc.f32 %v219_v14  ;;  %vm227_vm5 = vcmp.lt.s32.totalorder %v222_v15, 4  ;;  %v453_v61 = vld [vmem:[%s11593_s18 + $0x10] sm:$0xff]  ;;  %v454_v62 = vld [vmem:[%s11593_s18 + $0x18] sm:$0xff] }
  0xe0   :  { %v9309_v10 = vcvt.f32.s32 %v9308_v7  ;;  %v9311_v13 = vcvt.f32.s32 %v9310_v11  ;;  %v292_v18 = vsel %vm289_vm4, 1, %v9731_v0  ;;  %v245_v24 = vsel %vm227_vm5, 1, %v9731_v0  ;;  %vm290_vm8 = vmxor %vm227_vm5, %vm9732_vm2  ;;  %8994 = vmatprep.subr.bf16.mxu0 %v9733_v21  ;;  %8993 = vmatpush3.bf16.msra.mxu1 %v8992_v36 }
  0xe1   :  { %v9313_v23 = vcvt.f32.s32 %v9312_v17  ;;  %v266_v26 = vadd.s32 17, %v222_v15  ;;  %v331_v28 = vadd.s32 18, %v221_v2  ;;  %v293_v29 = vsel %vm290_vm8, 1, %v9731_v0  ;;  %9000 = vmatprep.subr.bf16.mxu1 %v9733_v21 }
  0xe2   :  { %v332_v30 = vadd.s32 18, %v222_v15  ;;  %vm357_vm4 = vcmask 187392  }
  0xe3   :  { %250 = vperm.xlu1 %9335, %v244_v8   ;;  %271 = vperm.xlu0 %9334, %v265_v6  }
  0xe7   :  { %295 = vperm.xlu1 %9335, %v291_v12   ;;  %232 = vperm.xlu0 %9334, %v9309_v10  }
  0xeb   :  { %311 = vperm.xlu1 %9335, %v217_v3   ;;  %235 = vperm.xlu0 %9334, %v9311_v13  }
  0xef   :  { %298 = vperm.xlu1 %9335, %v292_v18   ;;  %334 = vperm.xlu0 %9334, %v330_v16  }
  0xf3   :  { %253 = vperm.xlu1 %9335, %v245_v24   ;;  %238 = vperm.xlu0 %9334, %v9313_v23   ;;  %v9001_v23 = vpack.c.bf16 %v641_v22, %v640_v20 }
  0xf7   :  { %316 = vperm.xlu1 %9335, %v218_v9   ;;  %274 = vperm.xlu0 %9334, %v266_v26   ;;  %v642_v26 = vld [vmem:[%s11560_s9 + $0x10] sm:$0xff] }
  0xfb   :  { %301 = vperm.xlu1 %9335, %v293_v29   ;;  %337 = vperm.xlu0 %9334, %v331_v28   ;;  %v9004_v29 = vpack.c.bf16 %v643_v27, %v642_v26 }
  0xff   :  { %340 = vperm.xlu1 %9335, %v332_v30   ;;  %321 = vperm.xlu0 %9334, %v219_v14  }
 0x15e   :  { %v269_v38 = vpop.permute.xlu1 %268  ;;  %v248_v39 = vpop.permute.xlu0 %247 }
 0x15f   :  { %vm276_vm9 = vcmp.eq.s32.totalorder %v10058_v40, %v269_v38  ;;  %vm255_vm10 = vcmp.eq.s32.totalorder %v248_v39, 1 }
 0x160   :  { %vm279_vm11 = vmand %vm255_vm10, %vm276_vm9 }
 0x161   :  { %v282_v48 = vsel %vm279_vm11, 1.0, %v9734_v25 }
 0x162   :  { %v251_v41 = vpop.permute.xlu1 %250  ;;  %v272_v42 = vpop.permute.xlu0 %271 }
 0x163   :  { %vm256_vm5 = vcmp.eq.s32.totalorder %v251_v41, 1  ;;  %vm277_vm6 = vcmp.eq.s32.totalorder %v10058_v40, %v272_v42 }
 0x166   :  { %v296_v43 = vpop.permute.xlu1 %295  ;;  %v233_v44 = vpop.permute.xlu0 %232 }
 0x167   :  { %vm240_vm12 = vcmp.eq.s32.totalorder %v10058_v40, %v233_v44  ;;  %vm303_vm14 = vcmp.eq.s32.totalorder %v296_v43, 1 }
 0x168   :  { %vm258_vm13 = vmand %vm255_vm10, %vm240_vm12 }
 0x169   :  { %v261_v45 = vsel %vm258_vm13, 1.0, %v9734_v25  ;;  %vm306_vm15 = vmand %vm303_vm14, %vm276_vm9 }
 0x16a   :  { %v312_v46 = vpop.permute.xlu1 %311  ;;  %v236_v47 = vpop.permute.xlu0 %235  ;;  %v285_v49 = vadd.f32 %v282_v48, %v261_v45  ;;  %vm280_vm10 = vmand %vm256_vm5, %vm277_vm6 }
 0x16b   :  { %v324_v50 = vsel %vm306_vm15, %v312_v46, 0.0  ;;  %vm241_vm3 = vcmp.eq.s32.totalorder %v10058_v40, %v236_v47  ;;  %v283_v3 = vsel %vm280_vm10, 1.0, %v9734_v25  ;;  %v724_v47 = vld [vmem:[#allocation7] sm:$0xff] }
 0x16c   :  { %v327_v55 = vadd.f32 %v324_v50, %v285_v49  ;;  %vm259_vm8 = vmand %vm256_vm5, %vm241_vm3 }
 0x16d   :  { %v262_v2 = vsel %vm259_vm8, 1.0, %v9734_v25 }
 0x16e   :  { %v299_v51 = vpop.permute.xlu1 %298  ;;  %v335_v52 = vpop.permute.xlu0 %334  ;;  %v286_v5 = vadd.f32 %v283_v3, %v262_v2  ;;  %v10218_v2 = vld [vmem:[%s11594_s4 + $0x10] sm:$0xf] }
 0x16f   :  { %vm342_vm0 = vcmp.eq.s32.totalorder %v10058_v40, %v335_v52  ;;  %vm304_vm9 = vcmp.eq.s32.totalorder %v299_v51, 1 }
 0x170   :  { %vm345_vm1 = vmand %vm303_vm14, %vm342_vm0 }
 0x171   :  { %v348_v56 = vsel %vm345_vm1, 1.0, %v9734_v25  ;;  %vm307_vm13 = vmand %vm304_vm9, %vm277_vm6 }
 0x172   :  { %v351_v58 = vadd.f32 %v348_v56, %v327_v55  ;;  %v254_v59 = vpop.permute.xlu1 %253  ;;  %v239_v60 = vpop.permute.xlu0 %238  ;;  %v803_v55 = vld [vmem:[#allocation9] sm:$0xff]  ;;  %v451_v56 = vld [vmem:[%s11593_s18] sm:$0xff] }
 0x173   :  { %vm257_vm11 = vcmp.eq.s32.totalorder %v254_v59, 1  ;;  %vm242_vm12 = vcmp.eq.s32.totalorder %v10058_v40, %v239_v60 }
 0x174   :  { %7965 = vmatmul.mubr.msk.f32.vlgmr.msra.gmra.mrb[0].mxu0 %vm357_vm4, %v351_v58  ;;  %vm260_vm0 = vmand %vm257_vm11, %vm242_vm12  ;;  %v455_v58 = vld [vmem:[%s11594_s4] sm:$0xff]  ;;  %vm880_vm12 = vcmask 64512  }
 0x175   :  { %7967 = vmatprep.mubr.msk.f32.mxu0 %vm9735_vm7, %v9734_v25  ;;  %8996 = vmatpush3.bf16.msra.mxu0 %v8995_v57  ;;  %v263_v10 = vsel %vm260_vm0, 1.0, %v9734_v25  ;;  %v452_v57 = vld [vmem:[%s11593_s18 + $0x8] sm:$0xff] }
 0x176   :  { %v317_v0 = vpop.permute.xlu1 %316  ;;  %v275_v1 = vpop.permute.xlu0 %274  ;;  %8997 = vmatprep.subr.bf16.mxu0 %v9733_v21  ;;  %v10190_v59 = vpack.c.bf16 %v452_v57, %v451_v56 }
 0x177   :  { %vm278_vm14 = vcmp.eq.s32.totalorder %v10058_v40, %v275_v1  ;;  %v325_v4 = vsel %vm307_vm13, %v317_v0, 0.0  ;;  %v10205_v0 = vld [vmem:[%s11594_s4 + $0x8] sm:$0xff]  ;;  %v10208_v1 = vpack.c.bf16 %v454_v62, %v453_v61  ;;  %vm10315_vm13 = vmpackc.low %vm880_vm12, %vm880_vm12 }
 0x178   :  { %vm281_vm15 = vmand %vm257_vm11, %vm278_vm14  ;;  %v328_v9 = vadd.f32 %v325_v4, %v286_v5  ;;  %vm725_vm11 = vcmask 162816   ;;  %v10242_v5 = vld [vmem:[%s11594_s4 + $0x18] sm:$0xff] }
 0x179   :  { %8999 = vmatpush3.bf16.msra.mxu0 %v8998_v63  ;;  %v284_v8 = vsel %vm281_vm15, 1.0, %v9734_v25  ;;  %vm2020_vm15 = vcmask 1041408  }
 0x17a   :  { %v302_v6 = vpop.permute.xlu1 %301  ;;  %v338_v7 = vpop.permute.xlu0 %337  ;;  %9006 = vmatprep.subr.bf16.mxu0 %v9733_v21  ;;  %v287_v14 = vadd.f32 %v284_v8, %v263_v10  ;;  %vm10455_vm0 = vmpackc.low %vm2020_vm15, %vm9732_vm2  ;;  %vm2010_vm2 = vcmask 343040  }
 0x17b   :  { %vm305_vm1 = vcmp.eq.s32.totalorder %v302_v6, 1  ;;  %vm343_vm3 = vcmp.eq.s32.totalorder %v10058_v40, %v338_v7  ;;  %v10251_v6 = vld [vmem:[%s11594_s4 + $0x20] sm:$0xff]  ;;  %v10262_v7 = vld [vmem:[%s11594_s4 + $0x28] sm:$0xf] }
 0x17c   :  { %vm346_vm5 = vmand %vm304_vm9, %vm343_vm3  ;;  %vm466_vm9 = vcmask 261120  }
 0x17d   :  { %v349_v11 = vsel %vm346_vm5, 1.0, %v9734_v25  ;;  %vm308_vm6 = vmand %vm305_vm1, %vm278_vm14  ;;  %vm1754_vm14 = vcmask 257024  }
 0x17e   :  { %v352_v12 = vadd.f32 %v349_v11, %v328_v9  ;;  %v341_v13 = vpop.permute.xlu1 %340  ;;  %v322_v15 = vpop.permute.xlu0 %321 }
 0x17f   :  { %vm344_vm8 = vcmp.eq.s32.totalorder %v10058_v40, %v341_v13  ;;  %v326_v16 = vsel %vm308_vm6, %v322_v15, 0.0 }
 0x180   :  { %vm347_vm10 = vmand %vm305_vm1, %vm344_vm8  ;;  %v329_v17 = vadd.f32 %v326_v16, %v287_v14  ;;  %7968 = vmatmul.mubr.msk.f32.gmra.mrb[2].mxu0 %vm357_vm4, %v352_v12 }
 0x181   :  { %v350_v18 = vsel %vm347_vm10, 1.0, %v9734_v25  ;;  %7970 = vmatprep.mubr.msk.f32.mxu0 %vm9735_vm7, %v9734_v25 }
 0x182   :  { %v353_v19 = vadd.f32 %v350_v18, %v329_v17 }
 0x184   :  { %7971 = vmatmul.mubr.msk.f32.gmra.mrb[4].mxu0 %vm357_vm4, %v353_v19  ;;  %vm729_vm4 = vcmask 1043456  }
 0x185   :  { %7998 = vmatprep.mubr.msk.f32.mxu0 %vm9735_vm7, %v9734_v25 }
 0x247   :  { %v10113_v24 = vpop.f32.mrb[0].mxu0 }
 0x248   :  { %v7966_v28 = vpop.f32.mrb[1].mxu0  ;;  %7982 = vmatmul.mubr.msk.f32.vlgmr.msra.gmra.mrb[0].mxu1 %vm466_vm9, %v10113_v24  ;;  %7999 = vmatmul.mubr.msk.f32.vlgmr.msra.gmra.mrb[6].mxu0 %vm466_vm9, %v10113_v24 }
 0x249   :  { %7984 = vmatprep.mubr.msk.f32.mxu1 %vm9735_vm7, %v9734_v25  ;;  %8001 = vmatprep.mubr.msk.f32.mxu0 %vm9735_vm7, %v9734_v25 }
 0x24a   :  { %9002 = vmatpush3.bf16.msra.mxu1 %v9001_v23 }
 0x24b   :  { %9003 = vmatprep.subr.bf16.mxu1 %v9733_v21 }
 0x24e   :  { %9005 = vmatpush3.bf16.msra.mxu1 %v9004_v29 }
 0x24f   :  { %9009 = vmatprep.subr.bf16.mxu1 %v9733_v21 }
 0x253   :  { %v10131_v30 = vpop.f32.mrb[2].mxu0 }
 0x254   :  { %v7969_v31 = vpop.f32.mrb[3].mxu0  ;;  %7985 = vmatmul.mubr.msk.f32.gmra.mrb[2].mxu1 %vm466_vm9, %v10131_v30  ;;  %8002 = vmatmul.mubr.msk.f32.gmra.mrb[8].mxu0 %vm466_vm9, %v10131_v30 }
 0x255   :  { %7987 = vmatprep.mubr.msk.f32.mxu1 %vm9735_vm7, %v9734_v25  ;;  %8004 = vmatprep.mubr.msk.f32.mxu0 %vm9735_vm7, %v9734_v25 }
 0x257   :  { %v10141_v32 = vpop.f32.mrb[4].mxu0 }
 0x258   :  { %v7972_v33 = vpop.f32.mrb[5].mxu0  ;;  %7988 = vmatmul.mubr.msk.f32.gmra.mrb[4].mxu1 %vm466_vm9, %v10141_v32  ;;  %8005 = vmatmul.mubr.msk.f32.gmra.mrb[10].mxu0 %vm466_vm9, %v10141_v32 }
 0x259   :  { %8015 = vmatprep.mubr.msk.f32.mxu1 %vm9735_vm7, %v9734_v25  ;;  %8030 = vmatprep.mubr.msk.f32.mxu0 %vm9735_vm7, %v9734_v25 }
 0x25c   :  { %8016 = vmatmul.mubr.msk.f32.vlgmr.msra.gmra.mrb[6].mxu1 %vm466_vm9, %v10113_v24 }
 0x25d   :  { %8018 = vmatprep.mubr.msk.f32.mxu1 %vm9735_vm7, %v9734_v25 }
 0x260   :  { %8019 = vmatmul.mubr.msk.f32.gmra.mrb[8].mxu1 %vm466_vm9, %v10131_v30 }
 0x261   :  { %8021 = vmatprep.mubr.msk.f32.mxu1 %vm9735_vm7, %v9734_v25 }
 0x264   :  { %8022 = vmatmul.mubr.msk.f32.gmra.mrb[10].mxu1 %vm466_vm9, %v10141_v32 }
 0x265   :  { %8039 = vmatprep.mubr.msk.f32.mxu1 %vm9735_vm7, %v9734_v25 }
 0x31b   :  { %v10163_v34 = vpop.f32.mrb[0].mxu1  ;;  %v626_v35 = vpop.f32.mrb[6].mxu0 }
 0x31c   :  { %v7983_v36 = vpop.f32.mrb[1].mxu1  ;;  %v8000_v37 = vpop.f32.mrb[7].mxu0 }
 0x327   :  { %v10165_v38 = vpop.f32.mrb[2].mxu1  ;;  %v631_v39 = vpop.f32.mrb[8].mxu0 }
 0x328   :  { %v9007_v40 = vpack.c.bf16 %v631_v39, %v626_v35  ;;  %v7986_v41 = vpop.f32.mrb[3].mxu1  ;;  %v8003_v42 = vpop.f32.mrb[9].mxu0 }
 0x32a   :  { %9008 = vmatpush3.bf16.msra.mxu0 %v9007_v40 }
 0x32b   :  { %v10167_v43 = vpop.f32.mrb[4].mxu1  ;;  %v636_v44 = vpop.f32.mrb[10].mxu0  ;;  %8028 = vmatprep.subr.mxu0 %v9734_v25 }
 0x32c   :  { %v7989_v45 = vpop.f32.mrb[5].mxu1  ;;  %v8006_v46 = vpop.f32.mrb[11].mxu0 }
 0x32e   :  { %8029 = vmatpush3.msk.msra.mxu0 %vm729_vm4, %v636_v44 }
 0x32f   :  { %v710_v48 = vpop.f32.mrb[6].mxu1  ;;  %8031 = vmatmul.mubr.msk.f32.vlgmr.msra.gmra.mrb[12].mxu0 %vm725_vm11, %v724_v47  ;;  %8042 = vmatprep.subr.mxu0 %v9734_v25 }
 0x330   :  { %v8017_v49 = vpop.f32.mrb[7].mxu1  ;;  %8044 = vmatprep.mubr.msk.f32.mxu0 %vm9735_vm7, %v9734_v25 }
 0x333   :  { %v715_v50 = vpop.f32.mrb[8].mxu1 }
 0x334   :  { %v9010_v51 = vpack.c.bf16 %v715_v50, %v710_v48  ;;  %v8020_v52 = vpop.f32.mrb[9].mxu1 }
 0x336   :  { %9011 = vmatpush3.bf16.msra.mxu1 %v9010_v51 }
 0x337   :  { %v720_v53 = vpop.f32.mrb[10].mxu1  ;;  %8037 = vmatprep.subr.mxu1 %v9734_v25 }
 0x338   :  { %v8023_v54 = vpop.f32.mrb[11].mxu1 }
 0x33a   :  { %8038 = vmatpush3.msk.msra.mxu1 %vm729_vm4, %v720_v53 }
 0x33b   :  { %8040 = vmatmul.mubr.msk.f32.vlgmr.msra.gmra.mrb[12].mxu1 %vm725_vm11, %v803_v55  ;;  %8053 = vmatprep.subr.mxu1 %v9734_v25 }
 0x33c   :  { %8055 = vmatprep.mubr.msk.f32.mxu1 %vm9735_vm7, %v9734_v25 }
 0x402   :  { %v799_v60 = vpop.f32.mrb[12].mxu0 }
 0x403   :  { %8043 = vmatpush3.msra.mxu0 %v799_v60  ;;  %v8032_v63 = vpop.f32.mrb[13].mxu0 }
 0x404   :  { %8045 = vmatmul.mubr.msk.f32.vlgmr.msra.gmra.mrb[14].mxu0 %vm880_vm12, %v455_v58  ;;  %9012 = vmatprep.subr.bf16.mxu0 %v9733_v21 }
 0x405   :  { %8047 = vmatprep.mubr.msk.f32.mxu0 %vm9735_vm7, %v9734_v25  ;;  %9014 = vmatpush3.bf16.msra.mxu0 %v10190_v59 }
 0x406   :  { %9015 = vmatprep.subr.bf16.mxu0 %v9733_v21 }
 0x408   :  { %8048 = vmatmul.mubr.msk.f32.gmra.mrb[16].mxu0 %vm880_vm12, %v10205_v0 }
 0x409   :  { %8050 = vmatprep.mubr.msk.f32.mxu0 %vm9735_vm7, %v9734_v25  ;;  %9017 = vmatpush3.bf16.msra.mxu0 %v10208_v1 }
 0x40a   :  { %8092 = vmatprep.subr.mxu0 %v9734_v25 }
 0x40c   :  { %8051 = vmatmul.mubr.msk.f32.gmra.mrb[18].mxu0 %vm880_vm12, %v10218_v2 }
 0x40d   :  { %8072 = vmatprep.mubr.msk.f32.mxu0 %vm9735_vm7, %v9734_v25 }
 0x40e   :  { %v876_v3 = vpop.f32.mrb[12].mxu1 }
 0x40f   :  { %v8041_v4 = vpop.f32.mrb[13].mxu1  ;;  %8054 = vmatpush3.msra.mxu1 %v876_v3 }
 0x410   :  { %8056 = vmatmul.mubr.msk.f32.vlgmr.msra.gmra.mrb[14].mxu1 %vm880_vm12, %v455_v58  ;;  %8081 = vmatprep.subr.mxu1 %v9734_v25 }
 0x411   :  { %8058 = vmatprep.mubr.msk.f32.mxu1 %vm9735_vm7, %v9734_v25  ;;  %8082 = vmatpush3.msra.mxu1 %v799_v60 }
 0x412   :  { %9018 = vmatprep.subr.bf16.mxu1 %v9733_v21 }
 0x414   :  { %8059 = vmatmul.mubr.msk.f32.gmra.mrb[16].mxu1 %vm880_vm12, %v10205_v0 }
 0x415   :  { %8061 = vmatprep.mubr.msk.f32.mxu1 %vm9735_vm7, %v9734_v25 }
 0x418   :  { %8062 = vmatmul.mubr.msk.f32.gmra.mrb[18].mxu1 %vm880_vm12, %v10218_v2 }
 0x419   :  { %8083 = vmatprep.mubr.msk.f32.mxu1 %vm9735_vm7, %v9734_v25 }
 0x41c   :  { %8084 = vmatmul.mubr.msk.f32.vlgmr.msra.gmra.mrb[20].mxu1 %vm880_vm12, %v10242_v5 }
 0x41d   :  { %8086 = vmatprep.mubr.msk.f32.mxu1 %vm9735_vm7, %v9734_v25  ;;  %9020 = vmatpush3.bf16.msra.mxu1 %v10190_v59 }
 0x41e   :  { %9021 = vmatprep.subr.bf16.mxu1 %v9733_v21 }
 0x420   :  { %8087 = vmatmul.mubr.msk.f32.gmra.mrb[22].mxu1 %vm880_vm12, %v10251_v6 }
 0x421   :  { %8089 = vmatprep.mubr.msk.f32.mxu1 %vm9735_vm7, %v9734_v25  ;;  %9023 = vmatpush3.bf16.msra.mxu1 %v10208_v1 }
 0x422   :  { %9032 = vmatprep.subr.bf16.mxu1 %v9733_v21 }
 0x424   :  { %8090 = vmatmul.mubr.msk.f32.gmra.mrb[24].mxu1 %vm880_vm12, %v10262_v7 }
 0x425   :  { %8111 = vmatprep.mubr.msk.f32.mxu1 %vm9735_vm7, %v9734_v25 }
 0x4d7   :  { %v956_v8 = vpop.f32.mrb[14].mxu0 }
 0x4d8   :  { %v1050_v9 = vmul.f32 %v956_v8, %v10163_v34  ;;  %v8046_v10 = vpop.f32.mrb[15].mxu0 }
 0x4da   :  { %8073 = vmatmul.mubr.msk.f32.vlgmr.msra.gmra.mrb[20].mxu0 %vm466_vm9, %v1050_v9 }
 0x4db   :  { %8093 = vmatpush3.msra.mxu0 %v876_v3  ;;  %v961_v11 = vpop.f32.mrb[16].mxu0  ;;  %8075 = vmatprep.mubr.msk.f32.mxu0 %vm9735_vm7, %v9734_v25 }
 0x4dc   :  { %v1051_v12 = vmul.f32 %v961_v11, %v10165_v38  ;;  %v8049_v13 = vpop.f32.mrb[17].mxu0  ;;  %9024 = vmatprep.subr.bf16.mxu0 %v9733_v21 }
 0x4de   :  { %8076 = vmatmul.mubr.msk.f32.gmra.mrb[22].mxu0 %vm466_vm9, %v1051_v12 }
 0x4df   :  { %v966_v14 = vpop.f32.mrb[18].mxu0  ;;  %8078 = vmatprep.mubr.msk.f32.mxu0 %vm9735_vm7, %v9734_v25 }
 0x4e0   :  { %v1052_v15 = vmul.f32 %v966_v14, %v10167_v43  ;;  %v8052_v16 = vpop.f32.mrb[19].mxu0 }
 0x4e2   :  { %8079 = vmatmul.mubr.msk.f32.gmra.mrb[24].mxu0 %vm466_vm9, %v1052_v15 }
 0x4e3   :  { %v10281_v17 = vpop.f32.mrb[14].mxu1  ;;  %8094 = vmatprep.mubr.msk.f32.mxu0 %vm9735_vm7, %v9734_v25 }
 0x4e4   :  { %v8057_v18 = vpop.f32.mrb[15].mxu1 }
 0x4e6   :  { %8095 = vmatmul.mubr.msk.f32.vlgmr.msra.gmra.mrb[26].mxu0 %vm880_vm12, %v10242_v5 }
 0x4e7   :  { %v10287_v19 = vpop.f32.mrb[16].mxu1  ;;  %8097 = vmatprep.mubr.msk.f32.mxu0 %vm9735_vm7, %v9734_v25  ;;  %9027 = vmatpush3.bf16.xpose.msk.msra.mxu0 %vm10315_vm13, %v10190_v59 }
 0x4e8   :  { %v8060_v20 = vpop.f32.mrb[17].mxu1  ;;  %9028 = vmatprep.subr.bf16.mxu0 %v9733_v21 }
 0x4ea   :  { %8098 = vmatmul.mubr.msk.f32.gmra.mrb[28].mxu0 %vm880_vm12, %v10251_v6 }
 0x4eb   :  { %v10293_v22 = vpop.f32.mrb[18].mxu1  ;;  %8100 = vmatprep.mubr.msk.f32.mxu0 %vm9735_vm7, %v9734_v25 }
 0x4ec   :  { %v8063_v23 = vpop.f32.mrb[19].mxu1 }
 0x4ee   :  { %8101 = vmatmul.mubr.msk.f32.gmra.mrb[30].mxu0 %vm880_vm12, %v10262_v7 }
 0x4ef   :  { %v1220_v26 = vpop.f32.mrb[20].mxu1  ;;  %8128 = vmatprep.mubr.msk.f32.mxu0 %vm9735_vm7, %v9734_v25  ;;  %9031 = vmatpush3.bf16.xpose.msk.msra.mxu0 %vm10315_vm13, %v10208_v1 }
 0x4f0   :  { %v1314_v27 = vmul.f32 %v1220_v26, %v10163_v34  ;;  %v8085_v28 = vpop.f32.mrb[21].mxu1  ;;  %9040 = vmatprep.subr.bf16.mxu0 %v9733_v21 }
 0x4f2   :  { %8112 = vmatmul.mubr.msk.f32.vlgmr.msra.gmra.mrb[26].mxu1 %vm466_vm9, %v1314_v27 }
 0x4f3   :  { %v1225_v29 = vpop.f32.mrb[22].mxu1  ;;  %8114 = vmatprep.mubr.msk.f32.mxu1 %vm9735_vm7, %v9734_v25  ;;  %9035 = vmatpush3.bf16.xpose.msk.msra.mxu1 %vm10315_vm13, %v10190_v59 }
 0x4f4   :  { %v1315_v31 = vmul.f32 %v1225_v29, %v10165_v38  ;;  %v8088_v33 = vpop.f32.mrb[23].mxu1  ;;  %9036 = vmatprep.subr.bf16.mxu1 %v9733_v21 }
 0x4f6   :  { %8115 = vmatmul.mubr.msk.f32.gmra.mrb[28].mxu1 %vm466_vm9, %v1315_v31 }
 0x4f7   :  { %v1230_v35 = vpop.f32.mrb[24].mxu1  ;;  %8117 = vmatprep.mubr.msk.f32.mxu1 %vm9735_vm7, %v9734_v25 }
 0x4f8   :  { %v1316_v36 = vmul.f32 %v1230_v35, %v10167_v43  ;;  %v8091_v37 = vpop.f32.mrb[25].mxu1 }
 0x4fa   :  { %8118 = vmatmul.mubr.msk.f32.gmra.mrb[30].mxu1 %vm466_vm9, %v1316_v36 }
 0x4fb   :  { %8145 = vmatprep.mubr.msk.f32.mxu1 %vm9735_vm7, %v9734_v25  ;;  %9039 = vmatpush3.bf16.xpose.msk.msra.mxu1 %vm10315_vm13, %v10208_v1 }
 0x4fc   :  { %9046 = vmatprep.subr.bf16.mxu1 %v9733_v21 }
 0x5ad   :  { %v1128_v38 = vpop.f32.mrb[20].mxu0 }
 0x5ae   :  { %v8074_v39 = vpop.f32.mrb[21].mxu0  ;;  %v1142_v51 = vmul.f32 0.5, %v1128_v38 }
 0x5b1   :  { %v1133_v40 = vpop.f32.mrb[22].mxu0 }
 0x5b2   :  { %v8077_v41 = vpop.f32.mrb[23].mxu0  ;;  %v1143_v56 = vmul.f32 0.5, %v1133_v40 }
 0x5b5   :  { %v1138_v42 = vpop.f32.mrb[24].mxu0 }
 0x5b6   :  { %v8080_v43 = vpop.f32.mrb[25].mxu0  ;;  %v1144_v4 = vmul.f32 0.5, %v1138_v42  ;;  %v1650_v42 = vld [vmem:[%s11563_s12] sm:$0xff] }
 0x5b7   :  { %v1651_v43 = vld [vmem:[%s11563_s12 + $0x8] sm:$0xff] }
 0x5b9   :  { %v10335_v44 = vpop.f32.mrb[26].mxu0 }
 0x5ba   :  { %v8096_v45 = vpop.f32.mrb[27].mxu0 }
 0x5bd   :  { %v10337_v46 = vpop.f32.mrb[28].mxu0 }
 0x5be   :  { %v8099_v47 = vpop.f32.mrb[29].mxu0 }
 0x5c1   :  { %v10339_v48 = vpop.f32.mrb[30].mxu0 }
 0x5c2   :  { %v8102_v49 = vpop.f32.mrb[31].mxu0 }
 0x5c5   :  { %v1392_v50 = vpop.f32.mrb[26].mxu1 }
 0x5c6   :  { %v1406_v52 = vmul.f32 0.5, %v1392_v50  ;;  %v8113_v53 = vpop.f32.mrb[27].mxu1 }
 0x5c8   :  { %v1409_v54 = vmax.f32 %v1142_v51, %v1406_v52 }
 0x5c9   :  { %v1397_v55 = vpop.f32.mrb[28].mxu1 }
 0x5ca   :  { %v1412_v57 = vsub.f32 %v1142_v51, %v1409_v54  ;;  %v1421_v58 = vsub.f32 %v1406_v52, %v1409_v54  ;;  %v1407_v60 = vmul.f32 0.5, %v1397_v55  ;;  %v8116_v61 = vpop.f32.mrb[29].mxu1  ;;  %v9041_v52 = vpack.c.bf16 %v1651_v43, %v1650_v42 }
 0x5cc   :  { %v1415_v62 = vmul.f32 1.442695, %v1412_v57  ;;  %v1424_v63 = vmul.f32 1.442695, %v1421_v58  ;;  %v1410_v3 = vmax.f32 %v1143_v56, %v1407_v60 }
 0x5cd   :  { %v1402_v8 = vpop.f32.mrb[30].mxu1 }
 0x5ce   :  { %9336 = vpow2.f32 %v1415_v62  ;;  %v1413_v9 = vsub.f32 %v1143_v56, %v1410_v3  ;;  %v1422_v10 = vsub.f32 %v1407_v60, %v1410_v3  ;;  %v1408_v11 = vmul.f32 0.5, %v1402_v8  ;;  %v8119_v12 = vpop.f32.mrb[31].mxu1  ;;  %v1653_v3 = vld [vmem:[%s11563_s12 + $0x18] sm:$0xff] }
 0x5cf   :  { %9338 = vpow2.f32 %v1424_v63  ;;  %v1652_v63 = vld [vmem:[%s11563_s12 + $0x10] sm:$0xff] }
 0x5d0   :  { %v1417_v13 = vmul.f32 1.442695, %v1413_v9  ;;  %v1426_v14 = vmul.f32 1.442695, %v1422_v10  ;;  %v1411_v15 = vmax.f32 %v1144_v4, %v1408_v11 }
 0x5d2   :  { %9340 = vpow2.f32 %v1417_v13  ;;  %v1414_v16 = vsub.f32 %v1144_v4, %v1411_v15  ;;  %v1423_v18 = vsub.f32 %v1408_v11, %v1411_v15  ;;  %v9044_v4 = vpack.c.bf16 %v1653_v3, %v1652_v63  ;;  %v1908_v3 = vld [vmem:[#allocation15 + $0x8] sm:$0xff] }
 0x5d3   :  { %9342 = vpow2.f32 %v1426_v14 }
 0x5d4   :  { %v1419_v20 = vmul.f32 1.442695, %v1414_v16  ;;  %v1428_v23 = vmul.f32 1.442695, %v1423_v18 }
 0x5d6   :  { %9344 = vpow2.f32 %v1419_v20 }
 0x5d7   :  { %9346 = vpow2.f32 %v1428_v23 }
 0x5d8   :  { %v9337_v26 = vpop.eup %9336 }
 0x5d9   :  { %v9339_v27 = vpop.eup %9338 }
 0x5da   :  { %v1430_v28 = vadd.f32 %v9339_v27, %v9337_v26 }
 0x5dc   :  { %v9341_v29 = vpop.eup %9340  ;;  %9348 = vrcp.f32 %v1430_v28 }
 0x5dd   :  { %v9343_v31 = vpop.eup %9342 }
 0x5de   :  { %v1431_v33 = vadd.f32 %v9343_v31, %v9341_v29 }
 0x5e0   :  { %v9345_v35 = vpop.eup %9344  ;;  %9350 = vrcp.f32 %v1431_v33 }
 0x5e1   :  { %v9347_v36 = vpop.eup %9346 }
 0x5e2   :  { %v1432_v37 = vadd.f32 %v9347_v36, %v9345_v35 }
 0x5e4   :  { %9352 = vrcp.f32 %v1432_v37 }
 0x5e6   :  { %v9349_v38 = vpop.eup %9348 }
 0x5e7   :  { %v1436_v39 = vmul.f32 %v9349_v38, %v1430_v28 }
 0x5e9   :  { %v1439_v40 = vsub.f32 2.0, %v1436_v39 }
 0x5ea   :  { %v9351_v41 = vpop.eup %9350 }
 0x5eb   :  { %v1442_v45 = vmul.f32 %v9349_v38, %v1439_v40  ;;  %v1437_v47 = vmul.f32 %v9351_v41, %v1431_v33 }
 0x5ed   :  { %v1445_v49 = vmul.f32 %v9337_v26, %v1442_v45  ;;  %v1552_v50 = vmul.f32 %v9339_v27, %v1442_v45  ;;  %v1440_v51 = vsub.f32 2.0, %v1437_v47 }
 0x5ee   :  { %v9353_v53 = vpop.eup %9352 }
 0x5ef   :  { %8129 = vmatmul.mubr.msk.f32.vlgmr.msra.gmra.mrb[32].mxu0 %vm880_vm12, %v1445_v49  ;;  %8146 = vmatmul.mubr.msk.f32.vlgmr.msra.gmra.mrb[32].mxu1 %vm880_vm12, %v1552_v50  ;;  %v1443_v54 = vmul.f32 %v9351_v41, %v1440_v51  ;;  %v1438_v55 = vmul.f32 %v9353_v53, %v1432_v37 }
 0x5f0   :  { %8131 = vmatprep.mubr.msk.f32.mxu0 %vm9735_vm7, %v9734_v25  ;;  %8148 = vmatprep.mubr.msk.f32.mxu1 %vm9735_vm7, %v9734_v25 }
 0x5f1   :  { %v1446_v56 = vmul.f32 %v9341_v29, %v1443_v54  ;;  %v1553_v57 = vmul.f32 %v9343_v31, %v1443_v54  ;;  %v1441_v58 = vsub.f32 2.0, %v1438_v55  ;;  %9042 = vmatpush3.bf16.msra.mxu0 %v9041_v52 }
 0x5f2   :  { %9043 = vmatprep.subr.bf16.mxu0 %v9733_v21 }
 0x5f3   :  { %8132 = vmatmul.mubr.msk.f32.gmra.mrb[34].mxu0 %vm880_vm12, %v1446_v56  ;;  %8149 = vmatmul.mubr.msk.f32.gmra.mrb[34].mxu1 %vm880_vm12, %v1553_v57  ;;  %v1444_v60 = vmul.f32 %v9353_v53, %v1441_v58 }
 0x5f4   :  { %8134 = vmatprep.mubr.msk.f32.mxu0 %vm9735_vm7, %v9734_v25  ;;  %8151 = vmatprep.mubr.msk.f32.mxu1 %vm9735_vm7, %v9734_v25 }
 0x5f5   :  { %v1447_v61 = vmul.f32 %v9345_v35, %v1444_v60  ;;  %v1554_v62 = vmul.f32 %v9347_v36, %v1444_v60  ;;  %9045 = vmatpush3.bf16.msra.mxu0 %v9044_v4  ;;  %v1807_v60 = vld [vmem:[#allocation12] sm:$0xff] }
 0x5f6   :  { %9052 = vmatprep.subr.bf16.mxu0 %v9733_v21 }
 0x5f7   :  { %8135 = vmatmul.mubr.msk.f32.gmra.mrb[36].mxu0 %vm880_vm12, %v1447_v61  ;;  %8152 = vmatmul.mubr.msk.f32.gmra.mrb[36].mxu1 %vm880_vm12, %v1554_v62  ;;  %v1808_v61 = vld [vmem:[#allocation12 + $0x8] sm:$0xff] }
 0x5f8   :  { %8162 = vmatprep.mubr.msk.f32.mxu0 %vm9735_vm7, %v9734_v25  ;;  %8179 = vmatprep.mubr.msk.f32.mxu1 %vm9735_vm7, %v9734_v25  ;;  %v1907_v62 = vld [vmem:[#allocation15] sm:$0xff]  ;;  %v9047_v63 = vpack.c.bf16 %v1808_v61, %v1807_v60 }
 0x5f9   :  { %v9053_v4 = vpack.c.bf16 %v1908_v3, %v1907_v62 }
 0x5fa   :  { %9048 = vmatpush3.bf16.msra.mxu1 %v9047_v63 }
 0x5fb   :  { %9049 = vmatprep.subr.bf16.mxu1 %v9733_v21 }
 0x6c2   :  { %v1535_v8 = vpop.f32.mrb[32].mxu0  ;;  %v1630_v9 = vpop.f32.mrb[32].mxu1 }
 0x6c3   :  { %v1549_v10 = vmul.f32 %v1535_v8, %v10281_v17  ;;  %v1644_v11 = vmul.f32 %v1630_v9, %v10335_v44  ;;  %v8130_v12 = vpop.f32.mrb[33].mxu0  ;;  %v8147_v13 = vpop.f32.mrb[33].mxu1  ;;  %v1809_v8 = vld [vmem:[#allocation12 + $0x10] sm:$0xff]  ;;  %v1810_v9 = vld [vmem:[#allocation12 + $0x18] sm:$0xff] }
 0x6c4   :  { %v1910_v12 = vld [vmem:[#allocation15 + $0x18] sm:$0xff] }
 0x6c5   :  { %v1647_v14 = vadd.f32 %v1644_v11, %v1549_v10  ;;  %v1909_v10 = vld [vmem:[#allocation15 + $0x10] sm:$0xff]  ;;  %v9050_v11 = vpack.c.bf16 %v1810_v9, %v1809_v8 }
 0x6c6   :  { %v1540_v15 = vpop.f32.mrb[34].mxu0  ;;  %v1635_v16 = vpop.f32.mrb[34].mxu1  ;;  %v9056_v13 = vpack.c.bf16 %v1910_v12, %v1909_v10 }
 0x6c7   :  { %v1550_v18 = vmul.f32 %v1540_v15, %v10287_v19  ;;  %v1645_v20 = vmul.f32 %v1635_v16, %v10337_v46  ;;  %v8133_v23 = vpop.f32.mrb[35].mxu0  ;;  %v8150_v26 = vpop.f32.mrb[35].mxu1  ;;  %8163 = vmatmul.mubr.msk.f32.vlgmr.msra.gmra.mrb[38].mxu0 %vm466_vm9, %v1647_v14  ;;  %9051 = vmatpush3.bf16.msra.mxu1 %v9050_v11 }
 0x6c8   :  { %8165 = vmatprep.mubr.msk.f32.mxu0 %vm9735_vm7, %v9734_v25  ;;  %9054 = vmatpush3.bf16.msra.mxu0 %v9053_v4 }
 0x6c9   :  { %v1648_v27 = vadd.f32 %v1645_v20, %v1550_v18  ;;  %9055 = vmatprep.subr.bf16.mxu0 %v9733_v21  ;;  %9058 = vmatprep.subr.bf16.mxu1 %v9733_v21 }
 0x6ca   :  { %v1545_v17 = vpop.f32.mrb[36].mxu0  ;;  %v1640_v28 = vpop.f32.mrb[36].mxu1 }
 0x6cb   :  { %v1551_v44 = vmul.f32 %v1545_v17, %v10293_v22  ;;  %v1646_v29 = vmul.f32 %v1640_v28, %v10339_v48  ;;  %v8136_v31 = vpop.f32.mrb[37].mxu0  ;;  %v8153_v33 = vpop.f32.mrb[37].mxu1  ;;  %8166 = vmatmul.mubr.msk.f32.gmra.mrb[40].mxu0 %vm466_vm9, %v1648_v27 }
 0x6cc   :  { %8168 = vmatprep.mubr.msk.f32.mxu0 %vm9735_vm7, %v9734_v25  ;;  %9057 = vmatpush3.bf16.msra.mxu0 %v9056_v13  ;;  %v7262_v31 = vld [vmem:[#allocation10] ss:$0 sm:$0xff]  ;;  %v2004_v33 = vld [vmem:[%s11597_s29] sm:$0xff] }
 0x6cd   :  { %v1649_v19 = vadd.f32 %v1646_v29, %v1551_v44  ;;  %9068 = vmatprep.subr.bf16.mxu0 %v9733_v21  ;;  %v7261_v44 = vld [vmem:[%s11564_s13] ss:$0 sm:$0xff] }
 0x6cf   :  { %8169 = vmatmul.mubr.msk.f32.gmra.mrb[42].mxu0 %vm466_vm9, %v1649_v19  ;;  %v2005_v19 = vld [vmem:[%s11597_s29 + $0x8] sm:$0xff] }
 0x6d0   :  { %8196 = vmatprep.mubr.msk.f32.mxu0 %vm9735_vm7, %v9734_v25 }
 0x79a   :  { %v1729_v46 = vpop.f32.mrb[38].mxu0 }
 0x79b   :  { %v10389_v35 = vadd.f32 %v1729_v46, %v10113_v24  ;;  %v8164_v22 = vpop.f32.mrb[39].mxu0 }
 0x79d   :  { %v1748_v48 = vsel %vm466_vm9, %v10389_v35, 0.0 }
 0x79e   :  { %1749 = vadd.xlane.f32.xlu0 %v1748_v48  ;;  %v1734_v36 = vpop.f32.mrb[40].mxu0 }
 0x79f   :  { %v10394_v37 = vadd.f32 %v1734_v36, %v10131_v30  ;;  %v8167_v38 = vpop.f32.mrb[41].mxu0 }
 0x7a0   :  { %v9059_v38 = vpack.c.bf16 %v2005_v19, %v2004_v33 }
 0x7a1   :  { %v1751_v39 = vsel %vm466_vm9, %v10394_v37, 0.0 }
 0x7a2   :  { %1752 = vadd.xlane.f32.xlu1 %v1751_v39  ;;  %v1739_v40 = vpop.f32.mrb[42].mxu0 }
 0x7a3   :  { %v10399_v41 = vadd.f32 %v1739_v40, %v10141_v32  ;;  %v8170_v24 = vpop.f32.mrb[43].mxu0 }
 0x7a5   :  { %v1755_v42 = vsel %vm1754_vm14, %v10399_v41, 0.0 }
 0x7a6   :  { %1756 = vadd.xlane.f32.xlu0 %v1755_v42 }
 0x82b   :  { %v1750_v43 = vpop.xlane.xlu0 %1749 }
 0x82c   :  { %v1759_v45 = vmul.f32 0.03125, %v1750_v43 }
 0x82e   :  { %v1762_v30 = vsub.f32 %v10389_v35, %v1759_v45 }
 0x82f   :  { %v1753_v47 = vpop.xlane.xlu1 %1752 }
 0x830   :  { %v1760_v49 = vmul.f32 0.03125, %v1753_v47  ;;  %v1765_v50 = vmul.f32 %v1762_v30, %v1762_v30  ;;  %v2007_v47 = vld [vmem:[%s11597_s29 + $0x18] sm:$0xff] }
 0x832   :  { %v1763_v51 = vsub.f32 %v10394_v37, %v1760_v49  ;;  %v1768_v52 = vsel %vm466_vm9, %v1765_v50, 0.0  ;;  %v2008_v50 = vld [vmem:[%s11597_s29 + $0x20] sm:$0xff] }
 0x833   :  { %1769 = vadd.xlane.f32.xlu0 %v1768_v52  ;;  %v1757_v53 = vpop.xlane.xlu0 %1756 }
 0x834   :  { %v1761_v32 = vmul.f32 0.03125, %v1757_v53  ;;  %v1766_v54 = vmul.f32 %v1763_v51, %v1763_v51 }
 0x836   :  { %v1764_v55 = vsub.f32 %v10399_v41, %v1761_v32  ;;  %v1771_v56 = vsel %vm466_vm9, %v1766_v54, 0.0  ;;  %v7267_v32 = vld [vmem:[#allocation16] ss:$0 sm:$0xff]  ;;  %v7263_v54 = vld [vmem:[#allocation13] ss:$0 sm:$0xff] }
 0x837   :  { %1772 = vadd.xlane.f32.xlu1 %v1771_v56 }
 0x838   :  { %v1767_v57 = vmul.f32 %v1764_v55, %v1764_v55 }
 0x83a   :  { %v1774_v58 = vsel %vm1754_vm14, %v1767_v57, 0.0 }
 0x83b   :  { %1775 = vadd.xlane.f32.xlu0 %v1774_v58 }
 0x8c0   :  { %v1770_v14 = vpop.xlane.xlu0 %1769 }
 0x8c1   :  { %v1777_v15 = vmul.f32 0.03125, %v1770_v14 }
 0x8c3   :  { %v1780_v16 = vadd.f32 1e-05, %v1777_v15 }
 0x8c4   :  { %v1773_v18 = vpop.xlane.xlu1 %1772 }
 0x8c5   :  { %9354 = vrsqrt.f32 %v1780_v16  ;;  %v1778_v20 = vmul.f32 0.03125, %v1773_v18 }
 0x8c7   :  { %v1781_v23 = vadd.f32 1e-05, %v1778_v20 }
 0x8c8   :  { %v1776_v26 = vpop.xlane.xlu0 %1775 }
 0x8c9   :  { %9356 = vrsqrt.f32 %v1781_v23  ;;  %v1779_v27 = vmul.f32 0.03125, %v1776_v26 }
 0x8cb   :  { %v1782_v17 = vadd.f32 1e-05, %v1779_v27 }
 0x8cd   :  { %9358 = vrsqrt.f32 %v1782_v17 }
 0x8cf   :  { %v9355_v28 = vpop.eup %9354 }
 0x8d0   :  { %v1786_v29 = vmul.f32 %v9355_v28, %v1762_v30  ;;  %v2006_v30 = vld [vmem:[%s11597_s29 + $0x10] sm:$0xff] }
 0x8d1   :  { %v9062_v49 = vpack.c.bf16 %v2007_v47, %v2006_v30  ;;  %v7275_v28 = vld [vmem:[#allocation18] ss:$0 sm:$0xff] }
 0x8d2   :  { %v1795_v46 = vmul.f32 %v7261_v44, %v1786_v29 }
 0x8d3   :  { %v9357_v22 = vpop.eup %9356 }
 0x8d4   :  { %v1804_v48 = vadd.f32 %v7262_v31, %v1795_v46  ;;  %v1787_v36 = vmul.f32 %v9357_v22, %v1763_v51  ;;  %v2009_v51 = vld [vmem:[%s11597_s29 + $0x28] sm:$0x3] }
 0x8d5   :  { %v9065_v52 = vpack.c.bf16 %v2009_v51, %v2008_v50 }
 0x8d6   :  { %8180 = vmatmul.mubr.msk.f32.vlgmr.msra.gmra.mrb[38].mxu1 %vm466_vm9, %v1804_v48  ;;  %8197 = vmatmul.mubr.msk.f32.vlgmr.msra.gmra.mrb[44].mxu0 %vm466_vm9, %v1804_v48  ;;  %v1796_v39 = vmul.f32 %v7261_v44, %v1787_v36 }
 0x8d7   :  { %v9359_v40 = vpop.eup %9358  ;;  %8182 = vmatprep.mubr.msk.f32.mxu1 %vm9735_vm7, %v9734_v25  ;;  %8199 = vmatprep.mubr.msk.f32.mxu0 %vm9735_vm7, %v9734_v25 }
 0x8d8   :  { %v1805_v24 = vadd.f32 %v7262_v31, %v1796_v39  ;;  %v1788_v42 = vmul.f32 %v9359_v40, %v1764_v55  ;;  %9060 = vmatpush3.bf16.msra.mxu1 %v9059_v38 }
 0x8d9   :  { %9061 = vmatprep.subr.bf16.mxu1 %v9733_v21 }
 0x8da   :  { %8183 = vmatmul.mubr.msk.f32.gmra.mrb[40].mxu1 %vm466_vm9, %v1805_v24  ;;  %8200 = vmatmul.mubr.msk.f32.gmra.mrb[46].mxu0 %vm466_vm9, %v1805_v24  ;;  %v1797_v43 = vmul.f32 %v7261_v44, %v1788_v42 }
 0x8db   :  { %8185 = vmatprep.mubr.msk.f32.mxu1 %vm9735_vm7, %v9734_v25  ;;  %8202 = vmatprep.mubr.msk.f32.mxu0 %vm9735_vm7, %v9734_v25 }
 0x8dc   :  { %v1806_v45 = vadd.f32 %v7262_v31, %v1797_v43  ;;  %9063 = vmatpush3.bf16.msra.mxu1 %v9062_v49 }
 0x8dd   :  { %9064 = vmatprep.subr.bf16.mxu1 %v9733_v21 }
 0x8de   :  { %8186 = vmatmul.mubr.msk.f32.gmra.mrb[42].mxu1 %vm466_vm9, %v1806_v45  ;;  %8203 = vmatmul.mubr.msk.f32.gmra.mrb[48].mxu0 %vm466_vm9, %v1806_v45 }
 0x8df   :  { %8217 = vmatprep.mubr.msk.f32.mxu1 %vm9735_vm7, %v9734_v25  ;;  %8234 = vmatprep.mubr.msk.f32.mxu0 %vm9735_vm7, %v9734_v25 }
 0x8e0   :  { %9067 = vmatpush3.bf16.msk.msra.mxu1 %vm10455_vm0, %v9065_v52 }
 0x8e1   :  { %9074 = vmatprep.subr.bf16.mxu1 %v9733_v21 }
 0x9a9   :  { %v1893_v55 = vpop.f32.mrb[38].mxu1  ;;  %v1984_v56 = vpop.f32.mrb[44].mxu0 }
 0x9aa   :  { %v1985_v57 = vadd.f32 %v7267_v32, %v1984_v56  ;;  %v8181_v58 = vpop.f32.mrb[39].mxu1  ;;  %v8198_v60 = vpop.f32.mrb[45].mxu0  ;;  %v1894_v61 = vadd.f32 %v7263_v54, %v1893_v55 }
 0x9ab   :  { %v7279_v58 = vld [vmem:[%s11558_s7 + $0x28] sm:$0xff]  ;;  %v7285_v60 = vld [vmem:[%s11559_s8 + $0x20] sm:$0xff] }
 0x9ac   :  { %v1998_v62 = vmax.f32 %v1985_v57, 0.0  ;;  %v7278_v57 = vld [vmem:[%s11558_s7 + $0x20] sm:$0xff] }
 0x9ad   :  { %v1898_v63 = vpop.f32.mrb[40].mxu1  ;;  %v1989_v3 = vpop.f32.mrb[46].mxu0 }
 0x9ae   :  { %v2001_v4 = vmul.f32 %v1998_v62, %v1894_v61  ;;  %v1990_v8 = vadd.f32 %v7267_v32, %v1989_v3  ;;  %v8184_v9 = vpop.f32.mrb[41].mxu1  ;;  %v8201_v10 = vpop.f32.mrb[47].mxu0  ;;  %v1899_v11 = vadd.f32 %v7263_v54, %v1898_v63  ;;  %v9069_v61 = vpack.c.bf16 %v7279_v58, %v7278_v57  ;;  %v7286_v62 = vld [vmem:[%s11559_s8 + $0x28] sm:$0xff]  ;;  %v7280_v3 = vld [vmem:[%s11558_s7 + $0x30] sm:$0xff] }
 0x9af   :  { %v9075_v63 = vpack.c.bf16 %v7286_v62, %v7285_v60  ;;  %v7288_v10 = vld [vmem:[%s11559_s8 + $0x38] sm:$0xff]  ;;  %v2443_v62 = vld [vmem:[#allocation7 + $0x8] sm:$0xff] }
 0x9b0   :  { %v1999_v12 = vmax.f32 %v1990_v8, 0.0  ;;  %8218 = vmatmul.mubr.msk.f32.vlgmr.msra.gmra.mrb[44].mxu1 %vm2010_vm2, %v2001_v4  ;;  %9070 = vmatpush3.bf16.msra.mxu0 %v9069_v61  ;;  %v7281_v4 = vld [vmem:[%s11558_s7 + $0x38] sm:$0xff]  ;;  %v7287_v8 = vld [vmem:[%s11559_s8 + $0x30] sm:$0xff] }
 0x9b1   :  { %v1903_v13 = vpop.f32.mrb[42].mxu1  ;;  %v1994_v14 = vpop.f32.mrb[48].mxu0  ;;  %8220 = vmatprep.mubr.msk.f32.mxu1 %vm9735_vm7, %v9734_v25  ;;  %9076 = vmatpush3.bf16.msra.mxu1 %v9075_v63  ;;  %v9072_v9 = vpack.c.bf16 %v7281_v4, %v7280_v3 }
 0x9b2   :  { %v2002_v15 = vmul.f32 %v1999_v12, %v1899_v11  ;;  %v1995_v16 = vadd.f32 %v7267_v32, %v1994_v14  ;;  %v8187_v18 = vpop.f32.mrb[43].mxu1  ;;  %v8204_v20 = vpop.f32.mrb[49].mxu0  ;;  %v1904_v23 = vadd.f32 %v7263_v54, %v1903_v13  ;;  %9071 = vmatprep.subr.bf16.mxu0 %v9733_v21  ;;  %9077 = vmatprep.subr.bf16.mxu1 %v9733_v21 }
 0x9b3   :  { %v9078_v11 = vpack.c.bf16 %v7288_v10, %v7287_v8 }
 0x9b4   :  { %v2000_v26 = vmax.f32 %v1995_v16, 0.0  ;;  %8221 = vmatmul.mubr.msk.f32.gmra.mrb[46].mxu1 %vm2010_vm2, %v2002_v15  ;;  %9073 = vmatpush3.bf16.msra.mxu0 %v9072_v9 }
 0x9b5   :  { %8223 = vmatprep.mubr.msk.f32.mxu1 %vm9735_vm7, %v9734_v25  ;;  %9079 = vmatpush3.bf16.msra.mxu1 %v9078_v11 }
 0x9b6   :  { %v2003_v27 = vmul.f32 %v2000_v26, %v1904_v23  ;;  %9080 = vmatprep.subr.bf16.mxu0 %v9733_v21  ;;  %9086 = vmatprep.subr.bf16.mxu1 %v9733_v21 }
 0x9b8   :  { %8224 = vmatmul.mubr.msk.f32.gmra.mrb[48].mxu1 %vm2010_vm2, %v2003_v27 }
 0x9b9   :  { %8251 = vmatprep.mubr.msk.f32.mxu1 %vm9735_vm7, %v9734_v25 }
 0xa83   :  { %v2090_v17 = vpop.f32.mrb[44].mxu1 }
 0xa84   :  { %v2104_v44 = vadd.f32 %v2090_v17, %v10389_v35  ;;  %v8219_v29 = vpop.f32.mrb[45].mxu1  ;;  %v7276_v17 = vld [vmem:[#allocation4 + $0x1] ss:$0 sm:$0xff] }
 0xa85   :  { %v7292_v29 = vld [vmem:[%s11560_s9 + $0x20] sm:$0xff] }
 0xa86   :  { %v10472_v31 = vadd.f32 %v7275_v28, %v2104_v44  ;;  %v7277_v44 = vld [vmem:[#allocation6 + $0x1] ss:$0 sm:$0xff] }
 0xa87   :  { %v2095_v33 = vpop.f32.mrb[46].mxu1 }
 0xa88   :  { %v2105_v19 = vadd.f32 %v2095_v33, %v10394_v37  ;;  %v8222_v46 = vpop.f32.mrb[47].mxu1  ;;  %v2121_v22 = vsel %vm466_vm9, %v10472_v31, 0.0  ;;  %v7293_v33 = vld [vmem:[%s11560_s9 + $0x28] sm:$0xff] }
 0xa89   :  { %2122 = vadd.xlane.f32.xlu1 %v2121_v22 }
 0xa8a   :  { %v10477_v48 = vadd.f32 %v7275_v28, %v2105_v19 }
 0xa8b   :  { %v2100_v36 = vpop.f32.mrb[48].mxu1 }
 0xa8c   :  { %v2106_v38 = vadd.f32 %v2100_v36, %v10399_v41  ;;  %v8225_v39 = vpop.f32.mrb[49].mxu1  ;;  %v2124_v35 = vsel %vm466_vm9, %v10477_v48, 0.0 }
 0xa8d   :  { %2125 = vadd.xlane.f32.xlu0 %v2124_v35  ;;  %v7294_v39 = vld [vmem:[%s11560_s9 + $0x30] sm:$0xff]  ;;  %v7295_v35 = vld [vmem:[%s11560_s9 + $0x38] sm:$0xff] }
 0xa8e   :  { %v10482_v40 = vadd.f32 %v7275_v28, %v2106_v38  ;;  %v9081_v38 = vpack.c.bf16 %v7293_v33, %v7292_v29  ;;  %v10659_v33 = vld [vmem:[%s11594_s4 + $0x18] sm:$0xff] }
 0xa90   :  { %v2127_v37 = vsel %vm1754_vm14, %v10482_v40, 0.0 }
 0xa91   :  { %2128 = vadd.xlane.f32.xlu1 %v2127_v37 }
 0xb16   :  { %v2123_v24 = vpop.xlane.xlu1 %2122 }
 0xb17   :  { %v2130_v42 = vmul.f32 0.03125, %v2123_v24 }
 0xb19   :  { %v2133_v43 = vsub.f32 %v10472_v31, %v2130_v42 }
 0xb1a   :  { %v2126_v45 = vpop.xlane.xlu0 %2125 }
 0xb1b   :  { %v2131_v30 = vmul.f32 0.03125, %v2126_v45  ;;  %v2136_v47 = vmul.f32 %v2133_v43, %v2133_v43  ;;  %v9084_v45 = vpack.c.bf16 %v7295_v35, %v7294_v39  ;;  %v10685_v39 = vld [vmem:[%s11594_s4 + $0x28] sm:$0xf] }
 0xb1d   :  { %v2134_v41 = vsub.f32 %v10477_v48, %v2131_v30  ;;  %v2139_v49 = vsel %vm466_vm9, %v2136_v47, 0.0 }
 0xb1e   :  { %2140 = vadd.xlane.f32.xlu0 %v2139_v49  ;;  %v2129_v50 = vpop.xlane.xlu1 %2128 }
 0xb1f   :  { %v2132_v51 = vmul.f32 0.03125, %v2129_v50  ;;  %v2137_v52 = vmul.f32 %v2134_v41, %v2134_v41 }
 0xb21   :  { %v2135_v32 = vsub.f32 %v10482_v40, %v2132_v51  ;;  %v2142_v54 = vsel %vm466_vm9, %v2137_v52, 0.0 }
 0xb22   :  { %2143 = vadd.xlane.f32.xlu1 %v2142_v54 }
 0xb23   :  { %v2138_v55 = vmul.f32 %v2135_v32, %v2135_v32 }
 0xb25   :  { %v2145_v56 = vsel %vm1754_vm14, %v2138_v55, 0.0 }
 0xb26   :  { %2146 = vadd.xlane.f32.xlu0 %v2145_v56 }
 0xbab   :  { %v2141_v12 = vpop.xlane.xlu0 %2140 }
 0xbac   :  { %v2148_v13 = vmul.f32 0.03125, %v2141_v12  ;;  %v2521_v12 = vld [vmem:[#allocation9 + $0x8] sm:$0xff] }
 0xbae   :  { %v2151_v14 = vadd.f32 1e-05, %v2148_v13 }
 0xbaf   :  { %v2144_v15 = vpop.xlane.xlu1 %2143 }
 0xbb0   :  { %9360 = vrsqrt.f32 %v2151_v14  ;;  %v2149_v16 = vmul.f32 0.03125, %v2144_v15  ;;  %v10582_v15 = vld [vmem:[%s11594_s4] sm:$0xff] }
 0xbb2   :  { %v2152_v18 = vadd.f32 1e-05, %v2149_v16 }
 0xbb3   :  { %v2147_v20 = vpop.xlane.xlu0 %2146 }
 0xbb4   :  { %9362 = vrsqrt.f32 %v2152_v18  ;;  %v2150_v23 = vmul.f32 0.03125, %v2147_v20 }
 0xbb6   :  { %v2153_v26 = vadd.f32 1e-05, %v2150_v23 }
 0xbb8   :  { %9364 = vrsqrt.f32 %v2153_v26 }
 0xbba   :  { %v9361_v27 = vpop.eup %9360 }
 0xbbb   :  { %v2157_v28 = vmul.f32 %v9361_v27, %v2133_v43 }
 0xbbd   :  { %v2166_v19 = vmul.f32 %v7276_v17, %v2157_v28 }
 0xbbe   :  { %v9363_v46 = vpop.eup %9362 }
 0xbbf   :  { %v2175_v22 = vadd.f32 %v7277_v44, %v2166_v19  ;;  %v2158_v36 = vmul.f32 %v9363_v46, %v2134_v41 }
 0xbc1   :  { %8235 = vmatmul.mubr.msk.f32.vlgmr.msra.gmra.mrb[50].mxu0 %vm466_vm9, %v2175_v22  ;;  %8252 = vmatmul.mubr.msk.f32.vlgmr.msra.gmra.mrb[50].mxu1 %vm466_vm9, %v2175_v22  ;;  %v2167_v37 = vmul.f32 %v7276_v17, %v2158_v36 }
 0xbc2   :  { %v9365_v24 = vpop.eup %9364  ;;  %8237 = vmatprep.mubr.msk.f32.mxu0 %vm9735_vm7, %v9734_v25  ;;  %8254 = vmatprep.mubr.msk.f32.mxu1 %vm9735_vm7, %v9734_v25 }
 0xbc3   :  { %v2176_v42 = vadd.f32 %v7277_v44, %v2167_v37  ;;  %9082 = vmatpush3.bf16.msra.mxu0 %v9081_v38  ;;  %v2159_v43 = vmul.f32 %v9365_v24, %v2135_v32 }
 0xbc4   :  { %9083 = vmatprep.subr.bf16.mxu0 %v9733_v21 }
 0xbc5   :  { %8238 = vmatmul.mubr.msk.f32.gmra.mrb[52].mxu0 %vm466_vm9, %v2176_v42  ;;  %8255 = vmatmul.mubr.msk.f32.gmra.mrb[52].mxu1 %vm466_vm9, %v2176_v42  ;;  %v2168_v30 = vmul.f32 %v7276_v17, %v2159_v43 }
 0xbc6   :  { %8240 = vmatprep.mubr.msk.f32.mxu0 %vm9735_vm7, %v9734_v25  ;;  %8257 = vmatprep.mubr.msk.f32.mxu1 %vm9735_vm7, %v9734_v25 }
 0xbc7   :  { %v2177_v47 = vadd.f32 %v7277_v44, %v2168_v30  ;;  %9085 = vmatpush3.bf16.msra.mxu0 %v9084_v45 }
 0xbc8   :  { %8295 = vmatprep.subr.mxu0 %v9734_v25 }
 0xbc9   :  { %8241 = vmatmul.mubr.msk.f32.gmra.mrb[54].mxu0 %vm466_vm9, %v2177_v47  ;;  %8258 = vmatmul.mubr.msk.f32.gmra.mrb[54].mxu1 %vm466_vm9, %v2177_v47 }
 0xbca   :  { %8268 = vmatprep.mubr.msk.f32.mxu0 %vm9735_vm7, %v9734_v25  ;;  %8283 = vmatprep.mubr.msk.f32.mxu1 %vm9735_vm7, %v9734_v25 }
 0xbcd   :  { %8269 = vmatmul.mubr.msk.f32.vlgmr.msra.gmra.mrb[56].mxu0 %vm466_vm9, %v2175_v22  ;;  %v10674_v22 = vld [vmem:[%s11594_s4 + $0x20] sm:$0xff] }
 0xbce   :  { %8271 = vmatprep.mubr.msk.f32.mxu0 %vm9735_vm7, %v9734_v25 }
 0xbd1   :  { %8272 = vmatmul.mubr.msk.f32.gmra.mrb[58].mxu0 %vm466_vm9, %v2176_v42 }
 0xbd2   :  { %8274 = vmatprep.mubr.msk.f32.mxu0 %vm9735_vm7, %v9734_v25 }
 0xbd5   :  { %8275 = vmatmul.mubr.msk.f32.gmra.mrb[60].mxu0 %vm466_vm9, %v2177_v47 }
 0xbd6   :  { %8297 = vmatprep.mubr.msk.f32.mxu0 %vm9735_vm7, %v9734_v25 }
 0xc94   :  { %v10561_v41 = vpop.f32.mrb[50].mxu0  ;;  %v2343_v49 = vpop.f32.mrb[50].mxu1 }
 0xc95   :  { %v8236_v50 = vpop.f32.mrb[51].mxu0  ;;  %v8253_v51 = vpop.f32.mrb[51].mxu1 }
 0xc98   :  { %v10563_v52 = vpop.f32.mrb[52].mxu0  ;;  %v2348_v32 = vpop.f32.mrb[52].mxu1 }
 0xc99   :  { %v9087_v54 = vpack.c.bf16 %v2348_v32, %v2343_v49  ;;  %v8239_v55 = vpop.f32.mrb[53].mxu0  ;;  %v8256_v56 = vpop.f32.mrb[53].mxu1 }
 0xc9b   :  { %9088 = vmatpush3.bf16.msra.mxu1 %v9087_v54 }
 0xc9c   :  { %v10565_v57 = vpop.f32.mrb[54].mxu0  ;;  %v2353_v58 = vpop.f32.mrb[54].mxu1  ;;  %8281 = vmatprep.subr.mxu1 %v9734_v25 }
 0xc9d   :  { %v8242_v60 = vpop.f32.mrb[55].mxu0  ;;  %v8259_v61 = vpop.f32.mrb[55].mxu1 }
 0xc9f   :  { %8282 = vmatpush3.msk.msra.mxu1 %vm729_vm4, %v2353_v58 }
 0xca0   :  { %v2428_v63 = vpop.f32.mrb[56].mxu0  ;;  %8284 = vmatmul.mubr.msk.f32.vlgmr.msra.gmra.mrb[56].mxu1 %vm725_vm11, %v2443_v62  ;;  %9089 = vmatprep.subr.bf16.mxu1 %v9733_v21 }
 0xca1   :  { %v8270_v3 = vpop.f32.mrb[57].mxu0  ;;  %8292 = vmatprep.mubr.msk.f32.mxu1 %vm9735_vm7, %v9734_v25 }
 0xca4   :  { %v2433_v4 = vpop.f32.mrb[58].mxu0 }
 0xca5   :  { %v9090_v8 = vpack.c.bf16 %v2433_v4, %v2428_v63  ;;  %v8273_v9 = vpop.f32.mrb[59].mxu0 }
 0xca7   :  { %9091 = vmatpush3.bf16.msra.mxu1 %v9090_v8 }
 0xca8   :  { %v2438_v10 = vpop.f32.mrb[60].mxu0  ;;  %8290 = vmatprep.subr.mxu1 %v9734_v25 }
 0xca9   :  { %v8276_v11 = vpop.f32.mrb[61].mxu0 }
 0xcab   :  { %8291 = vmatpush3.msk.msra.mxu1 %vm729_vm4, %v2438_v10 }
 0xcac   :  { %8293 = vmatmul.mubr.msk.f32.vlgmr.msra.gmra.mrb[58].mxu1 %vm725_vm11, %v2521_v12  ;;  %8306 = vmatprep.subr.mxu1 %v9734_v25 }
 0xcad   :  { %8308 = vmatprep.mubr.msk.f32.mxu1 %vm9735_vm7, %v9734_v25 }
 0xd73   :  { %v2516_v13 = vpop.f32.mrb[56].mxu1 }
 0xd74   :  { %8296 = vmatpush3.msra.mxu0 %v2516_v13  ;;  %v8285_v14 = vpop.f32.mrb[57].mxu1 }
 0xd75   :  { %8298 = vmatmul.mubr.msk.f32.vlgmr.msra.gmra.mrb[62].mxu0 %vm880_vm12, %v10582_v15  ;;  %9092 = vmatprep.subr.bf16.mxu0 %v9733_v21 }
 0xd76   :  { %8300 = vmatprep.mubr.msk.f32.mxu0 %vm9735_vm7, %v9734_v25  ;;  %9094 = vmatpush3.bf16.msra.mxu0 %v10190_v59 }
 0xd77   :  { %9095 = vmatprep.subr.bf16.mxu0 %v9733_v21 }
 0xd79   :  { %8301 = vmatmul.mubr.msk.f32.gmra.mrb[64].mxu0 %vm880_vm12, %v10205_v0  ;;  %v10610_v0 = vld [vmem:[%s11594_s4 + $0x8] sm:$0xff] }
 0xd7a   :  { %8303 = vmatprep.mubr.msk.f32.mxu0 %vm9735_vm7, %v9734_v25  ;;  %9097 = vmatpush3.bf16.msra.mxu0 %v10208_v1 }
 0xd7b   :  { %8345 = vmatprep.subr.mxu0 %v9734_v25 }
 0xd7d   :  { %8304 = vmatmul.mubr.msk.f32.gmra.mrb[66].mxu0 %vm880_vm12, %v10218_v2  ;;  %v10619_v2 = vld [vmem:[%s11594_s4 + $0x10] sm:$0xf] }
 0xd7e   :  { %8325 = vmatprep.mubr.msk.f32.mxu0 %vm9735_vm7, %v9734_v25 }
 0xd7f   :  { %v2594_v16 = vpop.f32.mrb[58].mxu1 }
 0xd80   :  { %v8294_v18 = vpop.f32.mrb[59].mxu1  ;;  %8307 = vmatpush3.msra.mxu1 %v2594_v16 }
 0xd81   :  { %8309 = vmatmul.mubr.msk.f32.vlgmr.msra.gmra.mrb[60].mxu1 %vm880_vm12, %v10582_v15  ;;  %8334 = vmatprep.subr.mxu1 %v9734_v25 }
 0xd82   :  { %8335 = vmatpush3.msra.mxu1 %v2516_v13  ;;  %8311 = vmatprep.mubr.msk.f32.mxu1 %vm9735_vm7, %v9734_v25 }
 0xd83   :  { %9098 = vmatprep.subr.bf16.mxu1 %v9733_v21 }
 0xd85   :  { %8312 = vmatmul.mubr.msk.f32.gmra.mrb[62].mxu1 %vm880_vm12, %v10610_v0 }
 0xd86   :  { %8314 = vmatprep.mubr.msk.f32.mxu1 %vm9735_vm7, %v9734_v25 }
 0xd89   :  { %8315 = vmatmul.mubr.msk.f32.gmra.mrb[64].mxu1 %vm880_vm12, %v10619_v2 }
 0xd8a   :  { %8336 = vmatprep.mubr.msk.f32.mxu1 %vm9735_vm7, %v9734_v25 }
 0xd8d   :  { %8337 = vmatmul.mubr.msk.f32.vlgmr.msra.gmra.mrb[66].mxu1 %vm880_vm12, %v10242_v5 }
 0xd8e   :  { %8339 = vmatprep.mubr.msk.f32.mxu1 %vm9735_vm7, %v9734_v25  ;;  %9100 = vmatpush3.bf16.msra.mxu1 %v10190_v59 }
 0xd8f   :  { %9101 = vmatprep.subr.bf16.mxu1 %v9733_v21 }
 0xd91   :  { %8340 = vmatmul.mubr.msk.f32.gmra.mrb[68].mxu1 %vm880_vm12, %v10251_v6 }
 0xd92   :  { %8342 = vmatprep.mubr.msk.f32.mxu1 %vm9735_vm7, %v9734_v25  ;;  %9103 = vmatpush3.bf16.msra.mxu1 %v10208_v1 }
 0xd93   :  { %9112 = vmatprep.subr.bf16.mxu1 %v9733_v21 }
 0xd95   :  { %8343 = vmatmul.mubr.msk.f32.gmra.mrb[70].mxu1 %vm880_vm12, %v10262_v7 }
 0xd96   :  { %8364 = vmatprep.mubr.msk.f32.mxu1 %vm9735_vm7, %v9734_v25 }
 0xe48   :  { %v2664_v5 = vpop.f32.mrb[62].mxu0 }
 0xe49   :  { %v2758_v20 = vmul.f32 %v2664_v5, %v10561_v41  ;;  %v8299_v23 = vpop.f32.mrb[63].mxu0 }
 0xe4b   :  { %8326 = vmatmul.mubr.msk.f32.vlgmr.msra.gmra.mrb[68].mxu0 %vm466_vm9, %v2758_v20 }
 0xe4c   :  { %8346 = vmatpush3.msra.mxu0 %v2594_v16  ;;  %v2669_v6 = vpop.f32.mrb[64].mxu0  ;;  %8328 = vmatprep.mubr.msk.f32.mxu0 %vm9735_vm7, %v9734_v25 }
 0xe4d   :  { %v2759_v26 = vmul.f32 %v2669_v6, %v10563_v52  ;;  %v8302_v27 = vpop.f32.mrb[65].mxu0  ;;  %9104 = vmatprep.subr.bf16.mxu0 %v9733_v21 }
 0xe4f   :  { %8329 = vmatmul.mubr.msk.f32.gmra.mrb[70].mxu0 %vm466_vm9, %v2759_v26 }
 0xe50   :  { %v2674_v7 = vpop.f32.mrb[66].mxu0  ;;  %8331 = vmatprep.mubr.msk.f32.mxu0 %vm9735_vm7, %v9734_v25 }
 0xe51   :  { %v2760_v17 = vmul.f32 %v2674_v7, %v10565_v57  ;;  %v8305_v28 = vpop.f32.mrb[67].mxu0 }
 0xe53   :  { %8332 = vmatmul.mubr.msk.f32.gmra.mrb[72].mxu0 %vm466_vm9, %v2760_v17 }
 0xe54   :  { %v10652_v44 = vpop.f32.mrb[60].mxu1  ;;  %8347 = vmatprep.mubr.msk.f32.mxu0 %vm9735_vm7, %v9734_v25 }
 0xe55   :  { %v8310_v29 = vpop.f32.mrb[61].mxu1 }
 0xe57   :  { %8348 = vmatmul.mubr.msk.f32.vlgmr.msra.gmra.mrb[74].mxu0 %vm880_vm12, %v10659_v33 }
 0xe58   :  { %v10663_v19 = vpop.f32.mrb[62].mxu1  ;;  %9107 = vmatpush3.bf16.xpose.msk.msra.mxu0 %vm10315_vm13, %v10190_v59  ;;  %8350 = vmatprep.mubr.msk.f32.mxu0 %vm9735_vm7, %v9734_v25 }
 0xe59   :  { %v8313_v46 = vpop.f32.mrb[63].mxu1  ;;  %9108 = vmatprep.subr.bf16.mxu0 %v9733_v21 }
 0xe5b   :  { %8351 = vmatmul.mubr.msk.f32.gmra.mrb[76].mxu0 %vm880_vm12, %v10674_v22 }
 0xe5c   :  { %v10678_v36 = vpop.f32.mrb[64].mxu1  ;;  %8353 = vmatprep.mubr.msk.f32.mxu0 %vm9735_vm7, %v9734_v25 }
 0xe5d   :  { %v8316_v38 = vpop.f32.mrb[65].mxu1 }
 0xe5f   :  { %8354 = vmatmul.mubr.msk.f32.gmra.mrb[78].mxu0 %vm880_vm12, %v10685_v39 }
 0xe60   :  { %v2919_v35 = vpop.f32.mrb[66].mxu1  ;;  %9111 = vmatpush3.bf16.xpose.msk.msra.mxu0 %vm10315_vm13, %v10208_v1  ;;  %8381 = vmatprep.mubr.msk.f32.mxu0 %vm9735_vm7, %v9734_v25 }
 0xe61   :  { %v3013_v37 = vmul.f32 %v2919_v35, %v10561_v41  ;;  %v8338_v24 = vpop.f32.mrb[67].mxu1  ;;  %9120 = vmatprep.subr.bf16.mxu0 %v9733_v21 }
 0xe63   :  { %8365 = vmatmul.mubr.msk.f32.vlgmr.msra.gmra.mrb[72].mxu1 %vm466_vm9, %v3013_v37 }
 0xe64   :  { %v2924_v42 = vpop.f32.mrb[68].mxu1  ;;  %8367 = vmatprep.mubr.msk.f32.mxu1 %vm9735_vm7, %v9734_v25  ;;  %9115 = vmatpush3.bf16.xpose.msk.msra.mxu1 %vm10315_vm13, %v10190_v59 }
 0xe65   :  { %v3014_v43 = vmul.f32 %v2924_v42, %v10563_v52  ;;  %v8341_v45 = vpop.f32.mrb[69].mxu1  ;;  %9116 = vmatprep.subr.bf16.mxu1 %v9733_v21 }
 0xe67   :  { %8368 = vmatmul.mubr.msk.f32.gmra.mrb[74].mxu1 %vm466_vm9, %v3014_v43 }
 0xe68   :  { %v2929_v30 = vpop.f32.mrb[70].mxu1  ;;  %8370 = vmatprep.mubr.msk.f32.mxu1 %vm9735_vm7, %v9734_v25 }
 0xe69   :  { %v3015_v47 = vmul.f32 %v2929_v30, %v10565_v57  ;;  %v8344_v41 = vpop.f32.mrb[71].mxu1 }
 0xe6b   :  { %8371 = vmatmul.mubr.msk.f32.gmra.mrb[76].mxu1 %vm466_vm9, %v3015_v47 }
 0xe6c   :  { %9119 = vmatpush3.bf16.xpose.msk.msra.mxu1 %vm10315_vm13, %v10208_v1  ;;  %8398 = vmatprep.mubr.msk.f32.mxu1 %vm9735_vm7, %v9734_v25 }
 0xe6d   :  { %9126 = vmatprep.subr.bf16.mxu1 %v9733_v21 }
 0xf1e   :  { %v2836_v49 = vpop.f32.mrb[68].mxu0 }
 0xf1f   :  { %v8327_v50 = vpop.f32.mrb[69].mxu0  ;;  %v2850_v63 = vmul.f32 0.5, %v2836_v49 }
 0xf22   :  { %v2841_v51 = vpop.f32.mrb[70].mxu0 }
 0xf23   :  { %v8330_v52 = vpop.f32.mrb[71].mxu0  ;;  %v2851_v10 = vmul.f32 0.5, %v2841_v51 }
 0xf26   :  { %v2846_v32 = vpop.f32.mrb[72].mxu0 }
 0xf27   :  { %v8333_v54 = vpop.f32.mrb[73].mxu0  ;;  %v2852_v20 = vmul.f32 0.5, %v2846_v32 }
 0xf2a   :  { %v10715_v55 = vpop.f32.mrb[74].mxu0 }
 0xf2b   :  { %v8349_v56 = vpop.f32.mrb[75].mxu0 }
 0xf2c   :  { %v7335_v56 = vld [vmem:[%s11563_s12 + $0x20] sm:$0xff] }
 0xf2e   :  { %v10717_v57 = vpop.f32.mrb[76].mxu0 }
 0xf2f   :  { %v8352_v58 = vpop.f32.mrb[77].mxu0 }
 0xf30   :  { %v7336_v58 = vld [vmem:[%s11563_s12 + $0x28] sm:$0xff] }
 0xf32   :  { %v10719_v60 = vpop.f32.mrb[78].mxu0 }
 0xf33   :  { %v8355_v61 = vpop.f32.mrb[79].mxu0 }
 0xf36   :  { %v3091_v62 = vpop.f32.mrb[72].mxu1 }
 0xf37   :  { %v3105_v3 = vmul.f32 0.5, %v3091_v62  ;;  %v8366_v4 = vpop.f32.mrb[73].mxu1 }
 0xf39   :  { %v3108_v8 = vmax.f32 %v2850_v63, %v3105_v3 }
 0xf3a   :  { %v3096_v9 = vpop.f32.mrb[74].mxu1 }
 0xf3b   :  { %v3111_v11 = vsub.f32 %v2850_v63, %v3108_v8  ;;  %v3120_v12 = vsub.f32 %v3105_v3, %v3108_v8  ;;  %v3106_v13 = vmul.f32 0.5, %v3096_v9  ;;  %v8369_v14 = vpop.f32.mrb[75].mxu1  ;;  %v9121_v8 = vpack.c.bf16 %v7336_v58, %v7335_v56 }
 0xf3d   :  { %v3114_v16 = vmul.f32 1.442695, %v3111_v11  ;;  %v3123_v18 = vmul.f32 1.442695, %v3120_v12  ;;  %v3109_v5 = vmax.f32 %v2851_v10, %v3106_v13 }
 0xf3e   :  { %v3101_v23 = vpop.f32.mrb[76].mxu1 }
 0xf3f   :  { %9366 = vpow2.f32 %v3114_v16  ;;  %v3112_v6 = vsub.f32 %v2851_v10, %v3109_v5  ;;  %v3121_v26 = vsub.f32 %v3106_v13, %v3109_v5  ;;  %v3107_v27 = vmul.f32 0.5, %v3101_v23  ;;  %v8372_v7 = vpop.f32.mrb[77].mxu1  ;;  %v7338_v23 = vld [vmem:[%s11563_s12 + $0x38] sm:$0xff] }
 0xf40   :  { %9368 = vpow2.f32 %v3123_v18 }
 0xf41   :  { %v3116_v17 = vmul.f32 1.442695, %v3112_v6  ;;  %v3125_v28 = vmul.f32 1.442695, %v3121_v26  ;;  %v3110_v29 = vmax.f32 %v2852_v20, %v3107_v27 }
 0xf43   :  { %9370 = vpow2.f32 %v3116_v17  ;;  %v3113_v46 = vsub.f32 %v2852_v20, %v3110_v29  ;;  %v3122_v38 = vsub.f32 %v3107_v27, %v3110_v29  ;;  %v7337_v20 = vld [vmem:[%s11563_s12 + $0x30] sm:$0xff] }
 0xf44   :  { %9372 = vpow2.f32 %v3125_v28  ;;  %v9124_v6 = vpack.c.bf16 %v7338_v23, %v7337_v20  ;;  %v3497_v20 = vld [vmem:[#allocation12 + $0x28] sm:$0xff] }
 0xf45   :  { %v3118_v35 = vmul.f32 1.442695, %v3113_v46  ;;  %v3127_v37 = vmul.f32 1.442695, %v3122_v38  ;;  %v3598_v23 = vld [vmem:[#allocation15 + $0x20] sm:$0xff] }
 0xf47   :  { %9374 = vpow2.f32 %v3118_v35 }
 0xf48   :  { %9376 = vpow2.f32 %v3127_v37 }
 0xf49   :  { %v9367_v24 = vpop.eup %9366 }
 0xf4a   :  { %v9369_v42 = vpop.eup %9368 }
 0xf4b   :  { %v3129_v43 = vadd.f32 %v9369_v42, %v9367_v24 }
 0xf4d   :  { %v9371_v45 = vpop.eup %9370  ;;  %9378 = vrcp.f32 %v3129_v43 }
 0xf4e   :  { %v9373_v30 = vpop.eup %9372 }
 0xf4f   :  { %v3130_v47 = vadd.f32 %v9373_v30, %v9371_v45 }
 0xf51   :  { %v9375_v41 = vpop.eup %9374  ;;  %9380 = vrcp.f32 %v3130_v47 }
 0xf52   :  { %v9377_v49 = vpop.eup %9376 }
 0xf53   :  { %v3131_v50 = vadd.f32 %v9377_v49, %v9375_v41 }
 0xf55   :  { %9382 = vrcp.f32 %v3131_v50 }
 0xf57   :  { %v9379_v51 = vpop.eup %9378 }
 0xf58   :  { %v3135_v52 = vmul.f32 %v9379_v51, %v3129_v43 }
 0xf5a   :  { %v3138_v32 = vsub.f32 2.0, %v3135_v52 }
 0xf5b   :  { %v9381_v54 = vpop.eup %9380 }
 0xf5c   :  { %v3141_v61 = vmul.f32 %v9379_v51, %v3138_v32  ;;  %v3136_v62 = vmul.f32 %v9381_v54, %v3130_v47 }
 0xf5e   :  { %v3144_v63 = vmul.f32 %v9367_v24, %v3141_v61  ;;  %v3239_v3 = vmul.f32 %v9369_v42, %v3141_v61  ;;  %v3139_v4 = vsub.f32 2.0, %v3136_v62 }
 0xf5f   :  { %v9383_v9 = vpop.eup %9382 }
 0xf60   :  { %8382 = vmatmul.mubr.msk.f32.vlgmr.msra.gmra.mrb[80].mxu0 %vm880_vm12, %v3144_v63  ;;  %8399 = vmatmul.mubr.msk.f32.vlgmr.msra.gmra.mrb[78].mxu1 %vm880_vm12, %v3239_v3  ;;  %v3142_v10 = vmul.f32 %v9381_v54, %v3139_v4  ;;  %v3137_v11 = vmul.f32 %v9383_v9, %v3131_v50 }
 0xf61   :  { %8384 = vmatprep.mubr.msk.f32.mxu0 %vm9735_vm7, %v9734_v25  ;;  %8401 = vmatprep.mubr.msk.f32.mxu1 %vm9735_vm7, %v9734_v25 }
 0xf62   :  { %v3145_v12 = vmul.f32 %v9371_v45, %v3142_v10  ;;  %v3240_v13 = vmul.f32 %v9373_v30, %v3142_v10  ;;  %v3140_v14 = vsub.f32 2.0, %v3137_v11  ;;  %9122 = vmatpush3.bf16.msra.mxu0 %v9121_v8 }
 0xf63   :  { %9123 = vmatprep.subr.bf16.mxu0 %v9733_v21 }
 0xf64   :  { %8385 = vmatmul.mubr.msk.f32.gmra.mrb[82].mxu0 %vm880_vm12, %v3145_v12  ;;  %8402 = vmatmul.mubr.msk.f32.gmra.mrb[80].mxu1 %vm880_vm12, %v3240_v13  ;;  %v3143_v16 = vmul.f32 %v9383_v9, %v3140_v14 }
 0xf65   :  { %8387 = vmatprep.mubr.msk.f32.mxu0 %vm9735_vm7, %v9734_v25  ;;  %8404 = vmatprep.mubr.msk.f32.mxu1 %vm9735_vm7, %v9734_v25 }
 0xf66   :  { %v3146_v18 = vmul.f32 %v9375_v41, %v3143_v16  ;;  %v3241_v5 = vmul.f32 %v9377_v49, %v3143_v16  ;;  %9125 = vmatpush3.bf16.msra.mxu0 %v9124_v6 }
 0xf67   :  { %9132 = vmatprep.subr.bf16.mxu0 %v9733_v21 }
 0xf68   :  { %8388 = vmatmul.mubr.msk.f32.gmra.mrb[84].mxu0 %vm880_vm12, %v3146_v18  ;;  %8405 = vmatmul.mubr.msk.f32.gmra.mrb[82].mxu1 %vm880_vm12, %v3241_v5  ;;  %v3496_v5 = vld [vmem:[#allocation12 + $0x20] sm:$0xff] }
 0xf69   :  { %8415 = vmatprep.mubr.msk.f32.mxu0 %vm9735_vm7, %v9734_v25  ;;  %8432 = vmatprep.mubr.msk.f32.mxu1 %vm9735_vm7, %v9734_v25  ;;  %v9127_v6 = vpack.c.bf16 %v3497_v20, %v3496_v5 }
 0xf6b   :  { %9128 = vmatpush3.bf16.msra.mxu1 %v9127_v6 }
 0xf6c   :  { %9129 = vmatprep.subr.bf16.mxu1 %v9733_v21 }
0x1033   :  { %v3222_v26 = vpop.f32.mrb[80].mxu0  ;;  %v3317_v27 = vpop.f32.mrb[78].mxu1 }
0x1034   :  { %v3236_v7 = vmul.f32 %v3222_v26, %v10652_v44  ;;  %v3331_v17 = vmul.f32 %v3317_v27, %v10715_v55  ;;  %v8383_v28 = vpop.f32.mrb[81].mxu0  ;;  %v8400_v29 = vpop.f32.mrb[79].mxu1  ;;  %v3599_v26 = vld [vmem:[#allocation15 + $0x28] sm:$0xff] }
0x1035   :  { %v9133_v27 = vpack.c.bf16 %v3599_v26, %v3598_v23  ;;  %v3600_v28 = vld [vmem:[#allocation15 + $0x30] sm:$0xff] }
0x1036   :  { %v3334_v46 = vadd.f32 %v3331_v17, %v3236_v7  ;;  %v3498_v7 = vld [vmem:[#allocation12 + $0x30] sm:$0xff]  ;;  %v3499_v17 = vld [vmem:[#allocation12 + $0x38] sm:$0xff] }
0x1037   :  { %v3227_v38 = vpop.f32.mrb[82].mxu0  ;;  %v3322_v35 = vpop.f32.mrb[80].mxu1  ;;  %v9130_v29 = vpack.c.bf16 %v3499_v17, %v3498_v7 }
0x1038   :  { %v3237_v37 = vmul.f32 %v3227_v38, %v10663_v19  ;;  %v3332_v24 = vmul.f32 %v3322_v35, %v10717_v57  ;;  %v8386_v42 = vpop.f32.mrb[83].mxu0  ;;  %v8403_v43 = vpop.f32.mrb[81].mxu1  ;;  %8416 = vmatmul.mubr.msk.f32.vlgmr.msra.gmra.mrb[86].mxu0 %vm466_vm9, %v3334_v46  ;;  %v3601_v46 = vld [vmem:[#allocation15 + $0x38] sm:$0xff] }
0x1039   :  { %8418 = vmatprep.mubr.msk.f32.mxu0 %vm9735_vm7, %v9734_v25  ;;  %9134 = vmatpush3.bf16.msra.mxu0 %v9133_v27  ;;  %v9136_v38 = vpack.c.bf16 %v3601_v46, %v3600_v28 }
0x103a   :  { %v3335_v45 = vadd.f32 %v3332_v24, %v3237_v37  ;;  %9135 = vmatprep.subr.bf16.mxu0 %v9733_v21  ;;  %9131 = vmatpush3.bf16.msra.mxu1 %v9130_v29 }
0x103b   :  { %v3232_v44 = vpop.f32.mrb[84].mxu0  ;;  %v3327_v30 = vpop.f32.mrb[82].mxu1  ;;  %9138 = vmatprep.subr.bf16.mxu1 %v9733_v21 }
0x103c   :  { %v3238_v55 = vmul.f32 %v3232_v44, %v10678_v36  ;;  %v3333_v47 = vmul.f32 %v3327_v30, %v10719_v60  ;;  %v8389_v41 = vpop.f32.mrb[85].mxu0  ;;  %v8406_v49 = vpop.f32.mrb[83].mxu1  ;;  %8419 = vmatmul.mubr.msk.f32.gmra.mrb[88].mxu0 %vm466_vm9, %v3335_v45 }
0x103d   :  { %8421 = vmatprep.mubr.msk.f32.mxu0 %vm9735_vm7, %v9734_v25  ;;  %9137 = vmatpush3.bf16.msra.mxu0 %v9136_v38  ;;  %v7343_v41 = vld [vmem:[%s11564_s13 + $0x1] ss:$0 sm:$0xff] }
0x103e   :  { %v3336_v19 = vadd.f32 %v3333_v47, %v3238_v55  ;;  %9148 = vmatprep.subr.bf16.mxu0 %v9733_v21 }
0x1040   :  { %8422 = vmatmul.mubr.msk.f32.gmra.mrb[90].mxu0 %vm466_vm9, %v3336_v19  ;;  %v7344_v19 = vld [vmem:[#allocation10 + $0x1] ss:$0 sm:$0xff] }
0x1041   :  { %8449 = vmatprep.mubr.msk.f32.mxu0 %vm9735_vm7, %v9734_v25 }
0x110b   :  { %v3417_v57 = vpop.f32.mrb[86].mxu0 }
0x110c   :  { %v10769_v50 = vadd.f32 %v3417_v57, %v10472_v31  ;;  %v8417_v36 = vpop.f32.mrb[87].mxu0  ;;  %v7353_v57 = vld [vmem:[%s11597_s29 + $0x30] sm:$0xff] }
0x110d   :  { %v7354_v36 = vld [vmem:[%s11597_s29 + $0x38] sm:$0xff] }
0x110e   :  { %v3438_v60 = vsel %vm466_vm9, %v10769_v50, 0.0 }
0x110f   :  { %3439 = vadd.xlane.f32.xlu1 %v3438_v60  ;;  %v3422_v51 = vpop.f32.mrb[88].mxu0 }
0x1110   :  { %v10774_v52 = vadd.f32 %v3422_v51, %v10477_v48  ;;  %v8420_v32 = vpop.f32.mrb[89].mxu0 }
0x1112   :  { %v3441_v54 = vsel %vm466_vm9, %v10774_v52, 0.0 }
0x1113   :  { %3442 = vadd.xlane.f32.xlu0 %v3441_v54  ;;  %v3427_v56 = vpop.f32.mrb[90].mxu0 }
0x1114   :  { %v10779_v58 = vadd.f32 %v3427_v56, %v10482_v40  ;;  %v8423_v31 = vpop.f32.mrb[91].mxu0  ;;  %v9139_v56 = vpack.c.bf16 %v7354_v36, %v7353_v57 }
0x1116   :  { %v3444_v61 = vsel %vm1754_vm14, %v10779_v58, 0.0 }
0x1117   :  { %3445 = vadd.xlane.f32.xlu1 %v3444_v61 }
0x119c   :  { %v3440_v62 = vpop.xlane.xlu1 %3439 }
0x119d   :  { %v3447_v63 = vmul.f32 0.03125, %v3440_v62 }
0x119f   :  { %v3450_v3 = vsub.f32 %v10769_v50, %v3447_v63 }
0x11a0   :  { %v3443_v48 = vpop.xlane.xlu0 %3442 }
0x11a1   :  { %v3448_v4 = vmul.f32 0.03125, %v3443_v48  ;;  %v3453_v8 = vmul.f32 %v3450_v3, %v3450_v3 }
0x11a3   :  { %v3451_v9 = vsub.f32 %v10774_v52, %v3448_v4  ;;  %v3456_v10 = vsel %vm466_vm9, %v3453_v8, 0.0  ;;  %v7355_v4 = vld [vmem:[%s11597_s29 + $0x40] sm:$0xff]  ;;  %v7356_v8 = vld [vmem:[%s11597_s29 + $0x48] sm:$0xff] }
0x11a4   :  { %3457 = vadd.xlane.f32.xlu0 %v3456_v10  ;;  %v3446_v11 = vpop.xlane.xlu1 %3445  ;;  %v7357_v10 = vld [vmem:[%s11597_s29 + $0x50] sm:$0xff] }
0x11a5   :  { %v3449_v40 = vmul.f32 0.03125, %v3446_v11  ;;  %v3454_v12 = vmul.f32 %v3451_v9, %v3451_v9  ;;  %v7358_v11 = vld [vmem:[%s11597_s29 + $0x58] sm:$0x3] }
0x11a7   :  { %v3452_v13 = vsub.f32 %v10779_v58, %v3449_v40  ;;  %v3459_v14 = vsel %vm466_vm9, %v3454_v12, 0.0  ;;  %v9145_v40 = vpack.c.bf16 %v7358_v11, %v7357_v10  ;;  %v7349_v12 = vld [vmem:[#allocation16 + $0x1] ss:$0 sm:$0xff] }
0x11a8   :  { %3460 = vadd.xlane.f32.xlu1 %v3459_v14 }
0x11a9   :  { %v3455_v16 = vmul.f32 %v3452_v13, %v3452_v13 }
0x11ab   :  { %v3462_v18 = vsel %vm1754_vm14, %v3455_v16, 0.0 }
0x11ac   :  { %3463 = vadd.xlane.f32.xlu0 %v3462_v18 }
0x1231   :  { %v3458_v35 = vpop.xlane.xlu0 %3457 }
0x1232   :  { %v3465_v37 = vmul.f32 0.03125, %v3458_v35 }
0x1234   :  { %v3468_v24 = vadd.f32 1e-05, %v3465_v37 }
0x1235   :  { %v3461_v42 = vpop.xlane.xlu1 %3460 }
0x1236   :  { %9384 = vrsqrt.f32 %v3468_v24  ;;  %v3466_v43 = vmul.f32 0.03125, %v3461_v42 }
0x1238   :  { %v3469_v45 = vadd.f32 1e-05, %v3466_v43 }
0x1239   :  { %v3464_v44 = vpop.xlane.xlu0 %3463 }
0x123a   :  { %9386 = vrsqrt.f32 %v3469_v45  ;;  %v3467_v30 = vmul.f32 0.03125, %v3464_v44 }
0x123c   :  { %v3470_v55 = vadd.f32 1e-05, %v3467_v30 }
0x123e   :  { %9388 = vrsqrt.f32 %v3470_v55 }
0x1240   :  { %v9385_v47 = vpop.eup %9384 }
0x1241   :  { %v3474_v49 = vmul.f32 %v9385_v47, %v3450_v3 }
0x1243   :  { %v3483_v60 = vmul.f32 %v7343_v41, %v3474_v49 }
0x1244   :  { %v9387_v51 = vpop.eup %9386 }
0x1245   :  { %v3492_v32 = vadd.f32 %v7344_v19, %v3483_v60  ;;  %v3475_v54 = vmul.f32 %v9387_v51, %v3451_v9  ;;  %v9142_v9 = vpack.c.bf16 %v7356_v8, %v7355_v4 }
0x1247   :  { %8433 = vmatmul.mubr.msk.f32.vlgmr.msra.gmra.mrb[84].mxu1 %vm466_vm9, %v3492_v32  ;;  %8450 = vmatmul.mubr.msk.f32.vlgmr.msra.gmra.mrb[92].mxu0 %vm466_vm9, %v3492_v32  ;;  %v3484_v31 = vmul.f32 %v7343_v41, %v3475_v54 }
0x1248   :  { %v9389_v61 = vpop.eup %9388  ;;  %8435 = vmatprep.mubr.msk.f32.mxu1 %vm9735_vm7, %v9734_v25  ;;  %8452 = vmatprep.mubr.msk.f32.mxu0 %vm9735_vm7, %v9734_v25 }
0x1249   :  { %v3493_v62 = vadd.f32 %v7344_v19, %v3484_v31  ;;  %v3476_v63 = vmul.f32 %v9389_v61, %v3452_v13  ;;  %9140 = vmatpush3.bf16.msra.mxu1 %v9139_v56  ;;  %v7345_v13 = vld [vmem:[#allocation13 + $0x1] ss:$0 sm:$0xff] }
0x124a   :  { %9141 = vmatprep.subr.bf16.mxu1 %v9733_v21 }
0x124b   :  { %8436 = vmatmul.mubr.msk.f32.gmra.mrb[86].mxu1 %vm466_vm9, %v3493_v62  ;;  %8453 = vmatmul.mubr.msk.f32.gmra.mrb[94].mxu0 %vm466_vm9, %v3493_v62  ;;  %v3485_v3 = vmul.f32 %v7343_v41, %v3476_v63  ;;  %v7363_v41 = vld [vmem:[#allocation18 + $0x1] ss:$0 sm:$0xff] }
0x124c   :  { %8438 = vmatprep.mubr.msk.f32.mxu1 %vm9735_vm7, %v9734_v25  ;;  %8455 = vmatprep.mubr.msk.f32.mxu0 %vm9735_vm7, %v9734_v25 }
0x124d   :  { %v3494_v48 = vadd.f32 %v7344_v19, %v3485_v3  ;;  %9143 = vmatpush3.bf16.msra.mxu1 %v9142_v9 }
0x124e   :  { %9144 = vmatprep.subr.bf16.mxu1 %v9733_v21 }
0x124f   :  { %8439 = vmatmul.mubr.msk.f32.gmra.mrb[88].mxu1 %vm466_vm9, %v3494_v48  ;;  %8456 = vmatmul.mubr.msk.f32.gmra.mrb[96].mxu0 %vm466_vm9, %v3494_v48 }
0x1250   :  { %8470 = vmatprep.mubr.msk.f32.mxu1 %vm9735_vm7, %v9734_v25  ;;  %8487 = vmatprep.mubr.msk.f32.mxu0 %vm9735_vm7, %v9734_v25 }
0x1251   :  { %9147 = vmatpush3.bf16.msk.msra.mxu1 %vm10455_vm0, %v9145_v40 }
0x1252   :  { %9154 = vmatprep.subr.bf16.mxu1 %v9733_v21 }
0x131a   :  { %v3583_v14 = vpop.f32.mrb[84].mxu1  ;;  %v3676_v16 = vpop.f32.mrb[92].mxu0 }
0x131b   :  { %v3677_v18 = vadd.f32 %v7349_v12, %v3676_v16  ;;  %v8434_v5 = vpop.f32.mrb[85].mxu1  ;;  %v8451_v20 = vpop.f32.mrb[93].mxu0  ;;  %v3584_v23 = vadd.f32 %v7345_v13, %v3583_v14 }
0x131c   :  { %v7366_v5 = vld [vmem:[%s11558_s7 + $0x40] sm:$0xff]  ;;  %v7367_v20 = vld [vmem:[%s11558_s7 + $0x48] sm:$0xff] }
0x131d   :  { %v3690_v6 = vmax.f32 %v3677_v18, 0.0 }
0x131e   :  { %v3588_v26 = vpop.f32.mrb[86].mxu1  ;;  %v3681_v27 = vpop.f32.mrb[94].mxu0 }
0x131f   :  { %v3693_v7 = vmul.f32 %v3690_v6, %v3584_v23  ;;  %v3682_v17 = vadd.f32 %v7349_v12, %v3681_v27  ;;  %v8437_v28 = vpop.f32.mrb[87].mxu1  ;;  %v8454_v29 = vpop.f32.mrb[95].mxu0  ;;  %v3589_v46 = vadd.f32 %v7345_v13, %v3588_v26  ;;  %v7373_v23 = vld [vmem:[%s11559_s8 + $0x40] sm:$0xff]  ;;  %v9149_v6 = vpack.c.bf16 %v7367_v20, %v7366_v5  ;;  %v7374_v26 = vld [vmem:[%s11559_s8 + $0x48] sm:$0xff] }
0x1320   :  { %v9155_v27 = vpack.c.bf16 %v7374_v26, %v7373_v23  ;;  %v7375_v28 = vld [vmem:[%s11559_s8 + $0x50] sm:$0xff] }
0x1321   :  { %v3691_v38 = vmax.f32 %v3682_v17, 0.0  ;;  %8471 = vmatmul.mubr.msk.f32.vlgmr.msra.gmra.mrb[90].mxu1 %vm2010_vm2, %v3693_v7  ;;  %9150 = vmatpush3.bf16.msra.mxu0 %v9149_v6  ;;  %v7368_v7 = vld [vmem:[%s11558_s7 + $0x50] sm:$0xff]  ;;  %v7369_v17 = vld [vmem:[%s11558_s7 + $0x58] sm:$0xff] }
0x1322   :  { %v3593_v35 = vpop.f32.mrb[88].mxu1  ;;  %v3686_v37 = vpop.f32.mrb[96].mxu0  ;;  %8473 = vmatprep.mubr.msk.f32.mxu1 %vm9735_vm7, %v9734_v25  ;;  %9156 = vmatpush3.bf16.msra.mxu1 %v9155_v27  ;;  %v9152_v29 = vpack.c.bf16 %v7369_v17, %v7368_v7  ;;  %v4135_v27 = vld [vmem:[#allocation7 + $0x10] sm:$0xff] }
0x1323   :  { %v3694_v24 = vmul.f32 %v3691_v38, %v3589_v46  ;;  %v3687_v42 = vadd.f32 %v7349_v12, %v3686_v37  ;;  %v8440_v43 = vpop.f32.mrb[89].mxu1  ;;  %v8457_v45 = vpop.f32.mrb[97].mxu0  ;;  %v3594_v44 = vadd.f32 %v7345_v13, %v3593_v35  ;;  %9151 = vmatprep.subr.bf16.mxu0 %v9733_v21  ;;  %9157 = vmatprep.subr.bf16.mxu1 %v9733_v21  ;;  %v7376_v46 = vld [vmem:[%s11559_s8 + $0x58] sm:$0xff] }
0x1324   :  { %v9158_v38 = vpack.c.bf16 %v7376_v46, %v7375_v28 }
0x1325   :  { %v3692_v30 = vmax.f32 %v3687_v42, 0.0  ;;  %8474 = vmatmul.mubr.msk.f32.gmra.mrb[92].mxu1 %vm2010_vm2, %v3694_v24  ;;  %9153 = vmatpush3.bf16.msra.mxu0 %v9152_v29 }
0x1326   :  { %8476 = vmatprep.mubr.msk.f32.mxu1 %vm9735_vm7, %v9734_v25  ;;  %9159 = vmatpush3.bf16.msra.mxu1 %v9158_v38 }
0x1327   :  { %v3695_v55 = vmul.f32 %v3692_v30, %v3594_v44  ;;  %9160 = vmatprep.subr.bf16.mxu0 %v9733_v21  ;;  %9166 = vmatprep.subr.bf16.mxu1 %v9733_v21 }
0x1329   :  { %8477 = vmatmul.mubr.msk.f32.gmra.mrb[94].mxu1 %vm2010_vm2, %v3695_v55 }
0x132a   :  { %8504 = vmatprep.mubr.msk.f32.mxu1 %vm9735_vm7, %v9734_v25 }
0x13f4   :  { %v3781_v47 = vpop.f32.mrb[90].mxu1 }
0x13f5   :  { %v3795_v49 = vadd.f32 %v3781_v47, %v10769_v50  ;;  %v8472_v19 = vpop.f32.mrb[91].mxu1 }
0x13f6   :  { %v7365_v19 = vld [vmem:[#allocation6 + $0x2] ss:$0 sm:$0xff] }
0x13f7   :  { %v10847_v57 = vadd.f32 %v7363_v41, %v3795_v49 }
0x13f8   :  { %v3786_v36 = vpop.f32.mrb[92].mxu1 }
0x13f9   :  { %v3796_v60 = vadd.f32 %v3786_v36, %v10774_v52  ;;  %v8475_v51 = vpop.f32.mrb[93].mxu1  ;;  %v3813_v32 = vsel %vm466_vm9, %v10847_v57, 0.0  ;;  %v7380_v36 = vld [vmem:[%s11560_s9 + $0x40] sm:$0xff] }
0x13fa   :  { %3814 = vadd.xlane.f32.xlu1 %v3813_v32 }
0x13fb   :  { %v10852_v54 = vadd.f32 %v7363_v41, %v3796_v60  ;;  %v7381_v60 = vld [vmem:[%s11560_s9 + $0x48] sm:$0xff] }
0x13fc   :  { %v3791_v56 = vpop.f32.mrb[94].mxu1 }
0x13fd   :  { %v3797_v31 = vadd.f32 %v3791_v56, %v10779_v58  ;;  %v8478_v61 = vpop.f32.mrb[95].mxu1  ;;  %v3816_v50 = vsel %vm466_vm9, %v10852_v54, 0.0 }
0x13fe   :  { %3817 = vadd.xlane.f32.xlu0 %v3816_v50  ;;  %v9161_v61 = vpack.c.bf16 %v7381_v60, %v7380_v36  ;;  %v7382_v50 = vld [vmem:[%s11560_s9 + $0x50] sm:$0xff] }
0x13ff   :  { %v10857_v62 = vadd.f32 %v7363_v41, %v3797_v31  ;;  %v7364_v41 = vld [vmem:[#allocation4 + $0x2] ss:$0 sm:$0xff] }
0x1401   :  { %v3819_v52 = vsel %vm1754_vm14, %v10857_v62, 0.0 }
0x1402   :  { %3820 = vadd.xlane.f32.xlu1 %v3819_v52  ;;  %v7383_v52 = vld [vmem:[%s11560_s9 + $0x58] sm:$0xff] }
0x1487   :  { %v3815_v63 = vpop.xlane.xlu1 %3814 }
0x1488   :  { %v3822_v3 = vmul.f32 0.03125, %v3815_v63 }
0x148a   :  { %v3825_v48 = vsub.f32 %v10847_v57, %v3822_v3 }
0x148b   :  { %v3818_v4 = vpop.xlane.xlu0 %3817 }
0x148c   :  { %v3823_v8 = vmul.f32 0.03125, %v3818_v4  ;;  %v3828_v9 = vmul.f32 %v3825_v48, %v3825_v48 }
0x148e   :  { %v3826_v58 = vsub.f32 %v10852_v54, %v3823_v8  ;;  %v3831_v10 = vsel %vm466_vm9, %v3828_v9, 0.0  ;;  %v9164_v8 = vpack.c.bf16 %v7383_v52, %v7382_v50 }
0x148f   :  { %3832 = vadd.xlane.f32.xlu0 %v3831_v10  ;;  %v3821_v11 = vpop.xlane.xlu1 %3820 }
0x1490   :  { %v3824_v40 = vmul.f32 0.03125, %v3821_v11  ;;  %v3829_v12 = vmul.f32 %v3826_v58, %v3826_v58 }
0x1492   :  { %v3827_v13 = vsub.f32 %v10857_v62, %v3824_v40  ;;  %v3834_v14 = vsel %vm466_vm9, %v3829_v12, 0.0 }
0x1493   :  { %3835 = vadd.xlane.f32.xlu1 %v3834_v14 }
0x1494   :  { %v3830_v16 = vmul.f32 %v3827_v13, %v3827_v13 }
0x1496   :  { %v3837_v18 = vsel %vm1754_vm14, %v3830_v16, 0.0 }
0x1497   :  { %3838 = vadd.xlane.f32.xlu0 %v3837_v18 }
0x151c   :  { %v3833_v35 = vpop.xlane.xlu0 %3832 }
0x151d   :  { %v3840_v37 = vmul.f32 0.03125, %v3833_v35 }
0x151f   :  { %v3843_v24 = vadd.f32 1e-05, %v3840_v37  ;;  %v4213_v37 = vld [vmem:[#allocation9 + $0x10] sm:$0xff] }
0x1520   :  { %v3836_v42 = vpop.xlane.xlu1 %3835 }
0x1521   :  { %9390 = vrsqrt.f32 %v3843_v24  ;;  %v3841_v43 = vmul.f32 0.03125, %v3836_v42 }
0x1523   :  { %v3844_v45 = vadd.f32 1e-05, %v3841_v43 }
0x1524   :  { %v3839_v44 = vpop.xlane.xlu0 %3838 }
0x1525   :  { %9392 = vrsqrt.f32 %v3844_v45  ;;  %v3842_v30 = vmul.f32 0.03125, %v3839_v44 }
0x1527   :  { %v3845_v55 = vadd.f32 1e-05, %v3842_v30 }
0x1529   :  { %9394 = vrsqrt.f32 %v3845_v55 }
0x152b   :  { %v9391_v47 = vpop.eup %9390 }
0x152c   :  { %v3849_v49 = vmul.f32 %v9391_v47, %v3825_v48 }
0x152e   :  { %v3858_v51 = vmul.f32 %v7364_v41, %v3849_v49 }
0x152f   :  { %v9393_v32 = vpop.eup %9392 }
0x1530   :  { %v3867_v56 = vadd.f32 %v7365_v19, %v3858_v51  ;;  %v3850_v31 = vmul.f32 %v9393_v32, %v3826_v58 }
0x1532   :  { %8488 = vmatmul.mubr.msk.f32.vlgmr.msra.gmra.mrb[98].mxu0 %vm466_vm9, %v3867_v56  ;;  %8505 = vmatmul.mubr.msk.f32.vlgmr.msra.gmra.mrb[96].mxu1 %vm466_vm9, %v3867_v56  ;;  %v3859_v63 = vmul.f32 %v7364_v41, %v3850_v31 }
0x1533   :  { %v9395_v3 = vpop.eup %9394  ;;  %8490 = vmatprep.mubr.msk.f32.mxu0 %vm9735_vm7, %v9734_v25  ;;  %8507 = vmatprep.mubr.msk.f32.mxu1 %vm9735_vm7, %v9734_v25 }
0x1534   :  { %v3868_v48 = vadd.f32 %v7365_v19, %v3859_v63  ;;  %9162 = vmatpush3.bf16.msra.mxu0 %v9161_v61  ;;  %v3851_v4 = vmul.f32 %v9395_v3, %v3827_v13 }
0x1535   :  { %9163 = vmatprep.subr.bf16.mxu0 %v9733_v21 }
0x1536   :  { %8491 = vmatmul.mubr.msk.f32.gmra.mrb[100].mxu0 %vm466_vm9, %v3868_v48  ;;  %8508 = vmatmul.mubr.msk.f32.gmra.mrb[98].mxu1 %vm466_vm9, %v3868_v48  ;;  %v3860_v9 = vmul.f32 %v7364_v41, %v3851_v4 }
0x1537   :  { %8493 = vmatprep.mubr.msk.f32.mxu0 %vm9735_vm7, %v9734_v25  ;;  %8510 = vmatprep.mubr.msk.f32.mxu1 %vm9735_vm7, %v9734_v25 }
0x1538   :  { %v3869_v58 = vadd.f32 %v7365_v19, %v3860_v9  ;;  %9165 = vmatpush3.bf16.msra.mxu0 %v9164_v8 }
0x1539   :  { %8559 = vmatprep.subr.mxu0 %v9734_v25 }
0x153a   :  { %8494 = vmatmul.mubr.msk.f32.gmra.mrb[102].mxu0 %vm466_vm9, %v3869_v58  ;;  %8511 = vmatmul.mubr.msk.f32.gmra.mrb[100].mxu1 %vm466_vm9, %v3869_v58 }
0x153b   :  { %8521 = vmatprep.mubr.msk.f32.mxu0 %vm9735_vm7, %v9734_v25  ;;  %8536 = vmatprep.mubr.msk.f32.mxu1 %vm9735_vm7, %v9734_v25 }
0x153e   :  { %8522 = vmatmul.mubr.msk.f32.vlgmr.msra.gmra.mrb[104].mxu0 %vm466_vm9, %v3867_v56 }
0x153f   :  { %8524 = vmatprep.mubr.msk.f32.mxu0 %vm9735_vm7, %v9734_v25 }
0x1542   :  { %8525 = vmatmul.mubr.msk.f32.gmra.mrb[106].mxu0 %vm466_vm9, %v3868_v48 }
0x1543   :  { %8527 = vmatprep.mubr.msk.f32.mxu0 %vm9735_vm7, %v9734_v25 }
0x1546   :  { %8528 = vmatmul.mubr.msk.f32.gmra.mrb[108].mxu0 %vm466_vm9, %v3869_v58 }
0x1547   :  { %8561 = vmatprep.mubr.msk.f32.mxu0 %vm9735_vm7, %v9734_v25 }
0x1605   :  { %v10936_v10 = vpop.f32.mrb[98].mxu0  ;;  %v4035_v11 = vpop.f32.mrb[96].mxu1 }
0x1606   :  { %v8489_v40 = vpop.f32.mrb[99].mxu0  ;;  %v8506_v12 = vpop.f32.mrb[97].mxu1 }
0x1609   :  { %v10938_v13 = vpop.f32.mrb[100].mxu0  ;;  %v4040_v14 = vpop.f32.mrb[98].mxu1 }
0x160a   :  { %v9167_v16 = vpack.c.bf16 %v4040_v14, %v4035_v11  ;;  %v8492_v18 = vpop.f32.mrb[101].mxu0  ;;  %v8509_v5 = vpop.f32.mrb[99].mxu1 }
0x160c   :  { %9168 = vmatpush3.bf16.msra.mxu1 %v9167_v16 }
0x160d   :  { %v10940_v20 = vpop.f32.mrb[102].mxu0  ;;  %v4045_v23 = vpop.f32.mrb[100].mxu1  ;;  %8534 = vmatprep.subr.mxu1 %v9734_v25 }
0x160e   :  { %v8495_v6 = vpop.f32.mrb[103].mxu0  ;;  %v8512_v26 = vpop.f32.mrb[101].mxu1 }
0x1610   :  { %8535 = vmatpush3.msk.msra.mxu1 %vm729_vm4, %v4045_v23 }
0x1611   :  { %v4120_v7 = vpop.f32.mrb[104].mxu0  ;;  %8537 = vmatmul.mubr.msk.f32.vlgmr.msra.gmra.mrb[102].mxu1 %vm725_vm11, %v4135_v27  ;;  %9169 = vmatprep.subr.bf16.mxu1 %v9733_v21 }
0x1612   :  { %v8523_v17 = vpop.f32.mrb[105].mxu0  ;;  %8545 = vmatprep.mubr.msk.f32.mxu1 %vm9735_vm7, %v9734_v25 }
0x1615   :  { %v4125_v28 = vpop.f32.mrb[106].mxu0 }
0x1616   :  { %v9170_v29 = vpack.c.bf16 %v4125_v28, %v4120_v7  ;;  %v8526_v46 = vpop.f32.mrb[107].mxu0 }
0x1618   :  { %9171 = vmatpush3.bf16.msra.mxu1 %v9170_v29 }
0x1619   :  { %v4130_v38 = vpop.f32.mrb[108].mxu0  ;;  %8543 = vmatprep.subr.mxu1 %v9734_v25 }
0x161a   :  { %v8529_v35 = vpop.f32.mrb[109].mxu0 }
0x161c   :  { %8544 = vmatpush3.msk.msra.mxu1 %vm729_vm4, %v4130_v38 }
0x161d   :  { %8546 = vmatmul.mubr.msk.f32.vlgmr.msra.gmra.mrb[104].mxu1 %vm725_vm11, %v4213_v37  ;;  %8548 = vmatprep.subr.mxu1 %v9734_v25 }
0x161e   :  { %8550 = vmatprep.mubr.msk.f32.mxu1 %vm9735_vm7, %v9734_v25 }
0x16e4   :  { %v4208_v24 = vpop.f32.mrb[102].mxu1 }
0x16e5   :  { %8549 = vmatpush3.msra.mxu1 %v4208_v24  ;;  %v8538_v42 = vpop.f32.mrb[103].mxu1 }
0x16e6   :  { %8551 = vmatmul.mubr.msk.f32.vlgmr.msra.gmra.mrb[106].mxu1 %vm880_vm12, %v10582_v15  ;;  %9172 = vmatprep.subr.bf16.mxu1 %v9733_v21 }
0x16e7   :  { %8553 = vmatprep.mubr.msk.f32.mxu1 %vm9735_vm7, %v9734_v25  ;;  %9174 = vmatpush3.bf16.msra.mxu1 %v10190_v59 }
0x16e8   :  { %9175 = vmatprep.subr.bf16.mxu1 %v9733_v21 }
0x16ea   :  { %8554 = vmatmul.mubr.msk.f32.gmra.mrb[108].mxu1 %vm880_vm12, %v10610_v0 }
0x16eb   :  { %8556 = vmatprep.mubr.msk.f32.mxu1 %vm9735_vm7, %v9734_v25  ;;  %9177 = vmatpush3.bf16.msra.mxu1 %v10208_v1 }
0x16ec   :  { %8598 = vmatprep.subr.mxu1 %v9734_v25 }
0x16ee   :  { %8557 = vmatmul.mubr.msk.f32.gmra.mrb[110].mxu1 %vm880_vm12, %v10619_v2 }
0x16ef   :  { %8578 = vmatprep.mubr.msk.f32.mxu1 %vm9735_vm7, %v9734_v25 }
0x16f0   :  { %v4286_v43 = vpop.f32.mrb[104].mxu1 }
0x16f1   :  { %v8547_v45 = vpop.f32.mrb[105].mxu1  ;;  %8560 = vmatpush3.msra.mxu0 %v4286_v43 }
0x16f2   :  { %8562 = vmatmul.mubr.msk.f32.vlgmr.msra.gmra.mrb[110].mxu0 %vm880_vm12, %v10582_v15  ;;  %8587 = vmatprep.subr.mxu0 %v9734_v25 }
0x16f3   :  { %8588 = vmatpush3.msra.mxu0 %v4208_v24  ;;  %8564 = vmatprep.mubr.msk.f32.mxu0 %vm9735_vm7, %v9734_v25 }
0x16f4   :  { %9178 = vmatprep.subr.bf16.mxu0 %v9733_v21 }
0x16f6   :  { %8565 = vmatmul.mubr.msk.f32.gmra.mrb[112].mxu0 %vm880_vm12, %v10610_v0 }
0x16f7   :  { %8567 = vmatprep.mubr.msk.f32.mxu0 %vm9735_vm7, %v9734_v25 }
0x16fa   :  { %8568 = vmatmul.mubr.msk.f32.gmra.mrb[114].mxu0 %vm880_vm12, %v10619_v2 }
0x16fb   :  { %8589 = vmatprep.mubr.msk.f32.mxu0 %vm9735_vm7, %v9734_v25 }
0x16fe   :  { %8590 = vmatmul.mubr.msk.f32.vlgmr.msra.gmra.mrb[116].mxu0 %vm880_vm12, %v10659_v33 }
0x16ff   :  { %8592 = vmatprep.mubr.msk.f32.mxu0 %vm9735_vm7, %v9734_v25  ;;  %9180 = vmatpush3.bf16.msra.mxu0 %v10190_v59 }
0x1700   :  { %9181 = vmatprep.subr.bf16.mxu0 %v9733_v21 }
0x1702   :  { %8593 = vmatmul.mubr.msk.f32.gmra.mrb[118].mxu0 %vm880_vm12, %v10674_v22 }
0x1703   :  { %8595 = vmatprep.mubr.msk.f32.mxu0 %vm9735_vm7, %v9734_v25  ;;  %9183 = vmatpush3.bf16.msra.mxu0 %v10208_v1 }
0x1704   :  { %9192 = vmatprep.subr.bf16.mxu0 %v9733_v21 }
0x1706   :  { %8596 = vmatmul.mubr.msk.f32.gmra.mrb[120].mxu0 %vm880_vm12, %v10685_v39 }
0x1707   :  { %8617 = vmatprep.mubr.msk.f32.mxu0 %vm9735_vm7, %v9734_v25 }
0x17b9   :  { %v4356_v15 = vpop.f32.mrb[106].mxu1 }
0x17ba   :  { %v4450_v0 = vmul.f32 %v4356_v15, %v10936_v10  ;;  %v8552_v2 = vpop.f32.mrb[107].mxu1 }
0x17bc   :  { %8579 = vmatmul.mubr.msk.f32.vlgmr.msra.gmra.mrb[112].mxu1 %vm466_vm9, %v4450_v0 }
0x17bd   :  { %8599 = vmatpush3.msra.mxu1 %v4286_v43  ;;  %v4361_v44 = vpop.f32.mrb[108].mxu1  ;;  %8581 = vmatprep.mubr.msk.f32.mxu1 %vm9735_vm7, %v9734_v25 }
0x17be   :  { %v4451_v30 = vmul.f32 %v4361_v44, %v10938_v13  ;;  %v8555_v55 = vpop.f32.mrb[109].mxu1  ;;  %9184 = vmatprep.subr.bf16.mxu1 %v9733_v21 }
0x17c0   :  { %8582 = vmatmul.mubr.msk.f32.gmra.mrb[114].mxu1 %vm466_vm9, %v4451_v30 }
0x17c1   :  { %v4366_v47 = vpop.f32.mrb[110].mxu1  ;;  %8584 = vmatprep.mubr.msk.f32.mxu1 %vm9735_vm7, %v9734_v25 }
0x17c2   :  { %v4452_v41 = vmul.f32 %v4366_v47, %v10940_v20  ;;  %v8558_v49 = vpop.f32.mrb[111].mxu1 }
0x17c4   :  { %8585 = vmatmul.mubr.msk.f32.gmra.mrb[116].mxu1 %vm466_vm9, %v4452_v41 }
0x17c5   :  { %v11012_v19 = vpop.f32.mrb[110].mxu0  ;;  %8600 = vmatprep.mubr.msk.f32.mxu1 %vm9735_vm7, %v9734_v25 }
0x17c6   :  { %v8563_v36 = vpop.f32.mrb[111].mxu0 }
0x17c8   :  { %8601 = vmatmul.mubr.msk.f32.vlgmr.msra.gmra.mrb[118].mxu1 %vm880_vm12, %v10659_v33 }
0x17c9   :  { %v11018_v60 = vpop.f32.mrb[112].mxu0  ;;  %9187 = vmatpush3.bf16.xpose.msk.msra.mxu1 %vm10315_vm13, %v10190_v59  ;;  %8603 = vmatprep.mubr.msk.f32.mxu1 %vm9735_vm7, %v9734_v25 }
0x17ca   :  { %v8566_v51 = vpop.f32.mrb[113].mxu0  ;;  %9188 = vmatprep.subr.bf16.mxu1 %v9733_v21 }
0x17cc   :  { %8604 = vmatmul.mubr.msk.f32.gmra.mrb[120].mxu1 %vm880_vm12, %v10674_v22 }
0x17cd   :  { %v11028_v32 = vpop.f32.mrb[114].mxu0  ;;  %8606 = vmatprep.mubr.msk.f32.mxu1 %vm9735_vm7, %v9734_v25 }
0x17ce   :  { %v8569_v33 = vpop.f32.mrb[115].mxu0 }
0x17d0   :  { %8607 = vmatmul.mubr.msk.f32.gmra.mrb[122].mxu1 %vm880_vm12, %v10685_v39 }
0x17d1   :  { %v4611_v56 = vpop.f32.mrb[116].mxu0  ;;  %9191 = vmatpush3.bf16.xpose.msk.msra.mxu1 %vm10315_vm13, %v10208_v1  ;;  %8634 = vmatprep.mubr.msk.f32.mxu1 %vm9735_vm7, %v9734_v25 }
0x17d2   :  { %v4705_v31 = vmul.f32 %v4611_v56, %v10936_v10  ;;  %v8591_v22 = vpop.f32.mrb[117].mxu0  ;;  %9200 = vmatprep.subr.bf16.mxu1 %v9733_v21 }
0x17d4   :  { %8618 = vmatmul.mubr.msk.f32.vlgmr.msra.gmra.mrb[122].mxu0 %vm466_vm9, %v4705_v31 }
0x17d5   :  { %v4616_v61 = vpop.f32.mrb[118].mxu0  ;;  %8620 = vmatprep.mubr.msk.f32.mxu0 %vm9735_vm7, %v9734_v25  ;;  %9195 = vmatpush3.bf16.xpose.msk.msra.mxu0 %vm10315_vm13, %v10190_v59 }
0x17d6   :  { %v4706_v39 = vmul.f32 %v4616_v61, %v10938_v13  ;;  %v8594_v50 = vpop.f32.mrb[119].mxu0  ;;  %9196 = vmatprep.subr.bf16.mxu0 %v9733_v21 }
0x17d8   :  { %8621 = vmatmul.mubr.msk.f32.gmra.mrb[124].mxu0 %vm466_vm9, %v4706_v39 }
0x17d9   :  { %v4621_v52 = vpop.f32.mrb[120].mxu0  ;;  %8623 = vmatprep.mubr.msk.f32.mxu0 %vm9735_vm7, %v9734_v25 }
0x17da   :  { %v4707_v63 = vmul.f32 %v4621_v52, %v10940_v20  ;;  %v8597_v3 = vpop.f32.mrb[121].mxu0 }
0x17dc   :  { %8624 = vmatmul.mubr.msk.f32.gmra.mrb[126].mxu0 %vm466_vm9, %v4707_v63 }
0x17dd   :  { %9199 = vmatpush3.bf16.xpose.msk.msra.mxu0 %vm10315_vm13, %v10208_v1  ;;  %8651 = vmatprep.mubr.msk.f32.mxu0 %vm9735_vm7, %v9734_v25 }
0x17de   :  { %9206 = vmatprep.subr.bf16.mxu0 %v9733_v21 }
0x188f   :  { %v4528_v48 = vpop.f32.mrb[112].mxu1 }
0x1890   :  { %v8580_v4 = vpop.f32.mrb[113].mxu1  ;;  %v4542_v5 = vmul.f32 0.5, %v4528_v48  ;;  %v7423_v48 = vld [vmem:[%s11563_s12 + $0x40] sm:$0xff] }
0x1891   :  { %v7424_v4 = vld [vmem:[%s11563_s12 + $0x48] sm:$0xff] }
0x1893   :  { %v4533_v8 = vpop.f32.mrb[114].mxu1 }
0x1894   :  { %v8583_v9 = vpop.f32.mrb[115].mxu1  ;;  %v4543_v27 = vmul.f32 0.5, %v4533_v8 }
0x1897   :  { %v4538_v58 = vpop.f32.mrb[116].mxu1 }
0x1898   :  { %v8586_v10 = vpop.f32.mrb[117].mxu1  ;;  %v4544_v37 = vmul.f32 0.5, %v4538_v58 }
0x189b   :  { %v11060_v11 = vpop.f32.mrb[118].mxu1 }
0x189c   :  { %v8602_v40 = vpop.f32.mrb[119].mxu1 }
0x189f   :  { %v11062_v12 = vpop.f32.mrb[120].mxu1 }
0x18a0   :  { %v8605_v13 = vpop.f32.mrb[121].mxu1 }
0x18a1   :  { %v9201_v13 = vpack.c.bf16 %v7424_v4, %v7423_v48 }
0x18a3   :  { %v11064_v14 = vpop.f32.mrb[122].mxu1 }
0x18a4   :  { %v8608_v16 = vpop.f32.mrb[123].mxu1 }
0x18a7   :  { %v4783_v18 = vpop.f32.mrb[122].mxu0 }
0x18a8   :  { %v4797_v20 = vmul.f32 0.5, %v4783_v18  ;;  %v8619_v23 = vpop.f32.mrb[123].mxu0 }
0x18aa   :  { %v4800_v6 = vmax.f32 %v4542_v5, %v4797_v20 }
0x18ab   :  { %v4788_v26 = vpop.f32.mrb[124].mxu0 }
0x18ac   :  { %v4803_v7 = vsub.f32 %v4542_v5, %v4800_v6  ;;  %v4812_v17 = vsub.f32 %v4797_v20, %v4800_v6  ;;  %v4798_v28 = vmul.f32 0.5, %v4788_v26  ;;  %v8622_v29 = vpop.f32.mrb[125].mxu0 }
0x18ae   :  { %v4806_v46 = vmul.f32 1.442695, %v4803_v7  ;;  %v4815_v38 = vmul.f32 1.442695, %v4812_v17  ;;  %v4801_v35 = vmax.f32 %v4543_v27, %v4798_v28  ;;  %v7425_v17 = vld [vmem:[%s11563_s12 + $0x50] sm:$0xff] }
0x18af   :  { %v4793_v24 = vpop.f32.mrb[126].mxu0 }
0x18b0   :  { %9396 = vpow2.f32 %v4806_v46  ;;  %v4804_v42 = vsub.f32 %v4543_v27, %v4801_v35  ;;  %v4813_v43 = vsub.f32 %v4798_v28, %v4801_v35  ;;  %v4799_v45 = vmul.f32 0.5, %v4793_v24  ;;  %v8625_v15 = vpop.f32.mrb[127].mxu0  ;;  %v7426_v28 = vld [vmem:[%s11563_s12 + $0x58] sm:$0xff] }
0x18b1   :  { %9398 = vpow2.f32 %v4815_v38  ;;  %v9204_v29 = vpack.c.bf16 %v7426_v28, %v7425_v17  ;;  %v5191_v17 = vld [vmem:[#allocation12 + $0x58] sm:$0xff] }
0x18b2   :  { %v4808_v0 = vmul.f32 1.442695, %v4804_v42  ;;  %v4817_v2 = vmul.f32 1.442695, %v4813_v43  ;;  %v4802_v44 = vmax.f32 %v4544_v37, %v4799_v45  ;;  %v5292_v28 = vld [vmem:[#allocation15 + $0x50] sm:$0xff] }
0x18b4   :  { %9400 = vpow2.f32 %v4808_v0  ;;  %v4805_v30 = vsub.f32 %v4544_v37, %v4802_v44  ;;  %v4814_v55 = vsub.f32 %v4799_v45, %v4802_v44 }
0x18b5   :  { %9402 = vpow2.f32 %v4817_v2 }
0x18b6   :  { %v4810_v47 = vmul.f32 1.442695, %v4805_v30  ;;  %v4819_v41 = vmul.f32 1.442695, %v4814_v55 }
0x18b8   :  { %9404 = vpow2.f32 %v4810_v47 }
0x18b9   :  { %9406 = vpow2.f32 %v4819_v41 }
0x18ba   :  { %v9397_v49 = vpop.eup %9396 }
0x18bb   :  { %v9399_v36 = vpop.eup %9398 }
0x18bc   :  { %v4821_v51 = vadd.f32 %v9399_v36, %v9397_v49 }
0x18be   :  { %v9401_v33 = vpop.eup %9400  ;;  %9408 = vrcp.f32 %v4821_v51 }
0x18bf   :  { %v9403_v56 = vpop.eup %9402 }
0x18c0   :  { %v4822_v31 = vadd.f32 %v9403_v56, %v9401_v33 }
0x18c2   :  { %v9405_v22 = vpop.eup %9404  ;;  %9410 = vrcp.f32 %v4822_v31 }
0x18c3   :  { %v9407_v61 = vpop.eup %9406 }
0x18c4   :  { %v4823_v39 = vadd.f32 %v9407_v61, %v9405_v22 }
0x18c6   :  { %9412 = vrcp.f32 %v4823_v39 }
0x18c8   :  { %v9409_v50 = vpop.eup %9408 }
0x18c9   :  { %v4827_v52 = vmul.f32 %v9409_v50, %v4821_v51 }
0x18cb   :  { %v4830_v63 = vsub.f32 2.0, %v4827_v52 }
0x18cc   :  { %v9411_v3 = vpop.eup %9410 }
0x18cd   :  { %v4833_v8 = vmul.f32 %v9409_v50, %v4830_v63  ;;  %v4828_v9 = vmul.f32 %v9411_v3, %v4822_v31 }
0x18cf   :  { %v4836_v58 = vmul.f32 %v9397_v49, %v4833_v8  ;;  %v4931_v10 = vmul.f32 %v9399_v36, %v4833_v8  ;;  %v4831_v40 = vsub.f32 2.0, %v4828_v9 }
0x18d0   :  { %v9413_v16 = vpop.eup %9412 }
0x18d1   :  { %8635 = vmatmul.mubr.msk.f32.vlgmr.msra.gmra.mrb[124].mxu1 %vm880_vm12, %v4836_v58  ;;  %8652 = vmatmul.mubr.msk.f32.vlgmr.msra.gmra.mrb[128].mxu0 %vm880_vm12, %v4931_v10  ;;  %v4834_v18 = vmul.f32 %v9411_v3, %v4831_v40  ;;  %v4829_v5 = vmul.f32 %v9413_v16, %v4823_v39 }
0x18d2   :  { %8637 = vmatprep.mubr.msk.f32.mxu1 %vm9735_vm7, %v9734_v25  ;;  %8654 = vmatprep.mubr.msk.f32.mxu0 %vm9735_vm7, %v9734_v25 }
0x18d3   :  { %v4837_v20 = vmul.f32 %v9401_v33, %v4834_v18  ;;  %v4932_v23 = vmul.f32 %v9403_v56, %v4834_v18  ;;  %v4832_v6 = vsub.f32 2.0, %v4829_v5  ;;  %9202 = vmatpush3.bf16.msra.mxu1 %v9201_v13  ;;  %v5188_v5 = vld [vmem:[#allocation12 + $0x40] sm:$0xff] }
0x18d4   :  { %9203 = vmatprep.subr.bf16.mxu1 %v9733_v21 }
0x18d5   :  { %8638 = vmatmul.mubr.msk.f32.gmra.mrb[126].mxu1 %vm880_vm12, %v4837_v20  ;;  %8655 = vmatmul.mubr.msk.f32.gmra.mrb[130].mxu0 %vm880_vm12, %v4932_v23  ;;  %v4835_v26 = vmul.f32 %v9413_v16, %v4832_v6  ;;  %v5189_v20 = vld [vmem:[#allocation12 + $0x48] sm:$0xff] }
0x18d6   :  { %8640 = vmatprep.mubr.msk.f32.mxu1 %vm9735_vm7, %v9734_v25  ;;  %8657 = vmatprep.mubr.msk.f32.mxu0 %vm9735_vm7, %v9734_v25  ;;  %v5290_v23 = vld [vmem:[#allocation15 + $0x40] sm:$0xff]  ;;  %v9207_v6 = vpack.c.bf16 %v5189_v20, %v5188_v5 }
0x18d7   :  { %v4838_v27 = vmul.f32 %v9405_v22, %v4835_v26  ;;  %v4933_v7 = vmul.f32 %v9407_v61, %v4835_v26  ;;  %9205 = vmatpush3.bf16.msra.mxu1 %v9204_v29  ;;  %v5291_v26 = vld [vmem:[#allocation15 + $0x48] sm:$0xff] }
0x18d8   :  { %9212 = vmatprep.subr.bf16.mxu1 %v9733_v21  ;;  %9208 = vmatpush3.bf16.msra.mxu0 %v9207_v6 }
0x18d9   :  { %8641 = vmatmul.mubr.msk.f32.gmra.mrb[128].mxu1 %vm880_vm12, %v4838_v27  ;;  %8658 = vmatmul.mubr.msk.f32.gmra.mrb[132].mxu0 %vm880_vm12, %v4933_v7  ;;  %v9213_v27 = vpack.c.bf16 %v5291_v26, %v5290_v23  ;;  %v5190_v7 = vld [vmem:[#allocation12 + $0x50] sm:$0xff] }
0x18da   :  { %8668 = vmatprep.mubr.msk.f32.mxu1 %vm9735_vm7, %v9734_v25  ;;  %8685 = vmatprep.mubr.msk.f32.mxu0 %vm9735_vm7, %v9734_v25  ;;  %v9210_v29 = vpack.c.bf16 %v5191_v17, %v5190_v7 }
0x18db   :  { %9209 = vmatprep.subr.bf16.mxu0 %v9733_v21 }
0x18dc   :  { %9211 = vmatpush3.bf16.msra.mxu0 %v9210_v29 }
0x18dd   :  { %9218 = vmatprep.subr.bf16.mxu0 %v9733_v21 }
0x19a4   :  { %v4914_v46 = vpop.f32.mrb[124].mxu1  ;;  %v5009_v38 = vpop.f32.mrb[128].mxu0 }
0x19a5   :  { %v4928_v35 = vmul.f32 %v4914_v46, %v11012_v19  ;;  %v5023_v37 = vmul.f32 %v5009_v38, %v11060_v11  ;;  %v8636_v24 = vpop.f32.mrb[125].mxu1  ;;  %v8653_v42 = vpop.f32.mrb[129].mxu0  ;;  %v5293_v46 = vld [vmem:[#allocation15 + $0x58] sm:$0xff] }
0x19a6   :  { %v9216_v38 = vpack.c.bf16 %v5293_v46, %v5292_v28 }
0x19a7   :  { %v5026_v43 = vadd.f32 %v5023_v37, %v4928_v35 }
0x19a8   :  { %v4919_v45 = vpop.f32.mrb[126].mxu1  ;;  %v5014_v15 = vpop.f32.mrb[130].mxu0 }
0x19a9   :  { %v4929_v0 = vmul.f32 %v4919_v45, %v11018_v60  ;;  %v5024_v2 = vmul.f32 %v5014_v15, %v11062_v12  ;;  %v8639_v44 = vpop.f32.mrb[127].mxu1  ;;  %v8656_v30 = vpop.f32.mrb[131].mxu0  ;;  %8669 = vmatmul.mubr.msk.f32.vlgmr.msra.gmra.mrb[130].mxu1 %vm466_vm9, %v5026_v43 }
0x19aa   :  { %8671 = vmatprep.mubr.msk.f32.mxu1 %vm9735_vm7, %v9734_v25  ;;  %9214 = vmatpush3.bf16.msra.mxu1 %v9213_v27  ;;  %v7431_v30 = vld [vmem:[%s11564_s13 + $0x2] ss:$0 sm:$0xff] }
0x19ab   :  { %v5027_v55 = vadd.f32 %v5024_v2, %v4929_v0  ;;  %9215 = vmatprep.subr.bf16.mxu1 %v9733_v21 }
0x19ac   :  { %v4924_v19 = vpop.f32.mrb[128].mxu1  ;;  %v5019_v47 = vpop.f32.mrb[132].mxu0 }
0x19ad   :  { %v4930_v11 = vmul.f32 %v4924_v19, %v11028_v32  ;;  %v5025_v41 = vmul.f32 %v5019_v47, %v11064_v14  ;;  %v8642_v49 = vpop.f32.mrb[129].mxu1  ;;  %v8659_v36 = vpop.f32.mrb[133].mxu0  ;;  %8672 = vmatmul.mubr.msk.f32.gmra.mrb[132].mxu1 %vm466_vm9, %v5027_v55  ;;  %v7432_v19 = vld [vmem:[#allocation10 + $0x2] ss:$0 sm:$0xff]  ;;  %v7441_v47 = vld [vmem:[%s11597_s29 + $0x60] sm:$0xff] }
0x19ae   :  { %8674 = vmatprep.mubr.msk.f32.mxu1 %vm9735_vm7, %v9734_v25  ;;  %9217 = vmatpush3.bf16.msra.mxu1 %v9216_v38 }
0x19af   :  { %v5028_v60 = vadd.f32 %v5025_v41, %v4930_v11  ;;  %9228 = vmatprep.subr.bf16.mxu1 %v9733_v21  ;;  %v7442_v11 = vld [vmem:[%s11597_s29 + $0x68] sm:$0xff] }
0x19b1   :  { %8675 = vmatmul.mubr.msk.f32.gmra.mrb[134].mxu1 %vm466_vm9, %v5028_v60 }
0x19b2   :  { %8702 = vmatprep.mubr.msk.f32.mxu1 %vm9735_vm7, %v9734_v25 }
0x1a7c   :  { %v5109_v12 = vpop.f32.mrb[130].mxu1 }
0x1a7d   :  { %v11114_v51 = vadd.f32 %v5109_v12, %v10847_v57  ;;  %v8670_v32 = vpop.f32.mrb[131].mxu1  ;;  %v9219_v12 = vpack.c.bf16 %v7442_v11, %v7441_v47 }
0x1a7f   :  { %v5130_v14 = vsel %vm466_vm9, %v11114_v51, 0.0 }
0x1a80   :  { %5131 = vadd.xlane.f32.xlu1 %v5130_v14  ;;  %v5114_v33 = vpop.f32.mrb[132].mxu1 }
0x1a81   :  { %v11119_v56 = vadd.f32 %v5114_v33, %v10852_v54  ;;  %v8673_v31 = vpop.f32.mrb[133].mxu1 }
0x1a83   :  { %v5133_v22 = vsel %vm466_vm9, %v11119_v56, 0.0 }
0x1a84   :  { %5134 = vadd.xlane.f32.xlu0 %v5133_v22  ;;  %v5119_v61 = vpop.f32.mrb[134].mxu1 }
0x1a85   :  { %v11124_v39 = vadd.f32 %v5119_v61, %v10857_v62  ;;  %v8676_v57 = vpop.f32.mrb[135].mxu1 }
0x1a86   :  { %v7443_v57 = vld [vmem:[%s11597_s29 + $0x70] sm:$0xff] }
0x1a87   :  { %v5136_v50 = vsel %vm1754_vm14, %v11124_v39, 0.0 }
0x1a88   :  { %5137 = vadd.xlane.f32.xlu1 %v5136_v50  ;;  %v7444_v50 = vld [vmem:[%s11597_s29 + $0x78] sm:$0xff] }
0x1b0d   :  { %v5132_v52 = vpop.xlane.xlu1 %5131 }
0x1b0e   :  { %v5139_v63 = vmul.f32 0.03125, %v5132_v52  ;;  %v9222_v52 = vpack.c.bf16 %v7444_v50, %v7443_v57 }
0x1b10   :  { %v5142_v3 = vsub.f32 %v11114_v51, %v5139_v63  ;;  %v7445_v63 = vld [vmem:[%s11597_s29 + $0x80] sm:$0xff] }
0x1b11   :  { %v5135_v54 = vpop.xlane.xlu0 %5134 }
0x1b12   :  { %v5140_v48 = vmul.f32 0.03125, %v5135_v54  ;;  %v5145_v4 = vmul.f32 %v5142_v3, %v5142_v3 }
0x1b14   :  { %v5143_v8 = vsub.f32 %v11119_v56, %v5140_v48  ;;  %v5148_v9 = vsel %vm466_vm9, %v5145_v4, 0.0  ;;  %v7437_v48 = vld [vmem:[#allocation16 + $0x2] ss:$0 sm:$0xff]  ;;  %v7433_v4 = vld [vmem:[#allocation13 + $0x2] ss:$0 sm:$0xff] }
0x1b15   :  { %5149 = vadd.xlane.f32.xlu0 %v5148_v9  ;;  %v5138_v58 = vpop.xlane.xlu1 %5137 }
0x1b16   :  { %v5141_v62 = vmul.f32 0.03125, %v5138_v58  ;;  %v5146_v10 = vmul.f32 %v5143_v8, %v5143_v8 }
0x1b18   :  { %v5144_v40 = vsub.f32 %v11124_v39, %v5141_v62  ;;  %v5151_v13 = vsel %vm466_vm9, %v5146_v10, 0.0 }
0x1b19   :  { %5152 = vadd.xlane.f32.xlu1 %v5151_v13 }
0x1b1a   :  { %v5147_v16 = vmul.f32 %v5144_v40, %v5144_v40 }
0x1b1c   :  { %v5154_v18 = vsel %vm1754_vm14, %v5147_v16, 0.0 }
0x1b1d   :  { %5155 = vadd.xlane.f32.xlu0 %v5154_v18 }
0x1ba2   :  { %v5150_v35 = vpop.xlane.xlu0 %5149 }
0x1ba3   :  { %v5157_v37 = vmul.f32 0.03125, %v5150_v35 }
0x1ba5   :  { %v5160_v24 = vadd.f32 1e-05, %v5157_v37 }
0x1ba6   :  { %v5153_v42 = vpop.xlane.xlu1 %5152 }
0x1ba7   :  { %9414 = vrsqrt.f32 %v5160_v24  ;;  %v5158_v43 = vmul.f32 0.03125, %v5153_v42 }
0x1ba9   :  { %v5161_v45 = vadd.f32 1e-05, %v5158_v43  ;;  %v7451_v43 = vld [vmem:[#allocation18 + $0x2] ss:$0 sm:$0xff] }
0x1baa   :  { %v5156_v15 = vpop.xlane.xlu0 %5155 }
0x1bab   :  { %9416 = vrsqrt.f32 %v5161_v45  ;;  %v5159_v0 = vmul.f32 0.03125, %v5156_v15 }
0x1bad   :  { %v5162_v2 = vadd.f32 1e-05, %v5159_v0 }
0x1baf   :  { %9418 = vrsqrt.f32 %v5162_v2 }
0x1bb1   :  { %v9415_v44 = vpop.eup %9414 }
0x1bb2   :  { %v5166_v55 = vmul.f32 %v9415_v44, %v5142_v3  ;;  %v7446_v3 = vld [vmem:[%s11597_s29 + $0x88] sm:$0x3] }
0x1bb3   :  { %v9225_v54 = vpack.c.bf16 %v7446_v3, %v7445_v63 }
0x1bb4   :  { %v5175_v41 = vmul.f32 %v7431_v30, %v5166_v55 }
0x1bb5   :  { %v9417_v49 = vpop.eup %9416 }
0x1bb6   :  { %v5184_v36 = vadd.f32 %v7432_v19, %v5175_v41  ;;  %v5167_v60 = vmul.f32 %v9417_v49, %v5143_v8 }
0x1bb8   :  { %8686 = vmatmul.mubr.msk.f32.vlgmr.msra.gmra.mrb[134].mxu0 %vm466_vm9, %v5184_v36  ;;  %8703 = vmatmul.mubr.msk.f32.vlgmr.msra.gmra.mrb[136].mxu1 %vm466_vm9, %v5184_v36  ;;  %v5176_v32 = vmul.f32 %v7431_v30, %v5167_v60 }
0x1bb9   :  { %v9419_v14 = vpop.eup %9418  ;;  %8688 = vmatprep.mubr.msk.f32.mxu0 %vm9735_vm7, %v9734_v25  ;;  %8705 = vmatprep.mubr.msk.f32.mxu1 %vm9735_vm7, %v9734_v25 }
0x1bba   :  { %v5185_v33 = vadd.f32 %v7432_v19, %v5176_v32  ;;  %v5168_v31 = vmul.f32 %v9419_v14, %v5144_v40  ;;  %9220 = vmatpush3.bf16.msra.mxu0 %v9219_v12 }
0x1bbb   :  { %9221 = vmatprep.subr.bf16.mxu0 %v9733_v21 }
0x1bbc   :  { %8689 = vmatmul.mubr.msk.f32.gmra.mrb[136].mxu0 %vm466_vm9, %v5185_v33  ;;  %8706 = vmatmul.mubr.msk.f32.gmra.mrb[138].mxu1 %vm466_vm9, %v5185_v33  ;;  %v5177_v22 = vmul.f32 %v7431_v30, %v5168_v31 }
0x1bbd   :  { %8691 = vmatprep.mubr.msk.f32.mxu0 %vm9735_vm7, %v9734_v25  ;;  %8708 = vmatprep.mubr.msk.f32.mxu1 %vm9735_vm7, %v9734_v25 }
0x1bbe   :  { %v5186_v61 = vadd.f32 %v7432_v19, %v5177_v22  ;;  %9223 = vmatpush3.bf16.msra.mxu0 %v9222_v52 }
0x1bbf   :  { %9224 = vmatprep.subr.bf16.mxu0 %v9733_v21 }
0x1bc0   :  { %8692 = vmatmul.mubr.msk.f32.gmra.mrb[138].mxu0 %vm466_vm9, %v5186_v61  ;;  %8709 = vmatmul.mubr.msk.f32.gmra.mrb[140].mxu1 %vm466_vm9, %v5186_v61 }
0x1bc1   :  { %8723 = vmatprep.mubr.msk.f32.mxu0 %vm9735_vm7, %v9734_v25  ;;  %8740 = vmatprep.mubr.msk.f32.mxu1 %vm9735_vm7, %v9734_v25 }
0x1bc2   :  { %9227 = vmatpush3.bf16.msk.msra.mxu0 %vm10455_vm0, %v9225_v54  ;;  %v7454_v54 = vld [vmem:[%s11558_s7 + $0x60] sm:$0xff] }
0x1bc3   :  { %9234 = vmatprep.subr.bf16.mxu0 %v9733_v21 }
0x1c8b   :  { %v5275_v8 = vpop.f32.mrb[134].mxu0  ;;  %v5368_v9 = vpop.f32.mrb[136].mxu1 }
0x1c8c   :  { %v5369_v58 = vadd.f32 %v7437_v48, %v5368_v9  ;;  %v8687_v62 = vpop.f32.mrb[135].mxu0  ;;  %v8704_v10 = vpop.f32.mrb[137].mxu1  ;;  %v5276_v40 = vadd.f32 %v7433_v4, %v5275_v8  ;;  %v7462_v9 = vld [vmem:[%s11559_s8 + $0x68] sm:$0xff] }
0x1c8d   :  { %v7456_v62 = vld [vmem:[%s11558_s7 + $0x70] sm:$0xff]  ;;  %v7457_v10 = vld [vmem:[%s11558_s7 + $0x78] sm:$0xff] }
0x1c8e   :  { %v5382_v13 = vmax.f32 %v5369_v58, 0.0 }
0x1c8f   :  { %v5280_v16 = vpop.f32.mrb[136].mxu0  ;;  %v5373_v18 = vpop.f32.mrb[138].mxu1 }
0x1c90   :  { %v5385_v5 = vmul.f32 %v5382_v13, %v5276_v40  ;;  %v5374_v20 = vadd.f32 %v7437_v48, %v5373_v18  ;;  %v8690_v23 = vpop.f32.mrb[137].mxu0  ;;  %v8707_v6 = vpop.f32.mrb[139].mxu1  ;;  %v5281_v26 = vadd.f32 %v7433_v4, %v5280_v16  ;;  %v7463_v40 = vld [vmem:[%s11559_s8 + $0x70] sm:$0xff]  ;;  %v9232_v13 = vpack.c.bf16 %v7457_v10, %v7456_v62  ;;  %v7464_v16 = vld [vmem:[%s11559_s8 + $0x78] sm:$0xff]  ;;  %v5905_v10 = vld [vmem:[#allocation9 + $0x18] sm:$0xff] }
0x1c91   :  { %v9238_v18 = vpack.c.bf16 %v7464_v16, %v7463_v40  ;;  %v9456_v16 = vld [vmem:[%s11594_s4] sm:$0xff] }
0x1c92   :  { %v5383_v27 = vmax.f32 %v5374_v20, 0.0  ;;  %8724 = vmatmul.mubr.msk.f32.vlgmr.msra.gmra.mrb[140].mxu0 %vm2010_vm2, %v5385_v5 }
0x1c93   :  { %v5285_v7 = vpop.f32.mrb[138].mxu0  ;;  %v5378_v17 = vpop.f32.mrb[140].mxu1  ;;  %8726 = vmatprep.mubr.msk.f32.mxu0 %vm9735_vm7, %v9734_v25 }
0x1c94   :  { %v5386_v28 = vmul.f32 %v5383_v27, %v5281_v26  ;;  %v5379_v29 = vadd.f32 %v7437_v48, %v5378_v17  ;;  %v8693_v46 = vpop.f32.mrb[139].mxu0  ;;  %v8710_v38 = vpop.f32.mrb[141].mxu1  ;;  %v5286_v35 = vadd.f32 %v7433_v4, %v5285_v7  ;;  %v7455_v48 = vld [vmem:[%s11558_s7 + $0x68] sm:$0xff]  ;;  %v7461_v4 = vld [vmem:[%s11559_s8 + $0x60] sm:$0xff] }
0x1c95   :  { %v9229_v8 = vpack.c.bf16 %v7455_v48, %v7454_v54  ;;  %v9235_v58 = vpack.c.bf16 %v7462_v9, %v7461_v4  ;;  %v7452_v46 = vld [vmem:[#allocation4 + $0x3] ss:$0 sm:$0xff] }
0x1c96   :  { %v5384_v37 = vmax.f32 %v5379_v29, 0.0  ;;  %8727 = vmatmul.mubr.msk.f32.gmra.mrb[142].mxu0 %vm2010_vm2, %v5386_v28 }
0x1c97   :  { %8729 = vmatprep.mubr.msk.f32.mxu0 %vm9735_vm7, %v9734_v25  ;;  %9230 = vmatpush3.bf16.msra.mxu1 %v9229_v8 }
0x1c98   :  { %v5387_v24 = vmul.f32 %v5384_v37, %v5286_v35  ;;  %9236 = vmatpush3.bf16.msra.mxu0 %v9235_v58  ;;  %9231 = vmatprep.subr.bf16.mxu1 %v9733_v21  ;;  %v7453_v35 = vld [vmem:[#allocation6 + $0x3] ss:$0 sm:$0xff] }
0x1c99   :  { %9237 = vmatprep.subr.bf16.mxu0 %v9733_v21  ;;  %v7468_v37 = vld [vmem:[%s11560_s9 + $0x60] sm:$0xff] }
0x1c9a   :  { %8730 = vmatmul.mubr.msk.f32.gmra.mrb[144].mxu0 %vm2010_vm2, %v5387_v24  ;;  %v7469_v24 = vld [vmem:[%s11560_s9 + $0x68] sm:$0xff] }
0x1c9b   :  { %8757 = vmatprep.mubr.msk.f32.mxu0 %vm9735_vm7, %v9734_v25  ;;  %9233 = vmatpush3.bf16.msra.mxu1 %v9232_v13 }
0x1c9c   :  { %9239 = vmatpush3.bf16.msra.mxu0 %v9238_v18  ;;  %9240 = vmatprep.subr.bf16.mxu1 %v9733_v21  ;;  %v9457_v18 = vld [vmem:[%s11594_s4 + $0x8] sm:$0xff] }
0x1c9d   :  { %9246 = vmatprep.subr.bf16.mxu0 %v9733_v21 }
0x1d65   :  { %v5473_v42 = vpop.f32.mrb[140].mxu0 }
0x1d66   :  { %v5487_v45 = vadd.f32 %v5473_v42, %v11114_v51  ;;  %v8725_v15 = vpop.f32.mrb[141].mxu0 }
0x1d68   :  { %v11192_v0 = vadd.f32 %v7451_v43, %v5487_v45 }
0x1d69   :  { %v5478_v2 = vpop.f32.mrb[142].mxu0 }
0x1d6a   :  { %v5488_v44 = vadd.f32 %v5478_v2, %v11119_v56  ;;  %v8728_v30 = vpop.f32.mrb[143].mxu0  ;;  %v5505_v55 = vsel %vm466_vm9, %v11192_v0, 0.0  ;;  %v9241_v2 = vpack.c.bf16 %v7469_v24, %v7468_v37 }
0x1d6b   :  { %5506 = vadd.xlane.f32.xlu1 %v5505_v55  ;;  %v7471_v30 = vld [vmem:[%s11560_s9 + $0x78] sm:$0xff] }
0x1d6c   :  { %v11197_v19 = vadd.f32 %v7451_v43, %v5488_v44  ;;  %v7470_v44 = vld [vmem:[%s11560_s9 + $0x70] sm:$0xff] }
0x1d6d   :  { %v5483_v47 = vpop.f32.mrb[144].mxu0 }
0x1d6e   :  { %v5489_v11 = vadd.f32 %v5483_v47, %v11124_v39  ;;  %v8731_v41 = vpop.f32.mrb[145].mxu0  ;;  %v5508_v51 = vsel %vm466_vm9, %v11197_v19, 0.0 }
0x1d6f   :  { %5509 = vadd.xlane.f32.xlu0 %v5508_v51  ;;  %v9244_v51 = vpack.c.bf16 %v7471_v30, %v7470_v44 }
0x1d70   :  { %v11202_v49 = vadd.f32 %v7451_v43, %v5489_v11 }
0x1d72   :  { %v5511_v56 = vsel %vm1754_vm14, %v11202_v49, 0.0 }
0x1d73   :  { %5512 = vadd.xlane.f32.xlu1 %v5511_v56 }
0x1df8   :  { %v5507_v36 = vpop.xlane.xlu1 %5506 }
0x1df9   :  { %v5514_v60 = vmul.f32 0.03125, %v5507_v36 }
0x1dfb   :  { %v5517_v12 = vsub.f32 %v11192_v0, %v5514_v60 }
0x1dfc   :  { %v5510_v32 = vpop.xlane.xlu0 %5509 }
0x1dfd   :  { %v5515_v14 = vmul.f32 0.03125, %v5510_v32  ;;  %v5520_v33 = vmul.f32 %v5517_v12, %v5517_v12 }
0x1dff   :  { %v5518_v39 = vsub.f32 %v11197_v19, %v5515_v14  ;;  %v5523_v31 = vsel %vm466_vm9, %v5520_v33, 0.0 }
0x1e00   :  { %5524 = vadd.xlane.f32.xlu0 %v5523_v31  ;;  %v5513_v22 = vpop.xlane.xlu1 %5512 }
0x1e01   :  { %v5516_v61 = vmul.f32 0.03125, %v5513_v22  ;;  %v5521_v57 = vmul.f32 %v5518_v39, %v5518_v39 }
0x1e03   :  { %v5519_v50 = vsub.f32 %v11202_v49, %v5516_v61  ;;  %v5526_v52 = vsel %vm466_vm9, %v5521_v57, 0.0 }
0x1e04   :  { %5527 = vadd.xlane.f32.xlu1 %v5526_v52 }
0x1e05   :  { %v5522_v63 = vmul.f32 %v5519_v50, %v5519_v50 }
0x1e07   :  { %v5529_v3 = vsel %vm1754_vm14, %v5522_v63, 0.0 }
0x1e08   :  { %5530 = vadd.xlane.f32.xlu0 %v5529_v3  ;;  %v5827_v3 = vld [vmem:[#allocation7 + $0x18] sm:$0xff] }
0x1e8d   :  { %v5525_v5 = vpop.xlane.xlu0 %5524 }
0x1e8e   :  { %v5532_v20 = vmul.f32 0.03125, %v5525_v5  ;;  %v9458_v5 = vld [vmem:[%s11594_s4 + $0x10] sm:$0xf] }
0x1e90   :  { %v5535_v23 = vadd.f32 1e-05, %v5532_v20 }
0x1e91   :  { %v5528_v6 = vpop.xlane.xlu1 %5527 }
0x1e92   :  { %9420 = vrsqrt.f32 %v5535_v23  ;;  %v5533_v26 = vmul.f32 0.03125, %v5528_v6  ;;  %v9459_v6 = vld [vmem:[%s11594_s4 + $0x18] sm:$0xff] }
0x1e94   :  { %v5536_v27 = vadd.f32 1e-05, %v5533_v26  ;;  %v9460_v26 = vld [vmem:[%s11594_s4 + $0x20] sm:$0xff] }
0x1e95   :  { %v5531_v7 = vpop.xlane.xlu0 %5530 }
0x1e96   :  { %9422 = vrsqrt.f32 %v5536_v27  ;;  %v5534_v17 = vmul.f32 0.03125, %v5531_v7  ;;  %v9461_v27 = vld [vmem:[%s11594_s4 + $0x28] sm:$0xf] }
0x1e98   :  { %v5537_v28 = vadd.f32 1e-05, %v5534_v17 }
0x1e9a   :  { %9424 = vrsqrt.f32 %v5537_v28 }
0x1e9c   :  { %v9421_v29 = vpop.eup %9420 }
0x1e9d   :  { %v5541_v38 = vmul.f32 %v9421_v29, %v5517_v12 }
0x1e9f   :  { %v5550_v42 = vmul.f32 %v7452_v46, %v5541_v38 }
0x1ea0   :  { %v9423_v43 = vpop.eup %9422 }
0x1ea1   :  { %v5559_v45 = vadd.f32 %v7453_v35, %v5550_v42  ;;  %v5542_v15 = vmul.f32 %v9423_v43, %v5518_v39 }
0x1ea3   :  { %8741 = vmatmul.mubr.msk.f32.vlgmr.msra.gmra.mrb[142].mxu1 %vm466_vm9, %v5559_v45  ;;  %8758 = vmatmul.mubr.msk.f32.vlgmr.msra.gmra.mrb[146].mxu0 %vm466_vm9, %v5559_v45  ;;  %v5551_v55 = vmul.f32 %v7452_v46, %v5542_v15 }
0x1ea4   :  { %v9425_v47 = vpop.eup %9424  ;;  %8743 = vmatprep.mubr.msk.f32.mxu1 %vm9735_vm7, %v9734_v25  ;;  %8760 = vmatprep.mubr.msk.f32.mxu0 %vm9735_vm7, %v9734_v25 }
0x1ea5   :  { %v5560_v11 = vadd.f32 %v7453_v35, %v5551_v55  ;;  %9242 = vmatpush3.bf16.msra.mxu1 %v9241_v2  ;;  %v5543_v41 = vmul.f32 %v9425_v47, %v5519_v50 }
0x1ea6   :  { %9243 = vmatprep.subr.bf16.mxu1 %v9733_v21 }
0x1ea7   :  { %8744 = vmatmul.mubr.msk.f32.gmra.mrb[144].mxu1 %vm466_vm9, %v5560_v11  ;;  %8761 = vmatmul.mubr.msk.f32.gmra.mrb[148].mxu0 %vm466_vm9, %v5560_v11  ;;  %v5552_v56 = vmul.f32 %v7452_v46, %v5543_v41 }
0x1ea8   :  { %8746 = vmatprep.mubr.msk.f32.mxu1 %vm9735_vm7, %v9734_v25  ;;  %8763 = vmatprep.mubr.msk.f32.mxu0 %vm9735_vm7, %v9734_v25 }
0x1ea9   :  { %v5561_v36 = vadd.f32 %v7453_v35, %v5552_v56  ;;  %9245 = vmatpush3.bf16.msra.mxu1 %v9244_v51 }
0x1eaa   :  { %8812 = vmatprep.subr.mxu1 %v9734_v25 }
0x1eab   :  { %8747 = vmatmul.mubr.msk.f32.gmra.mrb[146].mxu1 %vm466_vm9, %v5561_v36  ;;  %8764 = vmatmul.mubr.msk.f32.gmra.mrb[150].mxu0 %vm466_vm9, %v5561_v36 }
0x1eac   :  { %8774 = vmatprep.mubr.msk.f32.mxu1 %vm9735_vm7, %v9734_v25  ;;  %8789 = vmatprep.mubr.msk.f32.mxu0 %vm9735_vm7, %v9734_v25 }
0x1eaf   :  { %8775 = vmatmul.mubr.msk.f32.vlgmr.msra.gmra.mrb[148].mxu1 %vm466_vm9, %v5559_v45 }
0x1eb0   :  { %8777 = vmatprep.mubr.msk.f32.mxu1 %vm9735_vm7, %v9734_v25 }
0x1eb3   :  { %8778 = vmatmul.mubr.msk.f32.gmra.mrb[150].mxu1 %vm466_vm9, %v5560_v11 }
0x1eb4   :  { %8780 = vmatprep.mubr.msk.f32.mxu1 %vm9735_vm7, %v9734_v25 }
0x1eb7   :  { %8781 = vmatmul.mubr.msk.f32.gmra.mrb[152].mxu1 %vm466_vm9, %v5561_v36 }
0x1eb8   :  { %8814 = vmatprep.mubr.msk.f32.mxu1 %vm9735_vm7, %v9734_v25 }
0x1f76   :  { %v11281_v60 = vpop.f32.mrb[142].mxu1  ;;  %v5727_v12 = vpop.f32.mrb[146].mxu0 }
0x1f77   :  { %v8742_v32 = vpop.f32.mrb[143].mxu1  ;;  %v8759_v14 = vpop.f32.mrb[147].mxu0 }
0x1f7a   :  { %v11283_v33 = vpop.f32.mrb[144].mxu1  ;;  %v5732_v39 = vpop.f32.mrb[148].mxu0 }
0x1f7b   :  { %v9247_v31 = vpack.c.bf16 %v5732_v39, %v5727_v12  ;;  %v8745_v22 = vpop.f32.mrb[145].mxu1  ;;  %v8762_v61 = vpop.f32.mrb[149].mxu0 }
0x1f7d   :  { %9248 = vmatpush3.bf16.msra.mxu0 %v9247_v31 }
0x1f7e   :  { %v11285_v57 = vpop.f32.mrb[146].mxu1  ;;  %v5737_v50 = vpop.f32.mrb[150].mxu0  ;;  %8787 = vmatprep.subr.mxu0 %v9734_v25 }
0x1f7f   :  { %v8748_v52 = vpop.f32.mrb[147].mxu1  ;;  %v8765_v63 = vpop.f32.mrb[151].mxu0 }
0x1f81   :  { %8788 = vmatpush3.msk.msra.mxu0 %vm729_vm4, %v5737_v50 }
0x1f82   :  { %v5812_v54 = vpop.f32.mrb[148].mxu1  ;;  %8790 = vmatmul.mubr.msk.f32.vlgmr.msra.gmra.mrb[152].mxu0 %vm725_vm11, %v5827_v3  ;;  %9249 = vmatprep.subr.bf16.mxu0 %v9733_v21 }
0x1f83   :  { %v8776_v48 = vpop.f32.mrb[149].mxu1  ;;  %8798 = vmatprep.mubr.msk.f32.mxu0 %vm9735_vm7, %v9734_v25 }
0x1f86   :  { %v5817_v4 = vpop.f32.mrb[150].mxu1 }
0x1f87   :  { %v9250_v8 = vpack.c.bf16 %v5817_v4, %v5812_v54  ;;  %v8779_v9 = vpop.f32.mrb[151].mxu1 }
0x1f89   :  { %9251 = vmatpush3.bf16.msra.mxu0 %v9250_v8 }
0x1f8a   :  { %v5822_v58 = vpop.f32.mrb[152].mxu1  ;;  %8796 = vmatprep.subr.mxu0 %v9734_v25 }
0x1f8b   :  { %v8782_v62 = vpop.f32.mrb[153].mxu1 }
0x1f8d   :  { %8797 = vmatpush3.msk.msra.mxu0 %vm729_vm4, %v5822_v58 }
0x1f8e   :  { %8799 = vmatmul.mubr.msk.f32.vlgmr.msra.gmra.mrb[154].mxu0 %vm725_vm11, %v5905_v10  ;;  %8801 = vmatprep.subr.mxu0 %v9734_v25 }
0x1f8f   :  { %8803 = vmatprep.mubr.msk.f32.mxu0 %vm9735_vm7, %v9734_v25 }
0x2055   :  { %v5900_v40 = vpop.f32.mrb[152].mxu0 }
0x2056   :  { %8802 = vmatpush3.msra.mxu0 %v5900_v40  ;;  %v8791_v13 = vpop.f32.mrb[153].mxu0 }
0x2057   :  { %8804 = vmatmul.mubr.msk.f32.vlgmr.msra.gmra.mrb[156].mxu0 %vm880_vm12, %v9456_v16  ;;  %9252 = vmatprep.subr.bf16.mxu0 %v9733_v21 }
0x2058   :  { %8806 = vmatprep.mubr.msk.f32.mxu0 %vm9735_vm7, %v9734_v25  ;;  %9254 = vmatpush3.bf16.msra.mxu0 %v10190_v59 }
0x2059   :  { %9255 = vmatprep.subr.bf16.mxu0 %v9733_v21 }
0x205b   :  { %8807 = vmatmul.mubr.msk.f32.gmra.mrb[158].mxu0 %vm880_vm12, %v9457_v18 }
0x205c   :  { %8809 = vmatprep.mubr.msk.f32.mxu0 %vm9735_vm7, %v9734_v25  ;;  %9257 = vmatpush3.bf16.msra.mxu0 %v10208_v1 }
0x205d   :  { %8851 = vmatprep.subr.mxu0 %v9734_v25 }
0x205f   :  { %8810 = vmatmul.mubr.msk.f32.gmra.mrb[160].mxu0 %vm880_vm12, %v9458_v5 }
0x2060   :  { %8831 = vmatprep.mubr.msk.f32.mxu0 %vm9735_vm7, %v9734_v25 }
0x2061   :  { %v5978_v20 = vpop.f32.mrb[154].mxu0 }
0x2062   :  { %v8800_v23 = vpop.f32.mrb[155].mxu0  ;;  %8813 = vmatpush3.msra.mxu1 %v5978_v20 }
0x2063   :  { %8815 = vmatmul.mubr.msk.f32.vlgmr.msra.gmra.mrb[154].mxu1 %vm880_vm12, %v9456_v16  ;;  %8840 = vmatprep.subr.mxu1 %v9734_v25 }
0x2064   :  { %8841 = vmatpush3.msra.mxu1 %v5900_v40  ;;  %8817 = vmatprep.mubr.msk.f32.mxu1 %vm9735_vm7, %v9734_v25 }
0x2065   :  { %9258 = vmatprep.subr.bf16.mxu1 %v9733_v21 }
0x2067   :  { %8818 = vmatmul.mubr.msk.f32.gmra.mrb[156].mxu1 %vm880_vm12, %v9457_v18 }
0x2068   :  { %8820 = vmatprep.mubr.msk.f32.mxu1 %vm9735_vm7, %v9734_v25 }
0x206b   :  { %8821 = vmatmul.mubr.msk.f32.gmra.mrb[158].mxu1 %vm880_vm12, %v9458_v5 }
0x206c   :  { %8842 = vmatprep.mubr.msk.f32.mxu1 %vm9735_vm7, %v9734_v25 }
0x206f   :  { %8843 = vmatmul.mubr.msk.f32.vlgmr.msra.gmra.mrb[160].mxu1 %vm880_vm12, %v9459_v6 }
0x2070   :  { %8845 = vmatprep.mubr.msk.f32.mxu1 %vm9735_vm7, %v9734_v25  ;;  %9260 = vmatpush3.bf16.msra.mxu1 %v10190_v59 }
0x2071   :  { %9261 = vmatprep.subr.bf16.mxu1 %v9733_v21 }
0x2073   :  { %8846 = vmatmul.mubr.msk.f32.gmra.mrb[162].mxu1 %vm880_vm12, %v9460_v26 }
0x2074   :  { %8848 = vmatprep.mubr.msk.f32.mxu1 %vm9735_vm7, %v9734_v25  ;;  %9263 = vmatpush3.bf16.msra.mxu1 %v10208_v1 }
0x2075   :  { %9272 = vmatprep.subr.bf16.mxu1 %v9733_v21 }
0x2077   :  { %8849 = vmatmul.mubr.msk.f32.gmra.mrb[164].mxu1 %vm880_vm12, %v9461_v27 }
0x2078   :  { %8870 = vmatprep.mubr.msk.f32.mxu1 %vm9735_vm7, %v9734_v25 }
0x212a   :  { %v6048_v7 = vpop.f32.mrb[156].mxu0 }
0x212b   :  { %v6142_v17 = vmul.f32 %v6048_v7, %v11281_v60  ;;  %v8805_v28 = vpop.f32.mrb[157].mxu0 }
0x212d   :  { %8832 = vmatmul.mubr.msk.f32.vlgmr.msra.gmra.mrb[162].mxu0 %vm466_vm9, %v6142_v17 }
0x212e   :  { %8852 = vmatpush3.msra.mxu0 %v5978_v20  ;;  %v6053_v29 = vpop.f32.mrb[158].mxu0  ;;  %8834 = vmatprep.mubr.msk.f32.mxu0 %vm9735_vm7, %v9734_v25 }
0x212f   :  { %v6143_v46 = vmul.f32 %v6053_v29, %v11283_v33  ;;  %v8808_v38 = vpop.f32.mrb[159].mxu0  ;;  %9264 = vmatprep.subr.bf16.mxu0 %v9733_v21 }
0x2131   :  { %8835 = vmatmul.mubr.msk.f32.gmra.mrb[164].mxu0 %vm466_vm9, %v6143_v46 }
0x2132   :  { %v6058_v35 = vpop.f32.mrb[160].mxu0  ;;  %8837 = vmatprep.mubr.msk.f32.mxu0 %vm9735_vm7, %v9734_v25 }
0x2133   :  { %v6144_v37 = vmul.f32 %v6058_v35, %v11285_v57  ;;  %v8811_v24 = vpop.f32.mrb[161].mxu0 }
0x2135   :  { %8838 = vmatmul.mubr.msk.f32.gmra.mrb[166].mxu0 %vm466_vm9, %v6144_v37 }
0x2136   :  { %v11366_v42 = vpop.f32.mrb[154].mxu1  ;;  %8853 = vmatprep.mubr.msk.f32.mxu0 %vm9735_vm7, %v9734_v25 }
0x2137   :  { %v8816_v43 = vpop.f32.mrb[155].mxu1 }
0x2139   :  { %8854 = vmatmul.mubr.msk.f32.vlgmr.msra.gmra.mrb[168].mxu0 %vm880_vm12, %v9459_v6 }
0x213a   :  { %v11371_v45 = vpop.f32.mrb[156].mxu1  ;;  %9267 = vmatpush3.bf16.xpose.msk.msra.mxu0 %vm10315_vm13, %v10190_v59  ;;  %8856 = vmatprep.mubr.msk.f32.mxu0 %vm9735_vm7, %v9734_v25 }
0x213b   :  { %v8819_v15 = vpop.f32.mrb[157].mxu1  ;;  %9268 = vmatprep.subr.bf16.mxu0 %v9733_v21 }
0x213d   :  { %8857 = vmatmul.mubr.msk.f32.gmra.mrb[170].mxu0 %vm880_vm12, %v9460_v26 }
0x213e   :  { %v11380_v2 = vpop.f32.mrb[158].mxu1  ;;  %8859 = vmatprep.mubr.msk.f32.mxu0 %vm9735_vm7, %v9734_v25 }
0x213f   :  { %v8822_v44 = vpop.f32.mrb[159].mxu1 }
0x2141   :  { %8860 = vmatmul.mubr.msk.f32.gmra.mrb[172].mxu0 %vm880_vm12, %v9461_v27 }
0x2142   :  { %v6303_v30 = vpop.f32.mrb[160].mxu1  ;;  %9271 = vmatpush3.bf16.xpose.msk.msra.mxu0 %vm10315_vm13, %v10208_v1  ;;  %8887 = vmatprep.mubr.msk.f32.mxu0 %vm9735_vm7, %v9734_v25 }
0x2143   :  { %v6397_v55 = vmul.f32 %v6303_v30, %v11281_v60  ;;  %v8844_v47 = vpop.f32.mrb[161].mxu1  ;;  %9280 = vmatprep.subr.bf16.mxu0 %v9733_v21 }
0x2145   :  { %8871 = vmatmul.mubr.msk.f32.vlgmr.msra.gmra.mrb[166].mxu1 %vm466_vm9, %v6397_v55 }
0x2146   :  { %v6308_v11 = vpop.f32.mrb[162].mxu1  ;;  %8873 = vmatprep.mubr.msk.f32.mxu1 %vm9735_vm7, %v9734_v25  ;;  %9275 = vmatpush3.bf16.xpose.msk.msra.mxu1 %vm10315_vm13, %v10190_v59 }
0x2147   :  { %v6398_v41 = vmul.f32 %v6308_v11, %v11283_v33  ;;  %v8847_v51 = vpop.f32.mrb[163].mxu1  ;;  %9276 = vmatprep.subr.bf16.mxu1 %v9733_v21 }
0x2149   :  { %8874 = vmatmul.mubr.msk.f32.gmra.mrb[168].mxu1 %vm466_vm9, %v6398_v41 }
0x214a   :  { %v6313_v56 = vpop.f32.mrb[164].mxu1  ;;  %8876 = vmatprep.mubr.msk.f32.mxu1 %vm9735_vm7, %v9734_v25 }
0x214b   :  { %v6399_v36 = vmul.f32 %v6313_v56, %v11285_v57  ;;  %v8850_v60 = vpop.f32.mrb[165].mxu1  ;;  %v7511_v56 = vld [vmem:[%s11563_s12 + $0x60] sm:$0xff] }
0x214d   :  { %8877 = vmatmul.mubr.msk.f32.gmra.mrb[170].mxu1 %vm466_vm9, %v6399_v36  ;;  %v7512_v36 = vld [vmem:[%s11563_s12 + $0x68] sm:$0xff] }
0x214e   :  { %9279 = vmatpush3.bf16.xpose.msk.msra.mxu1 %vm10315_vm13, %v10208_v1  ;;  %8904 = vmatprep.mubr.msk.f32.mxu1 %vm9735_vm7, %v9734_v25 }
0x214f   :  { %9286 = vmatprep.subr.bf16.mxu1 %v9733_v21 }
0x2200   :  { %v6220_v59 = vpop.f32.mrb[162].mxu0 }
0x2201   :  { %v8833_v12 = vpop.f32.mrb[163].mxu0  ;;  %v6234_v52 = vmul.f32 0.5, %v6220_v59 }
0x2204   :  { %v6225_v32 = vpop.f32.mrb[164].mxu0 }
0x2205   :  { %v8836_v14 = vpop.f32.mrb[165].mxu0  ;;  %v6235_v4 = vmul.f32 0.5, %v6225_v32 }
0x2208   :  { %v6230_v33 = vpop.f32.mrb[166].mxu0 }
0x2209   :  { %v8839_v39 = vpop.f32.mrb[167].mxu0  ;;  %v6236_v16 = vmul.f32 0.5, %v6230_v33  ;;  %v9281_v33 = vpack.c.bf16 %v7512_v36, %v7511_v56 }
0x220c   :  { %v11411_v31 = vpop.f32.mrb[168].mxu0 }
0x220d   :  { %v8855_v22 = vpop.f32.mrb[169].mxu0 }
0x2210   :  { %v11413_v61 = vpop.f32.mrb[170].mxu0 }
0x2211   :  { %v8858_v57 = vpop.f32.mrb[171].mxu0 }
0x2214   :  { %v11415_v50 = vpop.f32.mrb[172].mxu0 }
0x2215   :  { %v8861_v1 = vpop.f32.mrb[173].mxu0 }
0x2218   :  { %v6475_v34 = vpop.f32.mrb[166].mxu1 }
0x2219   :  { %v6489_v63 = vmul.f32 0.5, %v6475_v34  ;;  %v8872_v3 = vpop.f32.mrb[167].mxu1 }
0x221b   :  { %v6492_v54 = vmax.f32 %v6234_v52, %v6489_v63 }
0x221c   :  { %v6480_v48 = vpop.f32.mrb[168].mxu1 }
0x221d   :  { %v6495_v8 = vsub.f32 %v6234_v52, %v6492_v54  ;;  %v6504_v9 = vsub.f32 %v6489_v63, %v6492_v54  ;;  %v6490_v58 = vmul.f32 0.5, %v6480_v48  ;;  %v8875_v62 = vpop.f32.mrb[169].mxu1  ;;  %v7513_v48 = vld [vmem:[%s11563_s12 + $0x70] sm:$0xff] }
0x221f   :  { %v6498_v10 = vmul.f32 1.442695, %v6495_v8  ;;  %v6507_v40 = vmul.f32 1.442695, %v6504_v9  ;;  %v6493_v13 = vmax.f32 %v6235_v4, %v6490_v58 }
0x2220   :  { %v6485_v18 = vpop.f32.mrb[170].mxu1 }
0x2221   :  { %9426 = vpow2.f32 %v6498_v10  ;;  %v6496_v5 = vsub.f32 %v6235_v4, %v6493_v13  ;;  %v6505_v20 = vsub.f32 %v6490_v58, %v6493_v13  ;;  %v6491_v23 = vmul.f32 0.5, %v6485_v18  ;;  %v8878_v6 = vpop.f32.mrb[171].mxu1  ;;  %v7514_v4 = vld [vmem:[%s11563_s12 + $0x78] sm:$0xff] }
0x2222   :  { %9428 = vpow2.f32 %v6507_v40  ;;  %v9284_v8 = vpack.c.bf16 %v7514_v4, %v7513_v48  ;;  %v6985_v48 = vld [vmem:[#allocation15 + $0x78] sm:$0xff] }
0x2223   :  { %v6500_v26 = vmul.f32 1.442695, %v6496_v5  ;;  %v6509_v27 = vmul.f32 1.442695, %v6505_v20  ;;  %v6494_v7 = vmax.f32 %v6236_v16, %v6491_v23 }
0x2225   :  { %9430 = vpow2.f32 %v6500_v26  ;;  %v6497_v17 = vsub.f32 %v6236_v16, %v6494_v7  ;;  %v6506_v28 = vsub.f32 %v6491_v23, %v6494_v7 }
0x2226   :  { %9432 = vpow2.f32 %v6509_v27 }
0x2227   :  { %v6502_v29 = vmul.f32 1.442695, %v6497_v17  ;;  %v6511_v46 = vmul.f32 1.442695, %v6506_v28 }
0x2229   :  { %9434 = vpow2.f32 %v6502_v29 }
0x222a   :  { %9436 = vpow2.f32 %v6511_v46 }
0x222b   :  { %v9427_v38 = vpop.eup %9426 }
0x222c   :  { %v9429_v35 = vpop.eup %9428 }
0x222d   :  { %v6513_v37 = vadd.f32 %v9429_v35, %v9427_v38 }
0x222f   :  { %v9431_v24 = vpop.eup %9430  ;;  %9438 = vrcp.f32 %v6513_v37 }
0x2230   :  { %v9433_v43 = vpop.eup %9432 }
0x2231   :  { %v6514_v15 = vadd.f32 %v9433_v43, %v9431_v24 }
0x2233   :  { %v9435_v44 = vpop.eup %9434  ;;  %9440 = vrcp.f32 %v6514_v15 }
0x2234   :  { %v9437_v30 = vpop.eup %9436 }
0x2235   :  { %v6515_v55 = vadd.f32 %v9437_v30, %v9435_v44 }
0x2237   :  { %9442 = vrcp.f32 %v6515_v55 }
0x2239   :  { %v9439_v47 = vpop.eup %9438 }
0x223a   :  { %v6519_v11 = vmul.f32 %v9439_v47, %v6513_v37 }
0x223c   :  { %v6522_v41 = vsub.f32 2.0, %v6519_v11 }
0x223d   :  { %v9441_v51 = vpop.eup %9440 }
0x223e   :  { %v6525_v60 = vmul.f32 %v9439_v47, %v6522_v41  ;;  %v6520_v59 = vmul.f32 %v9441_v51, %v6514_v15 }
0x2240   :  { %v6528_v12 = vmul.f32 %v9427_v38, %v6525_v60  ;;  %v6623_v32 = vmul.f32 %v9429_v35, %v6525_v60  ;;  %v6523_v14 = vsub.f32 2.0, %v6520_v59 }
0x2241   :  { %v9443_v39 = vpop.eup %9442 }
0x2242   :  { %8888 = vmatmul.mubr.msk.f32.vlgmr.msra.gmra.mrb[174].mxu0 %vm880_vm12, %v6528_v12  ;;  %8905 = vmatmul.mubr.msk.f32.vlgmr.msra.gmra.mrb[172].mxu1 %vm880_vm12, %v6623_v32  ;;  %v6526_v22 = vmul.f32 %v9441_v51, %v6523_v14  ;;  %v6521_v57 = vmul.f32 %v9443_v39, %v6515_v55 }
0x2243   :  { %8890 = vmatprep.mubr.msk.f32.mxu0 %vm9735_vm7, %v9734_v25  ;;  %8907 = vmatprep.mubr.msk.f32.mxu1 %vm9735_vm7, %v9734_v25 }
0x2244   :  { %v6529_v1 = vmul.f32 %v9431_v24, %v6526_v22  ;;  %v6624_v34 = vmul.f32 %v9433_v43, %v6526_v22  ;;  %v6524_v52 = vsub.f32 2.0, %v6521_v57  ;;  %9282 = vmatpush3.bf16.msra.mxu0 %v9281_v33  ;;  %v6880_v33 = vld [vmem:[#allocation12 + $0x60] sm:$0xff] }
0x2245   :  { %9283 = vmatprep.subr.bf16.mxu0 %v9733_v21  ;;  %v6982_v22 = vld [vmem:[#allocation15 + $0x60] sm:$0xff] }
0x2246   :  { %8891 = vmatmul.mubr.msk.f32.gmra.mrb[176].mxu0 %vm880_vm12, %v6529_v1  ;;  %8908 = vmatmul.mubr.msk.f32.gmra.mrb[174].mxu1 %vm880_vm12, %v6624_v34  ;;  %v6527_v63 = vmul.f32 %v9443_v39, %v6524_v52  ;;  %v6881_v39 = vld [vmem:[#allocation12 + $0x68] sm:$0xff]  ;;  %v6882_v52 = vld [vmem:[#allocation12 + $0x70] sm:$0xff] }
0x2247   :  { %8893 = vmatprep.mubr.msk.f32.mxu0 %vm9735_vm7, %v9734_v25  ;;  %8910 = vmatprep.mubr.msk.f32.mxu1 %vm9735_vm7, %v9734_v25  ;;  %v9287_v57 = vpack.c.bf16 %v6881_v39, %v6880_v33  ;;  %v6983_v1 = vld [vmem:[#allocation15 + $0x68] sm:$0xff] }
0x2248   :  { %v6530_v3 = vmul.f32 %v9435_v44, %v6527_v63  ;;  %v6625_v54 = vmul.f32 %v9437_v30, %v6527_v63  ;;  %9285 = vmatpush3.bf16.msra.mxu0 %v9284_v8  ;;  %v9293_v34 = vpack.c.bf16 %v6983_v1, %v6982_v22  ;;  %v6883_v63 = vld [vmem:[#allocation12 + $0x78] sm:$0xff] }
0x2249   :  { %9292 = vmatprep.subr.bf16.mxu0 %v9733_v21  ;;  %9288 = vmatpush3.bf16.msra.mxu1 %v9287_v57 }
0x224a   :  { %8894 = vmatmul.mubr.msk.f32.gmra.mrb[178].mxu0 %vm880_vm12, %v6530_v3  ;;  %8911 = vmatmul.mubr.msk.f32.gmra.mrb[176].mxu1 %vm880_vm12, %v6625_v54  ;;  %v6984_v3 = vld [vmem:[#allocation15 + $0x70] sm:$0xff]  ;;  %v9290_v54 = vpack.c.bf16 %v6883_v63, %v6882_v52 }
0x224b   :  { %8921 = vmatprep.mubr.msk.f32.mxu0 %vm9735_vm7, %v9734_v25  ;;  %8938 = vmatprep.mubr.msk.f32.mxu1 %vm9735_vm7, %v9734_v25  ;;  %v9296_v4 = vpack.c.bf16 %v6985_v48, %v6984_v3 }
0x224c   :  { %9289 = vmatprep.subr.bf16.mxu1 %v9733_v21 }
0x224d   :  { %9291 = vmatpush3.bf16.msra.mxu1 %v9290_v54 }
0x224e   :  { %9298 = vmatprep.subr.bf16.mxu1 %v9733_v21 }
0x2315   :  { %v6606_v9 = vpop.f32.mrb[174].mxu0  ;;  %v6701_v58 = vpop.f32.mrb[172].mxu1 }
0x2316   :  { %v6620_v62 = vmul.f32 %v6606_v9, %v11366_v42  ;;  %v6715_v10 = vmul.f32 %v6701_v58, %v11411_v31  ;;  %v8889_v40 = vpop.f32.mrb[175].mxu0  ;;  %v8906_v13 = vpop.f32.mrb[173].mxu1 }
0x2318   :  { %v6718_v16 = vadd.f32 %v6715_v10, %v6620_v62 }
0x2319   :  { %v6611_v18 = vpop.f32.mrb[176].mxu0  ;;  %v6706_v5 = vpop.f32.mrb[174].mxu1 }
0x231a   :  { %v6621_v20 = vmul.f32 %v6611_v18, %v11371_v45  ;;  %v6716_v23 = vmul.f32 %v6706_v5, %v11413_v61  ;;  %v8892_v6 = vpop.f32.mrb[177].mxu0  ;;  %v8909_v26 = vpop.f32.mrb[175].mxu1  ;;  %8922 = vmatmul.mubr.msk.f32.vlgmr.msra.gmra.mrb[180].mxu0 %vm466_vm9, %v6718_v16 }
0x231b   :  { %8924 = vmatprep.mubr.msk.f32.mxu0 %vm9735_vm7, %v9734_v25  ;;  %9294 = vmatpush3.bf16.msra.mxu0 %v9293_v34  ;;  %v7520_v6 = vld [vmem:[#allocation10 + $0x3] ss:$0 sm:$0xff]  ;;  %v7529_v26 = vld [vmem:[%s11597_s29 + $0x90] sm:$0xff] }
0x231c   :  { %v6719_v27 = vadd.f32 %v6716_v23, %v6621_v20  ;;  %9295 = vmatprep.subr.bf16.mxu0 %v9733_v21  ;;  %v7519_v20 = vld [vmem:[%s11564_s13 + $0x3] ss:$0 sm:$0xff] }
0x231d   :  { %v6616_v42 = vpop.f32.mrb[178].mxu0  ;;  %v6711_v7 = vpop.f32.mrb[176].mxu1 }
0x231e   :  { %v6622_v31 = vmul.f32 %v6616_v42, %v11380_v2  ;;  %v6717_v17 = vmul.f32 %v6711_v7, %v11415_v50  ;;  %v8895_v28 = vpop.f32.mrb[179].mxu0  ;;  %v8912_v29 = vpop.f32.mrb[177].mxu1  ;;  %8925 = vmatmul.mubr.msk.f32.gmra.mrb[182].mxu0 %vm466_vm9, %v6719_v27  ;;  %v7530_v27 = vld [vmem:[%s11597_s29 + $0x98] sm:$0xff] }
0x231f   :  { %8927 = vmatprep.mubr.msk.f32.mxu0 %vm9735_vm7, %v9734_v25  ;;  %9297 = vmatpush3.bf16.msra.mxu0 %v9296_v4  ;;  %v9299_v28 = vpack.c.bf16 %v7530_v27, %v7529_v26  ;;  %v7539_v4 = vld [vmem:[#allocation18 + $0x3] ss:$0 sm:$0xff] }
0x2320   :  { %v6720_v45 = vadd.f32 %v6717_v17, %v6622_v31 }
0x2322   :  { %8928 = vmatmul.mubr.msk.f32.gmra.mrb[184].mxu0 %vm466_vm9, %v6720_v45 }
0x2323   :  { %8955 = vmatprep.mubr.msk.f32.mxu0 %vm9735_vm7, %v9734_v25 }
0x23ed   :  { %v6801_v61 = vpop.f32.mrb[180].mxu0 }
0x23ee   :  { %v11465_v46 = vadd.f32 %v6801_v61, %v11192_v0  ;;  %v8923_v2 = vpop.f32.mrb[181].mxu0 }
0x23f0   :  { %v6822_v50 = vsel %vm466_vm9, %v11465_v46, 0.0 }
0x23f1   :  { %6823 = vadd.xlane.f32.xlu1 %v6822_v50  ;;  %v6806_v38 = vpop.f32.mrb[182].mxu0 }
0x23f2   :  { %v11470_v35 = vadd.f32 %v6806_v38, %v11197_v19  ;;  %v8926_v37 = vpop.f32.mrb[183].mxu0 }
0x23f3   :  { %v7531_v37 = vld [vmem:[%s11597_s29 + $0xa0] sm:$0xff] }
0x23f4   :  { %v6825_v24 = vsel %vm466_vm9, %v11470_v35, 0.0 }
0x23f5   :  { %6826 = vadd.xlane.f32.xlu0 %v6825_v24  ;;  %v6811_v43 = vpop.f32.mrb[184].mxu0  ;;  %v7532_v24 = vld [vmem:[%s11597_s29 + $0xa8] sm:$0xff] }
0x23f6   :  { %v11475_v15 = vadd.f32 %v6811_v43, %v11202_v49  ;;  %v8929_v0 = vpop.f32.mrb[185].mxu0  ;;  %v9302_v43 = vpack.c.bf16 %v7532_v24, %v7531_v37 }
0x23f7   :  { %v7533_v0 = vld [vmem:[%s11597_s29 + $0xb0] sm:$0xff] }
0x23f8   :  { %v6828_v44 = vsel %vm1754_vm14, %v11475_v15, 0.0 }
0x23f9   :  { %6829 = vadd.xlane.f32.xlu1 %v6828_v44  ;;  %v7534_v44 = vld [vmem:[%s11597_s29 + $0xb8] sm:$0x3] }
0x247e   :  { %v6824_v30 = vpop.xlane.xlu1 %6823 }
0x247f   :  { %v6831_v55 = vmul.f32 0.03125, %v6824_v30  ;;  %v9305_v30 = vpack.c.bf16 %v7534_v44, %v7533_v0 }
0x2481   :  { %v6834_v47 = vsub.f32 %v11465_v46, %v6831_v55  ;;  %v7525_v55 = vld [vmem:[#allocation16 + $0x3] ss:$0 sm:$0xff] }
0x2482   :  { %v6827_v19 = vpop.xlane.xlu0 %6826 }
0x2483   :  { %v6832_v11 = vmul.f32 0.03125, %v6827_v19  ;;  %v6837_v41 = vmul.f32 %v6834_v47, %v6834_v47 }
0x2485   :  { %v6835_v51 = vsub.f32 %v11470_v35, %v6832_v11  ;;  %v6840_v56 = vsel %vm466_vm9, %v6837_v41, 0.0 }
0x2486   :  { %6841 = vadd.xlane.f32.xlu0 %v6840_v56  ;;  %v6830_v36 = vpop.xlane.xlu1 %6829 }
0x2487   :  { %v6833_v49 = vmul.f32 0.03125, %v6830_v36  ;;  %v6838_v60 = vmul.f32 %v6835_v51, %v6835_v51 }
0x2489   :  { %v6836_v59 = vsub.f32 %v11475_v15, %v6833_v49  ;;  %v6843_v12 = vsel %vm466_vm9, %v6838_v60, 0.0 }
0x248a   :  { %6844 = vadd.xlane.f32.xlu1 %v6843_v12 }
0x248b   :  { %v6839_v32 = vmul.f32 %v6836_v59, %v6836_v59 }
0x248d   :  { %v6846_v14 = vsel %vm1754_vm14, %v6839_v32, 0.0 }
0x248e   :  { %6847 = vadd.xlane.f32.xlu0 %v6846_v14 }
0x2513   :  { %v6842_v8 = vpop.xlane.xlu0 %6841 }
0x2514   :  { %v6849_v9 = vmul.f32 0.03125, %v6842_v8 }
0x2516   :  { %v6852_v58 = vadd.f32 1e-05, %v6849_v9 }
0x2517   :  { %v6845_v62 = vpop.xlane.xlu1 %6844 }
0x2518   :  { %9444 = vrsqrt.f32 %v6852_v58  ;;  %v6850_v10 = vmul.f32 0.03125, %v6845_v62 }
0x251a   :  { %v6853_v40 = vadd.f32 1e-05, %v6850_v10 }
0x251b   :  { %v6848_v13 = vpop.xlane.xlu0 %6847 }
0x251c   :  { %9446 = vrsqrt.f32 %v6853_v40  ;;  %v6851_v16 = vmul.f32 0.03125, %v6848_v13 }
0x251e   :  { %v6854_v18 = vadd.f32 1e-05, %v6851_v16 }
0x2520   :  { %9448 = vrsqrt.f32 %v6854_v18 }
0x2522   :  { %v9445_v5 = vpop.eup %9444 }
0x2523   :  { %v6858_v23 = vmul.f32 %v9445_v5, %v6834_v47  ;;  %v7521_v47 = vld [vmem:[#allocation13 + $0x3] ss:$0 sm:$0xff] }
0x2525   :  { %v6867_v42 = vmul.f32 %v7519_v20, %v6858_v23 }
0x2526   :  { %v9447_v7 = vpop.eup %9446 }
0x2527   :  { %v6876_v31 = vadd.f32 %v7520_v6, %v6867_v42  ;;  %v6859_v17 = vmul.f32 %v9447_v7, %v6835_v51 }
0x2529   :  { %8939 = vmatmul.mubr.msk.f32.vlgmr.msra.gmra.mrb[178].mxu1 %vm466_vm9, %v6876_v31  ;;  %8956 = vmatmul.mubr.msk.f32.vlgmr.msra.gmra.mrb[186].mxu0 %vm466_vm9, %v6876_v31  ;;  %v6868_v29 = vmul.f32 %v7519_v20, %v6859_v17 }
0x252a   :  { %v9449_v45 = vpop.eup %9448  ;;  %8941 = vmatprep.mubr.msk.f32.mxu1 %vm9735_vm7, %v9734_v25  ;;  %8958 = vmatprep.mubr.msk.f32.mxu0 %vm9735_vm7, %v9734_v25 }
0x252b   :  { %v6877_v61 = vadd.f32 %v7520_v6, %v6868_v29  ;;  %v6860_v2 = vmul.f32 %v9449_v45, %v6836_v59  ;;  %9300 = vmatpush3.bf16.msra.mxu1 %v9299_v28 }
0x252c   :  { %9301 = vmatprep.subr.bf16.mxu1 %v9733_v21 }
0x252d   :  { %8942 = vmatmul.mubr.msk.f32.gmra.mrb[180].mxu1 %vm466_vm9, %v6877_v61  ;;  %8959 = vmatmul.mubr.msk.f32.gmra.mrb[188].mxu0 %vm466_vm9, %v6877_v61  ;;  %v6869_v50 = vmul.f32 %v7519_v20, %v6860_v2 }
0x252e   :  { %8944 = vmatprep.mubr.msk.f32.mxu1 %vm9735_vm7, %v9734_v25  ;;  %8961 = vmatprep.mubr.msk.f32.mxu0 %vm9735_vm7, %v9734_v25 }
0x252f   :  { %v6878_v38 = vadd.f32 %v7520_v6, %v6869_v50  ;;  %9303 = vmatpush3.bf16.msra.mxu1 %v9302_v43 }
0x2530   :  { %9304 = vmatprep.subr.bf16.mxu1 %v9733_v21 }
0x2531   :  { %8945 = vmatmul.mubr.msk.f32.gmra.mrb[182].mxu1 %vm466_vm9, %v6878_v38  ;;  %8962 = vmatmul.mubr.msk.f32.gmra.mrb[190].mxu0 %vm466_vm9, %v6878_v38 }
0x2532   :  { %8976 = vmatprep.mubr.msk.f32.mxu1 %vm9735_vm7, %v9734_v25 }
0x2533   :  { %9307 = vmatpush3.bf16.msk.msra.mxu1 %vm10455_vm0, %v9305_v30 }
0x25fc   :  { %v6967_v19 = vpop.f32.mrb[178].mxu1  ;;  %v7060_v11 = vpop.f32.mrb[186].mxu0 }
0x25fd   :  { %v7061_v41 = vadd.f32 %v7525_v55, %v7060_v11  ;;  %v8940_v51 = vpop.f32.mrb[179].mxu1  ;;  %v8957_v56 = vpop.f32.mrb[187].mxu0  ;;  %v6968_v21 = vadd.f32 %v7521_v47, %v6967_v19 }
0x25ff   :  { %v7074_v36 = vmax.f32 %v7061_v41, 0.0 }
0x2600   :  { %v6972_v49 = vpop.f32.mrb[180].mxu1  ;;  %v7065_v60 = vpop.f32.mrb[188].mxu0 }
0x2601   :  { %v7077_v59 = vmul.f32 %v7074_v36, %v6968_v21  ;;  %v7066_v12 = vadd.f32 %v7525_v55, %v7065_v60  ;;  %v8943_v32 = vpop.f32.mrb[181].mxu1  ;;  %v8960_v14 = vpop.f32.mrb[189].mxu0  ;;  %v6973_v33 = vadd.f32 %v7521_v47, %v6972_v49 }
0x2603   :  { %v7075_v39 = vmax.f32 %v7066_v12, 0.0  ;;  %8977 = vmatmul.mubr.msk.f32.vlgmr.msra.gmra.mrb[184].mxu1 %vm2010_vm2, %v7077_v59 }
0x2604   :  { %v6977_v53 = vpop.f32.mrb[182].mxu1  ;;  %v7070_v22 = vpop.f32.mrb[190].mxu0  ;;  %8979 = vmatprep.mubr.msk.f32.mxu1 %vm9735_vm7, %v9734_v25 }
0x2605   :  { %v7078_v57 = vmul.f32 %v7075_v39, %v6973_v33  ;;  %v7071_v1 = vadd.f32 %v7525_v55, %v7070_v22  ;;  %v8946_v34 = vpop.f32.mrb[183].mxu1  ;;  %v8963_v52 = vpop.f32.mrb[191].mxu0  ;;  %v6978_v63 = vadd.f32 %v7521_v47, %v6977_v53 }
0x2607   :  { %v7076_v3 = vmax.f32 %v7071_v1, 0.0  ;;  %8980 = vmatmul.mubr.msk.f32.gmra.mrb[186].mxu1 %vm2010_vm2, %v7078_v57 }
0x2608   :  { %8982 = vmatprep.mubr.msk.f32.mxu1 %vm9735_vm7, %v9734_v25 }
0x2609   :  { %v7079_v54 = vmul.f32 %v7076_v3, %v6978_v63 }
0x260b   :  { %8983 = vmatmul.mubr.msk.f32.gmra.mrb[188].mxu1 %vm2010_vm2, %v7079_v54 }
0x26d6   :  { %v7165_v48 = vpop.f32.mrb[184].mxu1 }
0x26d7   :  { %v7179_v8 = vadd.f32 %v7165_v48, %v11465_v46  ;;  %v8978_v9 = vpop.f32.mrb[185].mxu1 }
0x26d9   :  { %v7190_v58 = vadd.f32 %v7539_v4, %v7179_v8 }
0x26da   :  { %v7170_v62 = vpop.f32.mrb[186].mxu1 }
0x26db   :  { %7193 = vst.msk [vmem:[%s11600_s27] sm:$0xff] %vm466_vm9, %v7190_v58  ;;  %v7180_v10 = vadd.f32 %v7170_v62, %v11470_v35  ;;  %v8981_v40 = vpop.f32.mrb[187].mxu1 }
0x26dd   :  { %v7191_v13 = vadd.f32 %v7539_v4, %v7180_v10 }
0x26de   :  { %v7175_v25 = vpop.f32.mrb[188].mxu1 }
0x26df   :  { %7194 = vst.msk [vmem:[%s11600_s27 + $0x8] sm:$0xff] %vm466_vm9, %v7191_v13  ;;  %v7181_v46 = vadd.f32 %v7175_v25, %v11475_v15  ;;  %v8984_v16 = vpop.f32.mrb[189].mxu1 }
0x26e1   :  { %v7192_v18 = vadd.f32 %v7539_v4, %v7181_v46 }
0x26e3   :  { %7195 = vst.msk [vmem:[%s11600_s27 + $0x10] sm:$0xf] %vm1754_vm14, %v7192_v18 }
0x26e4   :  { %7200 = vsyncpa [#allocation3], 1 }
0x26e5   :  { %7201 = vsyncpa [#allocation5], 1 }
0x26e6   :  { %7202 = vsyncpa [#allocation8], 1 }
0x26e7   :  { %7203 = vsyncpa [#allocation11], 1 }
0x26e8   :  { %7204 = vsyncpa [#allocation14], 1 }
0x26e9   :  { %7205 = vsyncpa [#allocation17], 1 }

</bundles_post_ra>
